<compile_context>
chip_gen: v5e
topology: v5e:2x2
jax: 0.10.0
libtpu: 0.0.40
codegen_flags: <defaults>
</compile_context>

<pallas_src>
import functools

import jax
import jax.numpy as jnp
import numpy as np
from jax.experimental import pallas as pl
from jax.experimental.pallas import tpu as pltpu


# ----------------------------------------------------------------------------
# Fused Pallas kernel: all LSTM layers + FC head, one invocation, no grid.
# ----------------------------------------------------------------------------
def _make_fused_kernel(num_layers, T, B, H):
    """Build the fused StockLSTM kernel body for fixed static shapes.

    Kernel refs (in order):
      x2d                      (B*T, D_in)   batch-major rows (b*T + t)
      [wih_t, whh_t, b] * L    per-layer weights:
                               wih_t (D_l, 4H), whh_t (H, 4H), b (1, 4H)
      fc_w_t                   (H, O)
      fc_b                     (1, O)
      out_ref                  (B, O)
    """

    def kernel(*refs):
        x_ref = refs[0]
        layer_refs = refs[1:1 + 3 * num_layers]
        fcw_ref, fcb_ref, out_ref = refs[1 + 3 * num_layers:]

        # ---- Layer 0: batched input projection over ALL timesteps (f32). ---
        # One MXU contraction; bias (b_ih+b_hh) folded in; result stays in
        # vregs (~2 vregs), never written to VMEM scratch.
        wih0 = layer_refs[0][...]                                  # (D, 4H)
        b0 = layer_refs[2][...]                                    # (1, 4H)
        proj0 = jnp.dot(x_ref[...], wih0,
                        preferred_element_type=jnp.float32) + b0   # (B*T, 4H)
        proj0 = proj0.reshape(B, T, 4 * H)                         # rows b*T+t
        # Per-step (B, 4H) projections as register values.
        proj = [proj0[:, t, :] for t in range(T)]

        h = None
        for l in range(num_layers):
            # Recurrent weights in bf16 (MXU operands only; f32 accumulate).
            whh_bf = layer_refs[3 * l + 1][...].astype(jnp.bfloat16)  # (H,4H)
            last = (l == num_layers - 1)
            if not last:
                wih_next = layer_refs[3 * (l + 1) + 0][...]           # (H,4H)
                b_next = layer_refs[3 * (l + 1) + 2][...]             # (1,4H)
                proj_next = []

            h = None
            c = None
            # T is small and static: fully unrolled, all slice indices static.
            for t in range(T):
                if t == 0:
                    # h0 = 0: skip the recurrent matmul entirely.
                    gates = proj[0]                                   # (B, 4H)
                else:
                    gates = proj[t] + jnp.dot(
                        h.astype(jnp.bfloat16), whh_bf,
                        preferred_element_type=jnp.float32)           # (B, 4H)
                # Two full-width transcendental passes instead of four H-wide.
                sg = jax.nn.sigmoid(gates)
                tg = jnp.tanh(gates)
                i = sg[:, 0 * H:1 * H]
                f = sg[:, 1 * H:2 * H]
                g = tg[:, 2 * H:3 * H]
                o = sg[:, 3 * H:4 * H]
                c = i * g if t == 0 else f * c + i * g                # c0 = 0
                h = o * jnp.tanh(c)
                if not last:
                    # Software pipeline: issue the NEXT layer's input
                    # projection for step t right here, filling the MXU
                    # bubbles while this layer's EUP/VPU work runs.  Kept in
                    # f32 (off the critical path; minimizes error drift).
                    proj_next.append(
                        jnp.dot(h, wih_next,
                                preferred_element_type=jnp.float32) + b_next)
            if not last:
                proj = proj_next

        # FC head on the final hidden state (== lstm_out[:, -1, :]); f32.
        out = (jnp.dot(h, fcw_ref[...], preferred_element_type=jnp.float32)
               + fcb_ref[...])
        out_ref[...] = out.astype(out_ref.dtype)

    return kernel


# ----------------------------------------------------------------------------
# Wrapper
# ----------------------------------------------------------------------------
def stock_lstm_forward(x, params, num_layers, target_size, output_size):
    """x: (B, T, input_size), batch_first like the PyTorch module."""
    B, T, D = x.shape
    H = params["layer0"]["whh_t"].shape[0]
    O = target_size * output_size

    # Batch-major flatten: a FREE reshape (no transpose op / HBM round trip).
    # Row index = b*T + t; the kernel accounts for this ordering.
    x2d = x.reshape(B * T, D)

    args = [x2d]
    for l in range(num_layers):
        p = params[f"layer{l}"]
        args += [p["wih_t"], p["whh_t"], p["b"]]
    args += [params["fc_w_t"], params["fc_b"]]

    # Advisory cost estimate so XLA schedules around this tiny custom call.
    flops = 0
    d_in = D
    for _ in range(num_layers):
        flops += 2 * T * B * (d_in + H) * 4 * H
        d_in = H
    flops += 2 * B * H * O
    transcendentals = num_layers * T * B * 9 * H        # sigmoid+tanh+tanh(c)
    bytes_accessed = sum(int(np.prod(a.shape)) * 4 for a in args) + B * O * 4

    kernel = _make_fused_kernel(num_layers, T, B, H)
    out = pl.pallas_call(
        kernel,
        out_shape=jax.ShapeDtypeStruct((B, O), jnp.float32),
        in_specs=[pl.BlockSpec(memory_space=pltpu.MemorySpace.VMEM)] * len(args),
        out_specs=pl.BlockSpec(memory_space=pltpu.MemorySpace.VMEM),
        cost_estimate=pl.CostEstimate(flops=int(flops),
                                      transcendentals=int(transcendentals),
                                      bytes_accessed=int(bytes_accessed)),
    )(*args)
    return out.reshape(-1, target_size, output_size)


# ----------------------------------------------------------------------------
# Deterministic parameter init (PyTorch-style U(-1/sqrt(H), 1/sqrt(H)))
# ----------------------------------------------------------------------------
def init_params(key, input_size, hidden_size, num_layers, target_size, output_size):
    params = {}
    k = 1.0 / np.sqrt(hidden_size)
    for l in range(num_layers):
        d_in = input_size if l == 0 else hidden_size
        key, k1, k2, k3, k4 = jax.random.split(key, 5)
        w_ih = jax.random.uniform(k1, (4 * hidden_size, d_in), jnp.float32, -k, k)
        w_hh = jax.random.uniform(k2, (4 * hidden_size, hidden_size), jnp.float32, -k, k)
        b_ih = jax.random.uniform(k3, (4 * hidden_size,), jnp.float32, -k, k)
        b_hh = jax.random.uniform(k4, (4 * hidden_size,), jnp.float32, -k, k)
        params[f"layer{l}"] = {
            "wih_t": w_ih.T,                               # (d_in, 4H)
            "whh_t": w_hh.T,                               # (H, 4H)
            "b": (b_ih + b_hh).reshape(1, 4 * hidden_size),
        }
    key, k1, k2 = jax.random.split(key, 3)
    fc_out = target_size * output_size
    fc_w = jax.random.uniform(k1, (fc_out, hidden_size), jnp.float32, -k, k)
    fc_b = jax.random.uniform(k2, (fc_out,), jnp.float32, -k, k)
    params["fc_w_t"] = fc_w.T                              # (H, fc_out)
    params["fc_b"] = fc_b.reshape(1, fc_out)
    return params


# ----------------------------------------------------------------------------
# Pure-JAX f32 reference (correctness check)
# ----------------------------------------------------------------------------
def stock_lstm_ref(x, params, num_layers, target_size, output_size):
    B = x.shape[0]
    seq = x
    for l in range(num_layers):
        p = params[f"layer{l}"]
        wih_t, whh_t, b = p["wih_t"], p["whh_t"], p["b"]
        H = whh_t.shape[0]

        def step(carry, x_t):
            h, c = carry
            gates = x_t @ wih_t + h @ whh_t + b
            i, f, g, o = jnp.split(gates, 4, axis=-1)
            i, f, o = jax.nn.sigmoid(i), jax.nn.sigmoid(f), jax.nn.sigmoid(o)
            g = jnp.tanh(g)
            c = f * c + i * g
            h = o * jnp.tanh(c)
            return (h, c), h

        h0 = jnp.zeros((B, H), jnp.float32)
        c0 = jnp.zeros((B, H), jnp.float32)
        (_, _), hs = jax.lax.scan(step, (h0, c0), jnp.transpose(seq, (1, 0, 2)))
        seq = jnp.transpose(hs, (1, 0, 2))
    out = seq[:, -1, :] @ params["fc_w_t"] + params["fc_b"]
    return out.reshape(-1, target_size, output_size)


# ----------------------------------------------------------------------------
if __name__ == "__main__":
    # Small shapes consistent with the module: batch=2, seq=8, features=16,
    # hidden=32 (so 4H = 128 lanes), num_layers=3, target_size=4,
    # output_size=input_size=16.
    batch, seq_len, input_size = 2, 8, 16
    hidden_size, num_layers = 32, 3
    output_size = input_size
    target_size = 4

    key = jax.random.PRNGKey(0)
    key, pkey, xkey = jax.random.split(key, 3)
    params = init_params(pkey, input_size, hidden_size, num_layers,
                         target_size, output_size)
    x = jax.random.normal(xkey, (batch, seq_len, input_size), jnp.float32)

    fwd = jax.jit(functools.partial(
        stock_lstm_forward, num_layers=num_layers,
        target_size=target_size, output_size=output_size))
    out = jax.block_until_ready(fwd(x, params))

    ref = stock_lstm_ref(x, params, num_layers, target_size, output_size)
    # Tolerance loosened vs the pure-f32 version: the recurrent h@W_hh matmul
    # uses bf16 MXU operands (f32 accumulation); all other math stays f32.
    np.testing.assert_allclose(np.asarray(out), np.asarray(ref),
                               rtol=2e-2, atol=2e-2)
    assert out.shape == (batch, target_size, output_size)
    print("KERNEL_OK")
</pallas_src>

<mosaic_0001>
module attributes {stable_mosaic.version = 11 : i64} {
  func.func @kernel(%arg0: memref<16x16xf32, #tpu.memory_space<vmem>>, %arg1: memref<16x128xf32, #tpu.memory_space<vmem>>, %arg2: memref<32x128xf32, #tpu.memory_space<vmem>>, %arg3: memref<1x128xf32, #tpu.memory_space<vmem>>, %arg4: memref<32x128xf32, #tpu.memory_space<vmem>>, %arg5: memref<32x128xf32, #tpu.memory_space<vmem>>, %arg6: memref<1x128xf32, #tpu.memory_space<vmem>>, %arg7: memref<32x128xf32, #tpu.memory_space<vmem>>, %arg8: memref<32x128xf32, #tpu.memory_space<vmem>>, %arg9: memref<1x128xf32, #tpu.memory_space<vmem>>, %arg10: memref<32x64xf32, #tpu.memory_space<vmem>>, %arg11: memref<1x64xf32, #tpu.memory_space<vmem>>, %arg12: memref<2x64xf32, #tpu.memory_space<vmem>>) attributes {dimension_semantics = [], scalar_prefetch = 0 : i64, scratch_operands = 0 : i64, tpu.core_type = #tpu.core_type<tc>} {
    %c0 = arith.constant 0 : index
    %c0_0 = arith.constant 0 : index
    %0 = vector.load %arg1[%c0, %c0_0] : memref<16x128xf32, #tpu.memory_space<vmem>>, vector<16x128xf32>
    %c0_1 = arith.constant 0 : index
    %c0_2 = arith.constant 0 : index
    %1 = vector.load %arg3[%c0_1, %c0_2] : memref<1x128xf32, #tpu.memory_space<vmem>>, vector<1x128xf32>
    %c0_3 = arith.constant 0 : index
    %c0_4 = arith.constant 0 : index
    %2 = vector.load %arg0[%c0_3, %c0_4] : memref<16x16xf32, #tpu.memory_space<vmem>>, vector<16x16xf32>
    %cst = arith.constant dense<0.000000e+00> : vector<16x128xf32>
    %3 = tpu.matmul %2, %0, %cst {dimension_numbers = #tpu.dot_dimension_numbers<[1], [0], [0], [1], [0, 0, 1, 1], [], []>} : vector<16x16xf32>, vector<16x128xf32>, vector<16x128xf32> -> vector<16x128xf32>
    %4 = vector.broadcast %1 : vector<1x128xf32> to vector<16x128xf32>
    %5 = arith.addf %3, %4 : vector<16x128xf32>
    %6 = vector.shape_cast %5 : vector<16x128xf32> to vector<2x8x128xf32>
    %7 = vector.extract_strided_slice %6 {offsets = [0, 0, 0], sizes = [2, 1, 128], strides = [1, 1, 1]} : vector<2x8x128xf32> to vector<2x1x128xf32>
    %8 = vector.shape_cast %7 : vector<2x1x128xf32> to vector<2x128xf32>
    %9 = vector.extract_strided_slice %6 {offsets = [0, 1, 0], sizes = [2, 1, 128], strides = [1, 1, 1]} : vector<2x8x128xf32> to vector<2x1x128xf32>
    %10 = vector.shape_cast %9 : vector<2x1x128xf32> to vector<2x128xf32>
    %11 = vector.extract_strided_slice %6 {offsets = [0, 2, 0], sizes = [2, 1, 128], strides = [1, 1, 1]} : vector<2x8x128xf32> to vector<2x1x128xf32>
    %12 = vector.shape_cast %11 : vector<2x1x128xf32> to vector<2x128xf32>
    %13 = vector.extract_strided_slice %6 {offsets = [0, 3, 0], sizes = [2, 1, 128], strides = [1, 1, 1]} : vector<2x8x128xf32> to vector<2x1x128xf32>
    %14 = vector.shape_cast %13 : vector<2x1x128xf32> to vector<2x128xf32>
    %15 = vector.extract_strided_slice %6 {offsets = [0, 4, 0], sizes = [2, 1, 128], strides = [1, 1, 1]} : vector<2x8x128xf32> to vector<2x1x128xf32>
    %16 = vector.shape_cast %15 : vector<2x1x128xf32> to vector<2x128xf32>
    %17 = vector.extract_strided_slice %6 {offsets = [0, 5, 0], sizes = [2, 1, 128], strides = [1, 1, 1]} : vector<2x8x128xf32> to vector<2x1x128xf32>
    %18 = vector.shape_cast %17 : vector<2x1x128xf32> to vector<2x128xf32>
    %19 = vector.extract_strided_slice %6 {offsets = [0, 6, 0], sizes = [2, 1, 128], strides = [1, 1, 1]} : vector<2x8x128xf32> to vector<2x1x128xf32>
    %20 = vector.shape_cast %19 : vector<2x1x128xf32> to vector<2x128xf32>
    %21 = vector.extract_strided_slice %6 {offsets = [0, 7, 0], sizes = [2, 1, 128], strides = [1, 1, 1]} : vector<2x8x128xf32> to vector<2x1x128xf32>
    %22 = vector.shape_cast %21 : vector<2x1x128xf32> to vector<2x128xf32>
    %c0_5 = arith.constant 0 : index
    %c0_6 = arith.constant 0 : index
    %23 = vector.load %arg2[%c0_5, %c0_6] : memref<32x128xf32, #tpu.memory_space<vmem>>, vector<32x128xf32>
    %24 = arith.truncf %23 : vector<32x128xf32> to vector<32x128xbf16>
    %c0_7 = arith.constant 0 : index
    %c0_8 = arith.constant 0 : index
    %25 = vector.load %arg4[%c0_7, %c0_8] : memref<32x128xf32, #tpu.memory_space<vmem>>, vector<32x128xf32>
    %c0_9 = arith.constant 0 : index
    %c0_10 = arith.constant 0 : index
    %26 = vector.load %arg6[%c0_9, %c0_10] : memref<1x128xf32, #tpu.memory_space<vmem>>, vector<1x128xf32>
    %27 = arith.negf %8 : vector<2x128xf32>
    %28 = math.exp %27 : vector<2x128xf32>
    %cst_11 = arith.constant 1.000000e+00 : f32
    %29 = vector.broadcast %cst_11 : f32 to vector<2x128xf32>
    %30 = arith.addf %29, %28 : vector<2x128xf32>
    %31 = arith.divf %29, %30 : vector<2x128xf32>
    %32 = math.tanh %8 : vector<2x128xf32>
    %33 = vector.extract_strided_slice %31 {offsets = [0, 0], sizes = [2, 32], strides = [1, 1]} : vector<2x128xf32> to vector<2x32xf32>
    %34 = vector.extract_strided_slice %32 {offsets = [0, 64], sizes = [2, 32], strides = [1, 1]} : vector<2x128xf32> to vector<2x32xf32>
    %35 = vector.extract_strided_slice %31 {offsets = [0, 96], sizes = [2, 32], strides = [1, 1]} : vector<2x128xf32> to vector<2x32xf32>
    %36 = arith.mulf %33, %34 : vector<2x32xf32>
    %37 = math.tanh %36 : vector<2x32xf32>
    %38 = arith.mulf %35, %37 : vector<2x32xf32>
    %cst_12 = arith.constant dense<0.000000e+00> : vector<2x128xf32>
    %39 = tpu.matmul %38, %25, %cst_12 {dimension_numbers = #tpu.dot_dimension_numbers<[1], [0], [0], [1], [0, 0, 1, 1], [], []>} : vector<2x32xf32>, vector<32x128xf32>, vector<2x128xf32> -> vector<2x128xf32>
    %40 = vector.broadcast %26 : vector<1x128xf32> to vector<2x128xf32>
    %41 = arith.addf %39, %40 : vector<2x128xf32>
    %42 = arith.truncf %38 : vector<2x32xf32> to vector<2x32xbf16>
    %cst_13 = arith.constant dense<0.000000e+00> : vector<2x128xf32>
    %43 = tpu.matmul %42, %24, %cst_13 {dimension_numbers = #tpu.dot_dimension_numbers<[1], [0], [0], [1], [0, 0, 1, 1], [], []>} : vector<2x32xbf16>, vector<32x128xbf16>, vector<2x128xf32> -> vector<2x128xf32>
    %44 = arith.addf %10, %43 : vector<2x128xf32>
    %45 = arith.negf %44 : vector<2x128xf32>
    %46 = math.exp %45 : vector<2x128xf32>
    %cst_14 = arith.constant 1.000000e+00 : f32
    %47 = vector.broadcast %cst_14 : f32 to vector<2x128xf32>
    %48 = arith.addf %47, %46 : vector<2x128xf32>
    %49 = arith.divf %47, %48 : vector<2x128xf32>
    %50 = math.tanh %44 : vector<2x128xf32>
    %51 = vector.extract_strided_slice %49 {offsets = [0, 0], sizes = [2, 32], strides = [1, 1]} : vector<2x128xf32> to vector<2x32xf32>
    %52 = vector.extract_strided_slice %49 {offsets = [0, 32], sizes = [2, 32], strides = [1, 1]} : vector<2x128xf32> to vector<2x32xf32>
    %53 = vector.extract_strided_slice %50 {offsets = [0, 64], sizes = [2, 32], strides = [1, 1]} : vector<2x128xf32> to vector<2x32xf32>
    %54 = vector.extract_strided_slice %49 {offsets = [0, 96], sizes = [2, 32], strides = [1, 1]} : vector<2x128xf32> to vector<2x32xf32>
    %55 = arith.mulf %52, %36 : vector<2x32xf32>
    %56 = arith.mulf %51, %53 : vector<2x32xf32>
    %57 = arith.addf %55, %56 : vector<2x32xf32>
    %58 = math.tanh %57 : vector<2x32xf32>
    %59 = arith.mulf %54, %58 : vector<2x32xf32>
    %cst_15 = arith.constant dense<0.000000e+00> : vector<2x128xf32>
    %60 = tpu.matmul %59, %25, %cst_15 {dimension_numbers = #tpu.dot_dimension_numbers<[1], [0], [0], [1], [0, 0, 1, 1], [], []>} : vector<2x32xf32>, vector<32x128xf32>, vector<2x128xf32> -> vector<2x128xf32>
    %61 = vector.broadcast %26 : vector<1x128xf32> to vector<2x128xf32>
    %62 = arith.addf %60, %61 : vector<2x128xf32>
    %63 = arith.truncf %59 : vector<2x32xf32> to vector<2x32xbf16>
    %cst_16 = arith.constant dense<0.000000e+00> : vector<2x128xf32>
    %64 = tpu.matmul %63, %24, %cst_16 {dimension_numbers = #tpu.dot_dimension_numbers<[1], [0], [0], [1], [0, 0, 1, 1], [], []>} : vector<2x32xbf16>, vector<32x128xbf16>, vector<2x128xf32> -> vector<2x128xf32>
    %65 = arith.addf %12, %64 : vector<2x128xf32>
    %66 = arith.negf %65 : vector<2x128xf32>
    %67 = math.exp %66 : vector<2x128xf32>
    %cst_17 = arith.constant 1.000000e+00 : f32
    %68 = vector.broadcast %cst_17 : f32 to vector<2x128xf32>
    %69 = arith.addf %68, %67 : vector<2x128xf32>
    %70 = arith.divf %68, %69 : vector<2x128xf32>
    %71 = math.tanh %65 : vector<2x128xf32>
    %72 = vector.extract_strided_slice %70 {offsets = [0, 0], sizes = [2, 32], strides = [1, 1]} : vector<2x128xf32> to vector<2x32xf32>
    %73 = vector.extract_strided_slice %70 {offsets = [0, 32], sizes = [2, 32], strides = [1, 1]} : vector<2x128xf32> to vector<2x32xf32>
    %74 = vector.extract_strided_slice %71 {offsets = [0, 64], sizes = [2, 32], strides = [1, 1]} : vector<2x128xf32> to vector<2x32xf32>
    %75 = vector.extract_strided_slice %70 {offsets = [0, 96], sizes = [2, 32], strides = [1, 1]} : vector<2x128xf32> to vector<2x32xf32>
    %76 = arith.mulf %73, %57 : vector<2x32xf32>
    %77 = arith.mulf %72, %74 : vector<2x32xf32>
    %78 = arith.addf %76, %77 : vector<2x32xf32>
    %79 = math.tanh %78 : vector<2x32xf32>
    %80 = arith.mulf %75, %79 : vector<2x32xf32>
    %cst_18 = arith.constant dense<0.000000e+00> : vector<2x128xf32>
    %81 = tpu.matmul %80, %25, %cst_18 {dimension_numbers = #tpu.dot_dimension_numbers<[1], [0], [0], [1], [0, 0, 1, 1], [], []>} : vector<2x32xf32>, vector<32x128xf32>, vector<2x128xf32> -> vector<2x128xf32>
    %82 = vector.broadcast %26 : vector<1x128xf32> to vector<2x128xf32>
    %83 = arith.addf %81, %82 : vector<2x128xf32>
    %84 = arith.truncf %80 : vector<2x32xf32> to vector<2x32xbf16>
    %cst_19 = arith.constant dense<0.000000e+00> : vector<2x128xf32>
    %85 = tpu.matmul %84, %24, %cst_19 {dimension_numbers = #tpu.dot_dimension_numbers<[1], [0], [0], [1], [0, 0, 1, 1], [], []>} : vector<2x32xbf16>, vector<32x128xbf16>, vector<2x128xf32> -> vector<2x128xf32>
    %86 = arith.addf %14, %85 : vector<2x128xf32>
    %87 = arith.negf %86 : vector<2x128xf32>
    %88 = math.exp %87 : vector<2x128xf32>
    %cst_20 = arith.constant 1.000000e+00 : f32
    %89 = vector.broadcast %cst_20 : f32 to vector<2x128xf32>
    %90 = arith.addf %89, %88 : vector<2x128xf32>
    %91 = arith.divf %89, %90 : vector<2x128xf32>
    %92 = math.tanh %86 : vector<2x128xf32>
    %93 = vector.extract_strided_slice %91 {offsets = [0, 0], sizes = [2, 32], strides = [1, 1]} : vector<2x128xf32> to vector<2x32xf32>
    %94 = vector.extract_strided_slice %91 {offsets = [0, 32], sizes = [2, 32], strides = [1, 1]} : vector<2x128xf32> to vector<2x32xf32>
    %95 = vector.extract_strided_slice %92 {offsets = [0, 64], sizes = [2, 32], strides = [1, 1]} : vector<2x128xf32> to vector<2x32xf32>
    %96 = vector.extract_strided_slice %91 {offsets = [0, 96], sizes = [2, 32], strides = [1, 1]} : vector<2x128xf32> to vector<2x32xf32>
    %97 = arith.mulf %94, %78 : vector<2x32xf32>
    %98 = arith.mulf %93, %95 : vector<2x32xf32>
    %99 = arith.addf %97, %98 : vector<2x32xf32>
    %100 = math.tanh %99 : vector<2x32xf32>
    %101 = arith.mulf %96, %100 : vector<2x32xf32>
    %cst_21 = arith.constant dense<0.000000e+00> : vector<2x128xf32>
    %102 = tpu.matmul %101, %25, %cst_21 {dimension_numbers = #tpu.dot_dimension_numbers<[1], [0], [0], [1], [0, 0, 1, 1], [], []>} : vector<2x32xf32>, vector<32x128xf32>, vector<2x128xf32> -> vector<2x128xf32>
    %103 = vector.broadcast %26 : vector<1x128xf32> to vector<2x128xf32>
    %104 = arith.addf %102, %103 : vector<2x128xf32>
    %105 = arith.truncf %101 : vector<2x32xf32> to vector<2x32xbf16>
    %cst_22 = arith.constant dense<0.000000e+00> : vector<2x128xf32>
    %106 = tpu.matmul %105, %24, %cst_22 {dimension_numbers = #tpu.dot_dimension_numbers<[1], [0], [0], [1], [0, 0, 1, 1], [], []>} : vector<2x32xbf16>, vector<32x128xbf16>, vector<2x128xf32> -> vector<2x128xf32>
    %107 = arith.addf %16, %106 : vector<2x128xf32>
    %108 = arith.negf %107 : vector<2x128xf32>
    %109 = math.exp %108 : vector<2x128xf32>
    %cst_23 = arith.constant 1.000000e+00 : f32
    %110 = vector.broadcast %cst_23 : f32 to vector<2x128xf32>
    %111 = arith.addf %110, %109 : vector<2x128xf32>
    %112 = arith.divf %110, %111 : vector<2x128xf32>
    %113 = math.tanh %107 : vector<2x128xf32>
    %114 = vector.extract_strided_slice %112 {offsets = [0, 0], sizes = [2, 32], strides = [1, 1]} : vector<2x128xf32> to vector<2x32xf32>
    %115 = vector.extract_strided_slice %112 {offsets = [0, 32], sizes = [2, 32], strides = [1, 1]} : vector<2x128xf32> to vector<2x32xf32>
    %116 = vector.extract_strided_slice %113 {offsets = [0, 64], sizes = [2, 32], strides = [1, 1]} : vector<2x128xf32> to vector<2x32xf32>
    %117 = vector.extract_strided_slice %112 {offsets = [0, 96], sizes = [2, 32], strides = [1, 1]} : vector<2x128xf32> to vector<2x32xf32>
    %118 = arith.mulf %115, %99 : vector<2x32xf32>
    %119 = arith.mulf %114, %116 : vector<2x32xf32>
    %120 = arith.addf %118, %119 : vector<2x32xf32>
    %121 = math.tanh %120 : vector<2x32xf32>
    %122 = arith.mulf %117, %121 : vector<2x32xf32>
    %cst_24 = arith.constant dense<0.000000e+00> : vector<2x128xf32>
    %123 = tpu.matmul %122, %25, %cst_24 {dimension_numbers = #tpu.dot_dimension_numbers<[1], [0], [0], [1], [0, 0, 1, 1], [], []>} : vector<2x32xf32>, vector<32x128xf32>, vector<2x128xf32> -> vector<2x128xf32>
    %124 = vector.broadcast %26 : vector<1x128xf32> to vector<2x128xf32>
    %125 = arith.addf %123, %124 : vector<2x128xf32>
    %126 = arith.truncf %122 : vector<2x32xf32> to vector<2x32xbf16>
    %cst_25 = arith.constant dense<0.000000e+00> : vector<2x128xf32>
    %127 = tpu.matmul %126, %24, %cst_25 {dimension_numbers = #tpu.dot_dimension_numbers<[1], [0], [0], [1], [0, 0, 1, 1], [], []>} : vector<2x32xbf16>, vector<32x128xbf16>, vector<2x128xf32> -> vector<2x128xf32>
    %128 = arith.addf %18, %127 : vector<2x128xf32>
    %129 = arith.negf %128 : vector<2x128xf32>
    %130 = math.exp %129 : vector<2x128xf32>
    %cst_26 = arith.constant 1.000000e+00 : f32
    %131 = vector.broadcast %cst_26 : f32 to vector<2x128xf32>
    %132 = arith.addf %131, %130 : vector<2x128xf32>
    %133 = arith.divf %131, %132 : vector<2x128xf32>
    %134 = math.tanh %128 : vector<2x128xf32>
    %135 = vector.extract_strided_slice %133 {offsets = [0, 0], sizes = [2, 32], strides = [1, 1]} : vector<2x128xf32> to vector<2x32xf32>
    %136 = vector.extract_strided_slice %133 {offsets = [0, 32], sizes = [2, 32], strides = [1, 1]} : vector<2x128xf32> to vector<2x32xf32>
    %137 = vector.extract_strided_slice %134 {offsets = [0, 64], sizes = [2, 32], strides = [1, 1]} : vector<2x128xf32> to vector<2x32xf32>
    %138 = vector.extract_strided_slice %133 {offsets = [0, 96], sizes = [2, 32], strides = [1, 1]} : vector<2x128xf32> to vector<2x32xf32>
    %139 = arith.mulf %136, %120 : vector<2x32xf32>
    %140 = arith.mulf %135, %137 : vector<2x32xf32>
    %141 = arith.addf %139, %140 : vector<2x32xf32>
    %142 = math.tanh %141 : vector<2x32xf32>
    %143 = arith.mulf %138, %142 : vector<2x32xf32>
    %cst_27 = arith.constant dense<0.000000e+00> : vector<2x128xf32>
    %144 = tpu.matmul %143, %25, %cst_27 {dimension_numbers = #tpu.dot_dimension_numbers<[1], [0], [0], [1], [0, 0, 1, 1], [], []>} : vector<2x32xf32>, vector<32x128xf32>, vector<2x128xf32> -> vector<2x128xf32>
    %145 = vector.broadcast %26 : vector<1x128xf32> to vector<2x128xf32>
    %146 = arith.addf %144, %145 : vector<2x128xf32>
    %147 = arith.truncf %143 : vector<2x32xf32> to vector<2x32xbf16>
    %cst_28 = arith.constant dense<0.000000e+00> : vector<2x128xf32>
    %148 = tpu.matmul %147, %24, %cst_28 {dimension_numbers = #tpu.dot_dimension_numbers<[1], [0], [0], [1], [0, 0, 1, 1], [], []>} : vector<2x32xbf16>, vector<32x128xbf16>, vector<2x128xf32> -> vector<2x128xf32>
    %149 = arith.addf %20, %148 : vector<2x128xf32>
    %150 = arith.negf %149 : vector<2x128xf32>
    %151 = math.exp %150 : vector<2x128xf32>
    %cst_29 = arith.constant 1.000000e+00 : f32
    %152 = vector.broadcast %cst_29 : f32 to vector<2x128xf32>
    %153 = arith.addf %152, %151 : vector<2x128xf32>
    %154 = arith.divf %152, %153 : vector<2x128xf32>
    %155 = math.tanh %149 : vector<2x128xf32>
    %156 = vector.extract_strided_slice %154 {offsets = [0, 0], sizes = [2, 32], strides = [1, 1]} : vector<2x128xf32> to vector<2x32xf32>
    %157 = vector.extract_strided_slice %154 {offsets = [0, 32], sizes = [2, 32], strides = [1, 1]} : vector<2x128xf32> to vector<2x32xf32>
    %158 = vector.extract_strided_slice %155 {offsets = [0, 64], sizes = [2, 32], strides = [1, 1]} : vector<2x128xf32> to vector<2x32xf32>
    %159 = vector.extract_strided_slice %154 {offsets = [0, 96], sizes = [2, 32], strides = [1, 1]} : vector<2x128xf32> to vector<2x32xf32>
    %160 = arith.mulf %157, %141 : vector<2x32xf32>
    %161 = arith.mulf %156, %158 : vector<2x32xf32>
    %162 = arith.addf %160, %161 : vector<2x32xf32>
    %163 = math.tanh %162 : vector<2x32xf32>
    %164 = arith.mulf %159, %163 : vector<2x32xf32>
    %cst_30 = arith.constant dense<0.000000e+00> : vector<2x128xf32>
    %165 = tpu.matmul %164, %25, %cst_30 {dimension_numbers = #tpu.dot_dimension_numbers<[1], [0], [0], [1], [0, 0, 1, 1], [], []>} : vector<2x32xf32>, vector<32x128xf32>, vector<2x128xf32> -> vector<2x128xf32>
    %166 = vector.broadcast %26 : vector<1x128xf32> to vector<2x128xf32>
    %167 = arith.addf %165, %166 : vector<2x128xf32>
    %168 = arith.truncf %164 : vector<2x32xf32> to vector<2x32xbf16>
    %cst_31 = arith.constant dense<0.000000e+00> : vector<2x128xf32>
    %169 = tpu.matmul %168, %24, %cst_31 {dimension_numbers = #tpu.dot_dimension_numbers<[1], [0], [0], [1], [0, 0, 1, 1], [], []>} : vector<2x32xbf16>, vector<32x128xbf16>, vector<2x128xf32> -> vector<2x128xf32>
    %170 = arith.addf %22, %169 : vector<2x128xf32>
    %171 = arith.negf %170 : vector<2x128xf32>
    %172 = math.exp %171 : vector<2x128xf32>
    %cst_32 = arith.constant 1.000000e+00 : f32
    %173 = vector.broadcast %cst_32 : f32 to vector<2x128xf32>
    %174 = arith.addf %173, %172 : vector<2x128xf32>
    %175 = arith.divf %173, %174 : vector<2x128xf32>
    %176 = math.tanh %170 : vector<2x128xf32>
    %177 = vector.extract_strided_slice %175 {offsets = [0, 0], sizes = [2, 32], strides = [1, 1]} : vector<2x128xf32> to vector<2x32xf32>
    %178 = vector.extract_strided_slice %175 {offsets = [0, 32], sizes = [2, 32], strides = [1, 1]} : vector<2x128xf32> to vector<2x32xf32>
    %179 = vector.extract_strided_slice %176 {offsets = [0, 64], sizes = [2, 32], strides = [1, 1]} : vector<2x128xf32> to vector<2x32xf32>
    %180 = vector.extract_strided_slice %175 {offsets = [0, 96], sizes = [2, 32], strides = [1, 1]} : vector<2x128xf32> to vector<2x32xf32>
    %181 = arith.mulf %178, %162 : vector<2x32xf32>
    %182 = arith.mulf %177, %179 : vector<2x32xf32>
    %183 = arith.addf %181, %182 : vector<2x32xf32>
    %184 = math.tanh %183 : vector<2x32xf32>
    %185 = arith.mulf %180, %184 : vector<2x32xf32>
    %cst_33 = arith.constant dense<0.000000e+00> : vector<2x128xf32>
    %186 = tpu.matmul %185, %25, %cst_33 {dimension_numbers = #tpu.dot_dimension_numbers<[1], [0], [0], [1], [0, 0, 1, 1], [], []>} : vector<2x32xf32>, vector<32x128xf32>, vector<2x128xf32> -> vector<2x128xf32>
    %187 = vector.broadcast %26 : vector<1x128xf32> to vector<2x128xf32>
    %188 = arith.addf %186, %187 : vector<2x128xf32>
    %c0_34 = arith.constant 0 : index
    %c0_35 = arith.constant 0 : index
    %189 = vector.load %arg5[%c0_34, %c0_35] : memref<32x128xf32, #tpu.memory_space<vmem>>, vector<32x128xf32>
    %190 = arith.truncf %189 : vector<32x128xf32> to vector<32x128xbf16>
    %c0_36 = arith.constant 0 : index
    %c0_37 = arith.constant 0 : index
    %191 = vector.load %arg7[%c0_36, %c0_37] : memref<32x128xf32, #tpu.memory_space<vmem>>, vector<32x128xf32>
    %c0_38 = arith.constant 0 : index
    %c0_39 = arith.constant 0 : index
    %192 = vector.load %arg9[%c0_38, %c0_39] : memref<1x128xf32, #tpu.memory_space<vmem>>, vector<1x128xf32>
    %193 = arith.negf %41 : vector<2x128xf32>
    %194 = math.exp %193 : vector<2x128xf32>
    %cst_40 = arith.constant 1.000000e+00 : f32
    %195 = vector.broadcast %cst_40 : f32 to vector<2x128xf32>
    %196 = arith.addf %195, %194 : vector<2x128xf32>
    %197 = arith.divf %195, %196 : vector<2x128xf32>
    %198 = math.tanh %41 : vector<2x128xf32>
    %199 = vector.extract_strided_slice %197 {offsets = [0, 0], sizes = [2, 32], strides = [1, 1]} : vector<2x128xf32> to vector<2x32xf32>
    %200 = vector.extract_strided_slice %198 {offsets = [0, 64], sizes = [2, 32], strides = [1, 1]} : vector<2x128xf32> to vector<2x32xf32>
    %201 = vector.extract_strided_slice %197 {offsets = [0, 96], sizes = [2, 32], strides = [1, 1]} : vector<2x128xf32> to vector<2x32xf32>
    %202 = arith.mulf %199, %200 : vector<2x32xf32>
    %203 = math.tanh %202 : vector<2x32xf32>
    %204 = arith.mulf %201, %203 : vector<2x32xf32>
    %cst_41 = arith.constant dense<0.000000e+00> : vector<2x128xf32>
    %205 = tpu.matmul %204, %191, %cst_41 {dimension_numbers = #tpu.dot_dimension_numbers<[1], [0], [0], [1], [0, 0, 1, 1], [], []>} : vector<2x32xf32>, vector<32x128xf32>, vector<2x128xf32> -> vector<2x128xf32>
    %206 = vector.broadcast %192 : vector<1x128xf32> to vector<2x128xf32>
    %207 = arith.addf %205, %206 : vector<2x128xf32>
    %208 = arith.truncf %204 : vector<2x32xf32> to vector<2x32xbf16>
    %cst_42 = arith.constant dense<0.000000e+00> : vector<2x128xf32>
    %209 = tpu.matmul %208, %190, %cst_42 {dimension_numbers = #tpu.dot_dimension_numbers<[1], [0], [0], [1], [0, 0, 1, 1], [], []>} : vector<2x32xbf16>, vector<32x128xbf16>, vector<2x128xf32> -> vector<2x128xf32>
    %210 = arith.addf %62, %209 : vector<2x128xf32>
    %211 = arith.negf %210 : vector<2x128xf32>
    %212 = math.exp %211 : vector<2x128xf32>
    %cst_43 = arith.constant 1.000000e+00 : f32
    %213 = vector.broadcast %cst_43 : f32 to vector<2x128xf32>
    %214 = arith.addf %213, %212 : vector<2x128xf32>
    %215 = arith.divf %213, %214 : vector<2x128xf32>
    %216 = math.tanh %210 : vector<2x128xf32>
    %217 = vector.extract_strided_slice %215 {offsets = [0, 0], sizes = [2, 32], strides = [1, 1]} : vector<2x128xf32> to vector<2x32xf32>
    %218 = vector.extract_strided_slice %215 {offsets = [0, 32], sizes = [2, 32], strides = [1, 1]} : vector<2x128xf32> to vector<2x32xf32>
    %219 = vector.extract_strided_slice %216 {offsets = [0, 64], sizes = [2, 32], strides = [1, 1]} : vector<2x128xf32> to vector<2x32xf32>
    %220 = vector.extract_strided_slice %215 {offsets = [0, 96], sizes = [2, 32], strides = [1, 1]} : vector<2x128xf32> to vector<2x32xf32>
    %221 = arith.mulf %218, %202 : vector<2x32xf32>
    %222 = arith.mulf %217, %219 : vector<2x32xf32>
    %223 = arith.addf %221, %222 : vector<2x32xf32>
    %224 = math.tanh %223 : vector<2x32xf32>
    %225 = arith.mulf %220, %224 : vector<2x32xf32>
    %cst_44 = arith.constant dense<0.000000e+00> : vector<2x128xf32>
    %226 = tpu.matmul %225, %191, %cst_44 {dimension_numbers = #tpu.dot_dimension_numbers<[1], [0], [0], [1], [0, 0, 1, 1], [], []>} : vector<2x32xf32>, vector<32x128xf32>, vector<2x128xf32> -> vector<2x128xf32>
    %227 = vector.broadcast %192 : vector<1x128xf32> to vector<2x128xf32>
    %228 = arith.addf %226, %227 : vector<2x128xf32>
    %229 = arith.truncf %225 : vector<2x32xf32> to vector<2x32xbf16>
    %cst_45 = arith.constant dense<0.000000e+00> : vector<2x128xf32>
    %230 = tpu.matmul %229, %190, %cst_45 {dimension_numbers = #tpu.dot_dimension_numbers<[1], [0], [0], [1], [0, 0, 1, 1], [], []>} : vector<2x32xbf16>, vector<32x128xbf16>, vector<2x128xf32> -> vector<2x128xf32>
    %231 = arith.addf %83, %230 : vector<2x128xf32>
    %232 = arith.negf %231 : vector<2x128xf32>
    %233 = math.exp %232 : vector<2x128xf32>
    %cst_46 = arith.constant 1.000000e+00 : f32
    %234 = vector.broadcast %cst_46 : f32 to vector<2x128xf32>
    %235 = arith.addf %234, %233 : vector<2x128xf32>
    %236 = arith.divf %234, %235 : vector<2x128xf32>
    %237 = math.tanh %231 : vector<2x128xf32>
    %238 = vector.extract_strided_slice %236 {offsets = [0, 0], sizes = [2, 32], strides = [1, 1]} : vector<2x128xf32> to vector<2x32xf32>
    %239 = vector.extract_strided_slice %236 {offsets = [0, 32], sizes = [2, 32], strides = [1, 1]} : vector<2x128xf32> to vector<2x32xf32>
    %240 = vector.extract_strided_slice %237 {offsets = [0, 64], sizes = [2, 32], strides = [1, 1]} : vector<2x128xf32> to vector<2x32xf32>
    %241 = vector.extract_strided_slice %236 {offsets = [0, 96], sizes = [2, 32], strides = [1, 1]} : vector<2x128xf32> to vector<2x32xf32>
    %242 = arith.mulf %239, %223 : vector<2x32xf32>
    %243 = arith.mulf %238, %240 : vector<2x32xf32>
    %244 = arith.addf %242, %243 : vector<2x32xf32>
    %245 = math.tanh %244 : vector<2x32xf32>
    %246 = arith.mulf %241, %245 : vector<2x32xf32>
    %cst_47 = arith.constant dense<0.000000e+00> : vector<2x128xf32>
    %247 = tpu.matmul %246, %191, %cst_47 {dimension_numbers = #tpu.dot_dimension_numbers<[1], [0], [0], [1], [0, 0, 1, 1], [], []>} : vector<2x32xf32>, vector<32x128xf32>, vector<2x128xf32> -> vector<2x128xf32>
    %248 = vector.broadcast %192 : vector<1x128xf32> to vector<2x128xf32>
    %249 = arith.addf %247, %248 : vector<2x128xf32>
    %250 = arith.truncf %246 : vector<2x32xf32> to vector<2x32xbf16>
    %cst_48 = arith.constant dense<0.000000e+00> : vector<2x128xf32>
    %251 = tpu.matmul %250, %190, %cst_48 {dimension_numbers = #tpu.dot_dimension_numbers<[1], [0], [0], [1], [0, 0, 1, 1], [], []>} : vector<2x32xbf16>, vector<32x128xbf16>, vector<2x128xf32> -> vector<2x128xf32>
    %252 = arith.addf %104, %251 : vector<2x128xf32>
    %253 = arith.negf %252 : vector<2x128xf32>
    %254 = math.exp %253 : vector<2x128xf32>
    %cst_49 = arith.constant 1.000000e+00 : f32
    %255 = vector.broadcast %cst_49 : f32 to vector<2x128xf32>
    %256 = arith.addf %255, %254 : vector<2x128xf32>
    %257 = arith.divf %255, %256 : vector<2x128xf32>
    %258 = math.tanh %252 : vector<2x128xf32>
    %259 = vector.extract_strided_slice %257 {offsets = [0, 0], sizes = [2, 32], strides = [1, 1]} : vector<2x128xf32> to vector<2x32xf32>
    %260 = vector.extract_strided_slice %257 {offsets = [0, 32], sizes = [2, 32], strides = [1, 1]} : vector<2x128xf32> to vector<2x32xf32>
    %261 = vector.extract_strided_slice %258 {offsets = [0, 64], sizes = [2, 32], strides = [1, 1]} : vector<2x128xf32> to vector<2x32xf32>
    %262 = vector.extract_strided_slice %257 {offsets = [0, 96], sizes = [2, 32], strides = [1, 1]} : vector<2x128xf32> to vector<2x32xf32>
    %263 = arith.mulf %260, %244 : vector<2x32xf32>
    %264 = arith.mulf %259, %261 : vector<2x32xf32>
    %265 = arith.addf %263, %264 : vector<2x32xf32>
    %266 = math.tanh %265 : vector<2x32xf32>
    %267 = arith.mulf %262, %266 : vector<2x32xf32>
    %cst_50 = arith.constant dense<0.000000e+00> : vector<2x128xf32>
    %268 = tpu.matmul %267, %191, %cst_50 {dimension_numbers = #tpu.dot_dimension_numbers<[1], [0], [0], [1], [0, 0, 1, 1], [], []>} : vector<2x32xf32>, vector<32x128xf32>, vector<2x128xf32> -> vector<2x128xf32>
    %269 = vector.broadcast %192 : vector<1x128xf32> to vector<2x128xf32>
    %270 = arith.addf %268, %269 : vector<2x128xf32>
    %271 = arith.truncf %267 : vector<2x32xf32> to vector<2x32xbf16>
    %cst_51 = arith.constant dense<0.000000e+00> : vector<2x128xf32>
    %272 = tpu.matmul %271, %190, %cst_51 {dimension_numbers = #tpu.dot_dimension_numbers<[1], [0], [0], [1], [0, 0, 1, 1], [], []>} : vector<2x32xbf16>, vector<32x128xbf16>, vector<2x128xf32> -> vector<2x128xf32>
    %273 = arith.addf %125, %272 : vector<2x128xf32>
    %274 = arith.negf %273 : vector<2x128xf32>
    %275 = math.exp %274 : vector<2x128xf32>
    %cst_52 = arith.constant 1.000000e+00 : f32
    %276 = vector.broadcast %cst_52 : f32 to vector<2x128xf32>
    %277 = arith.addf %276, %275 : vector<2x128xf32>
    %278 = arith.divf %276, %277 : vector<2x128xf32>
    %279 = math.tanh %273 : vector<2x128xf32>
    %280 = vector.extract_strided_slice %278 {offsets = [0, 0], sizes = [2, 32], strides = [1, 1]} : vector<2x128xf32> to vector<2x32xf32>
    %281 = vector.extract_strided_slice %278 {offsets = [0, 32], sizes = [2, 32], strides = [1, 1]} : vector<2x128xf32> to vector<2x32xf32>
    %282 = vector.extract_strided_slice %279 {offsets = [0, 64], sizes = [2, 32], strides = [1, 1]} : vector<2x128xf32> to vector<2x32xf32>
    %283 = vector.extract_strided_slice %278 {offsets = [0, 96], sizes = [2, 32], strides = [1, 1]} : vector<2x128xf32> to vector<2x32xf32>
    %284 = arith.mulf %281, %265 : vector<2x32xf32>
    %285 = arith.mulf %280, %282 : vector<2x32xf32>
    %286 = arith.addf %284, %285 : vector<2x32xf32>
    %287 = math.tanh %286 : vector<2x32xf32>
    %288 = arith.mulf %283, %287 : vector<2x32xf32>
    %cst_53 = arith.constant dense<0.000000e+00> : vector<2x128xf32>
    %289 = tpu.matmul %288, %191, %cst_53 {dimension_numbers = #tpu.dot_dimension_numbers<[1], [0], [0], [1], [0, 0, 1, 1], [], []>} : vector<2x32xf32>, vector<32x128xf32>, vector<2x128xf32> -> vector<2x128xf32>
    %290 = vector.broadcast %192 : vector<1x128xf32> to vector<2x128xf32>
    %291 = arith.addf %289, %290 : vector<2x128xf32>
    %292 = arith.truncf %288 : vector<2x32xf32> to vector<2x32xbf16>
    %cst_54 = arith.constant dense<0.000000e+00> : vector<2x128xf32>
    %293 = tpu.matmul %292, %190, %cst_54 {dimension_numbers = #tpu.dot_dimension_numbers<[1], [0], [0], [1], [0, 0, 1, 1], [], []>} : vector<2x32xbf16>, vector<32x128xbf16>, vector<2x128xf32> -> vector<2x128xf32>
    %294 = arith.addf %146, %293 : vector<2x128xf32>
    %295 = arith.negf %294 : vector<2x128xf32>
    %296 = math.exp %295 : vector<2x128xf32>
    %cst_55 = arith.constant 1.000000e+00 : f32
    %297 = vector.broadcast %cst_55 : f32 to vector<2x128xf32>
    %298 = arith.addf %297, %296 : vector<2x128xf32>
    %299 = arith.divf %297, %298 : vector<2x128xf32>
    %300 = math.tanh %294 : vector<2x128xf32>
    %301 = vector.extract_strided_slice %299 {offsets = [0, 0], sizes = [2, 32], strides = [1, 1]} : vector<2x128xf32> to vector<2x32xf32>
    %302 = vector.extract_strided_slice %299 {offsets = [0, 32], sizes = [2, 32], strides = [1, 1]} : vector<2x128xf32> to vector<2x32xf32>
    %303 = vector.extract_strided_slice %300 {offsets = [0, 64], sizes = [2, 32], strides = [1, 1]} : vector<2x128xf32> to vector<2x32xf32>
    %304 = vector.extract_strided_slice %299 {offsets = [0, 96], sizes = [2, 32], strides = [1, 1]} : vector<2x128xf32> to vector<2x32xf32>
    %305 = arith.mulf %302, %286 : vector<2x32xf32>
    %306 = arith.mulf %301, %303 : vector<2x32xf32>
    %307 = arith.addf %305, %306 : vector<2x32xf32>
    %308 = math.tanh %307 : vector<2x32xf32>
    %309 = arith.mulf %304, %308 : vector<2x32xf32>
    %cst_56 = arith.constant dense<0.000000e+00> : vector<2x128xf32>
    %310 = tpu.matmul %309, %191, %cst_56 {dimension_numbers = #tpu.dot_dimension_numbers<[1], [0], [0], [1], [0, 0, 1, 1], [], []>} : vector<2x32xf32>, vector<32x128xf32>, vector<2x128xf32> -> vector<2x128xf32>
    %311 = vector.broadcast %192 : vector<1x128xf32> to vector<2x128xf32>
    %312 = arith.addf %310, %311 : vector<2x128xf32>
    %313 = arith.truncf %309 : vector<2x32xf32> to vector<2x32xbf16>
    %cst_57 = arith.constant dense<0.000000e+00> : vector<2x128xf32>
    %314 = tpu.matmul %313, %190, %cst_57 {dimension_numbers = #tpu.dot_dimension_numbers<[1], [0], [0], [1], [0, 0, 1, 1], [], []>} : vector<2x32xbf16>, vector<32x128xbf16>, vector<2x128xf32> -> vector<2x128xf32>
    %315 = arith.addf %167, %314 : vector<2x128xf32>
    %316 = arith.negf %315 : vector<2x128xf32>
    %317 = math.exp %316 : vector<2x128xf32>
    %cst_58 = arith.constant 1.000000e+00 : f32
    %318 = vector.broadcast %cst_58 : f32 to vector<2x128xf32>
    %319 = arith.addf %318, %317 : vector<2x128xf32>
    %320 = arith.divf %318, %319 : vector<2x128xf32>
    %321 = math.tanh %315 : vector<2x128xf32>
    %322 = vector.extract_strided_slice %320 {offsets = [0, 0], sizes = [2, 32], strides = [1, 1]} : vector<2x128xf32> to vector<2x32xf32>
    %323 = vector.extract_strided_slice %320 {offsets = [0, 32], sizes = [2, 32], strides = [1, 1]} : vector<2x128xf32> to vector<2x32xf32>
    %324 = vector.extract_strided_slice %321 {offsets = [0, 64], sizes = [2, 32], strides = [1, 1]} : vector<2x128xf32> to vector<2x32xf32>
    %325 = vector.extract_strided_slice %320 {offsets = [0, 96], sizes = [2, 32], strides = [1, 1]} : vector<2x128xf32> to vector<2x32xf32>
    %326 = arith.mulf %323, %307 : vector<2x32xf32>
    %327 = arith.mulf %322, %324 : vector<2x32xf32>
    %328 = arith.addf %326, %327 : vector<2x32xf32>
    %329 = math.tanh %328 : vector<2x32xf32>
    %330 = arith.mulf %325, %329 : vector<2x32xf32>
    %cst_59 = arith.constant dense<0.000000e+00> : vector<2x128xf32>
    %331 = tpu.matmul %330, %191, %cst_59 {dimension_numbers = #tpu.dot_dimension_numbers<[1], [0], [0], [1], [0, 0, 1, 1], [], []>} : vector<2x32xf32>, vector<32x128xf32>, vector<2x128xf32> -> vector<2x128xf32>
    %332 = vector.broadcast %192 : vector<1x128xf32> to vector<2x128xf32>
    %333 = arith.addf %331, %332 : vector<2x128xf32>
    %334 = arith.truncf %330 : vector<2x32xf32> to vector<2x32xbf16>
    %cst_60 = arith.constant dense<0.000000e+00> : vector<2x128xf32>
    %335 = tpu.matmul %334, %190, %cst_60 {dimension_numbers = #tpu.dot_dimension_numbers<[1], [0], [0], [1], [0, 0, 1, 1], [], []>} : vector<2x32xbf16>, vector<32x128xbf16>, vector<2x128xf32> -> vector<2x128xf32>
    %336 = arith.addf %188, %335 : vector<2x128xf32>
    %337 = arith.negf %336 : vector<2x128xf32>
    %338 = math.exp %337 : vector<2x128xf32>
    %cst_61 = arith.constant 1.000000e+00 : f32
    %339 = vector.broadcast %cst_61 : f32 to vector<2x128xf32>
    %340 = arith.addf %339, %338 : vector<2x128xf32>
    %341 = arith.divf %339, %340 : vector<2x128xf32>
    %342 = math.tanh %336 : vector<2x128xf32>
    %343 = vector.extract_strided_slice %341 {offsets = [0, 0], sizes = [2, 32], strides = [1, 1]} : vector<2x128xf32> to vector<2x32xf32>
    %344 = vector.extract_strided_slice %341 {offsets = [0, 32], sizes = [2, 32], strides = [1, 1]} : vector<2x128xf32> to vector<2x32xf32>
    %345 = vector.extract_strided_slice %342 {offsets = [0, 64], sizes = [2, 32], strides = [1, 1]} : vector<2x128xf32> to vector<2x32xf32>
    %346 = vector.extract_strided_slice %341 {offsets = [0, 96], sizes = [2, 32], strides = [1, 1]} : vector<2x128xf32> to vector<2x32xf32>
    %347 = arith.mulf %344, %328 : vector<2x32xf32>
    %348 = arith.mulf %343, %345 : vector<2x32xf32>
    %349 = arith.addf %347, %348 : vector<2x32xf32>
    %350 = math.tanh %349 : vector<2x32xf32>
    %351 = arith.mulf %346, %350 : vector<2x32xf32>
    %cst_62 = arith.constant dense<0.000000e+00> : vector<2x128xf32>
    %352 = tpu.matmul %351, %191, %cst_62 {dimension_numbers = #tpu.dot_dimension_numbers<[1], [0], [0], [1], [0, 0, 1, 1], [], []>} : vector<2x32xf32>, vector<32x128xf32>, vector<2x128xf32> -> vector<2x128xf32>
    %353 = vector.broadcast %192 : vector<1x128xf32> to vector<2x128xf32>
    %354 = arith.addf %352, %353 : vector<2x128xf32>
    %c0_63 = arith.constant 0 : index
    %c0_64 = arith.constant 0 : index
    %355 = vector.load %arg8[%c0_63, %c0_64] : memref<32x128xf32, #tpu.memory_space<vmem>>, vector<32x128xf32>
    %356 = arith.truncf %355 : vector<32x128xf32> to vector<32x128xbf16>
    %357 = arith.negf %207 : vector<2x128xf32>
    %358 = math.exp %357 : vector<2x128xf32>
    %cst_65 = arith.constant 1.000000e+00 : f32
    %359 = vector.broadcast %cst_65 : f32 to vector<2x128xf32>
    %360 = arith.addf %359, %358 : vector<2x128xf32>
    %361 = arith.divf %359, %360 : vector<2x128xf32>
    %362 = math.tanh %207 : vector<2x128xf32>
    %363 = vector.extract_strided_slice %361 {offsets = [0, 0], sizes = [2, 32], strides = [1, 1]} : vector<2x128xf32> to vector<2x32xf32>
    %364 = vector.extract_strided_slice %362 {offsets = [0, 64], sizes = [2, 32], strides = [1, 1]} : vector<2x128xf32> to vector<2x32xf32>
    %365 = vector.extract_strided_slice %361 {offsets = [0, 96], sizes = [2, 32], strides = [1, 1]} : vector<2x128xf32> to vector<2x32xf32>
    %366 = arith.mulf %363, %364 : vector<2x32xf32>
    %367 = math.tanh %366 : vector<2x32xf32>
    %368 = arith.mulf %365, %367 : vector<2x32xf32>
    %369 = arith.truncf %368 : vector<2x32xf32> to vector<2x32xbf16>
    %cst_66 = arith.constant dense<0.000000e+00> : vector<2x128xf32>
    %370 = tpu.matmul %369, %356, %cst_66 {dimension_numbers = #tpu.dot_dimension_numbers<[1], [0], [0], [1], [0, 0, 1, 1], [], []>} : vector<2x32xbf16>, vector<32x128xbf16>, vector<2x128xf32> -> vector<2x128xf32>
    %371 = arith.addf %228, %370 : vector<2x128xf32>
    %372 = arith.negf %371 : vector<2x128xf32>
    %373 = math.exp %372 : vector<2x128xf32>
    %cst_67 = arith.constant 1.000000e+00 : f32
    %374 = vector.broadcast %cst_67 : f32 to vector<2x128xf32>
    %375 = arith.addf %374, %373 : vector<2x128xf32>
    %376 = arith.divf %374, %375 : vector<2x128xf32>
    %377 = math.tanh %371 : vector<2x128xf32>
    %378 = vector.extract_strided_slice %376 {offsets = [0, 0], sizes = [2, 32], strides = [1, 1]} : vector<2x128xf32> to vector<2x32xf32>
    %379 = vector.extract_strided_slice %376 {offsets = [0, 32], sizes = [2, 32], strides = [1, 1]} : vector<2x128xf32> to vector<2x32xf32>
    %380 = vector.extract_strided_slice %377 {offsets = [0, 64], sizes = [2, 32], strides = [1, 1]} : vector<2x128xf32> to vector<2x32xf32>
    %381 = vector.extract_strided_slice %376 {offsets = [0, 96], sizes = [2, 32], strides = [1, 1]} : vector<2x128xf32> to vector<2x32xf32>
    %382 = arith.mulf %379, %366 : vector<2x32xf32>
    %383 = arith.mulf %378, %380 : vector<2x32xf32>
    %384 = arith.addf %382, %383 : vector<2x32xf32>
    %385 = math.tanh %384 : vector<2x32xf32>
    %386 = arith.mulf %381, %385 : vector<2x32xf32>
    %387 = arith.truncf %386 : vector<2x32xf32> to vector<2x32xbf16>
    %cst_68 = arith.constant dense<0.000000e+00> : vector<2x128xf32>
    %388 = tpu.matmul %387, %356, %cst_68 {dimension_numbers = #tpu.dot_dimension_numbers<[1], [0], [0], [1], [0, 0, 1, 1], [], []>} : vector<2x32xbf16>, vector<32x128xbf16>, vector<2x128xf32> -> vector<2x128xf32>
    %389 = arith.addf %249, %388 : vector<2x128xf32>
    %390 = arith.negf %389 : vector<2x128xf32>
    %391 = math.exp %390 : vector<2x128xf32>
    %cst_69 = arith.constant 1.000000e+00 : f32
    %392 = vector.broadcast %cst_69 : f32 to vector<2x128xf32>
    %393 = arith.addf %392, %391 : vector<2x128xf32>
    %394 = arith.divf %392, %393 : vector<2x128xf32>
    %395 = math.tanh %389 : vector<2x128xf32>
    %396 = vector.extract_strided_slice %394 {offsets = [0, 0], sizes = [2, 32], strides = [1, 1]} : vector<2x128xf32> to vector<2x32xf32>
    %397 = vector.extract_strided_slice %394 {offsets = [0, 32], sizes = [2, 32], strides = [1, 1]} : vector<2x128xf32> to vector<2x32xf32>
    %398 = vector.extract_strided_slice %395 {offsets = [0, 64], sizes = [2, 32], strides = [1, 1]} : vector<2x128xf32> to vector<2x32xf32>
    %399 = vector.extract_strided_slice %394 {offsets = [0, 96], sizes = [2, 32], strides = [1, 1]} : vector<2x128xf32> to vector<2x32xf32>
    %400 = arith.mulf %397, %384 : vector<2x32xf32>
    %401 = arith.mulf %396, %398 : vector<2x32xf32>
    %402 = arith.addf %400, %401 : vector<2x32xf32>
    %403 = math.tanh %402 : vector<2x32xf32>
    %404 = arith.mulf %399, %403 : vector<2x32xf32>
    %405 = arith.truncf %404 : vector<2x32xf32> to vector<2x32xbf16>
    %cst_70 = arith.constant dense<0.000000e+00> : vector<2x128xf32>
    %406 = tpu.matmul %405, %356, %cst_70 {dimension_numbers = #tpu.dot_dimension_numbers<[1], [0], [0], [1], [0, 0, 1, 1], [], []>} : vector<2x32xbf16>, vector<32x128xbf16>, vector<2x128xf32> -> vector<2x128xf32>
    %407 = arith.addf %270, %406 : vector<2x128xf32>
    %408 = arith.negf %407 : vector<2x128xf32>
    %409 = math.exp %408 : vector<2x128xf32>
    %cst_71 = arith.constant 1.000000e+00 : f32
    %410 = vector.broadcast %cst_71 : f32 to vector<2x128xf32>
    %411 = arith.addf %410, %409 : vector<2x128xf32>
    %412 = arith.divf %410, %411 : vector<2x128xf32>
    %413 = math.tanh %407 : vector<2x128xf32>
    %414 = vector.extract_strided_slice %412 {offsets = [0, 0], sizes = [2, 32], strides = [1, 1]} : vector<2x128xf32> to vector<2x32xf32>
    %415 = vector.extract_strided_slice %412 {offsets = [0, 32], sizes = [2, 32], strides = [1, 1]} : vector<2x128xf32> to vector<2x32xf32>
    %416 = vector.extract_strided_slice %413 {offsets = [0, 64], sizes = [2, 32], strides = [1, 1]} : vector<2x128xf32> to vector<2x32xf32>
    %417 = vector.extract_strided_slice %412 {offsets = [0, 96], sizes = [2, 32], strides = [1, 1]} : vector<2x128xf32> to vector<2x32xf32>
    %418 = arith.mulf %415, %402 : vector<2x32xf32>
    %419 = arith.mulf %414, %416 : vector<2x32xf32>
    %420 = arith.addf %418, %419 : vector<2x32xf32>
    %421 = math.tanh %420 : vector<2x32xf32>
    %422 = arith.mulf %417, %421 : vector<2x32xf32>
    %423 = arith.truncf %422 : vector<2x32xf32> to vector<2x32xbf16>
    %cst_72 = arith.constant dense<0.000000e+00> : vector<2x128xf32>
    %424 = tpu.matmul %423, %356, %cst_72 {dimension_numbers = #tpu.dot_dimension_numbers<[1], [0], [0], [1], [0, 0, 1, 1], [], []>} : vector<2x32xbf16>, vector<32x128xbf16>, vector<2x128xf32> -> vector<2x128xf32>
    %425 = arith.addf %291, %424 : vector<2x128xf32>
    %426 = arith.negf %425 : vector<2x128xf32>
    %427 = math.exp %426 : vector<2x128xf32>
    %cst_73 = arith.constant 1.000000e+00 : f32
    %428 = vector.broadcast %cst_73 : f32 to vector<2x128xf32>
    %429 = arith.addf %428, %427 : vector<2x128xf32>
    %430 = arith.divf %428, %429 : vector<2x128xf32>
    %431 = math.tanh %425 : vector<2x128xf32>
    %432 = vector.extract_strided_slice %430 {offsets = [0, 0], sizes = [2, 32], strides = [1, 1]} : vector<2x128xf32> to vector<2x32xf32>
    %433 = vector.extract_strided_slice %430 {offsets = [0, 32], sizes = [2, 32], strides = [1, 1]} : vector<2x128xf32> to vector<2x32xf32>
    %434 = vector.extract_strided_slice %431 {offsets = [0, 64], sizes = [2, 32], strides = [1, 1]} : vector<2x128xf32> to vector<2x32xf32>
    %435 = vector.extract_strided_slice %430 {offsets = [0, 96], sizes = [2, 32], strides = [1, 1]} : vector<2x128xf32> to vector<2x32xf32>
    %436 = arith.mulf %433, %420 : vector<2x32xf32>
    %437 = arith.mulf %432, %434 : vector<2x32xf32>
    %438 = arith.addf %436, %437 : vector<2x32xf32>
    %439 = math.tanh %438 : vector<2x32xf32>
    %440 = arith.mulf %435, %439 : vector<2x32xf32>
    %441 = arith.truncf %440 : vector<2x32xf32> to vector<2x32xbf16>
    %cst_74 = arith.constant dense<0.000000e+00> : vector<2x128xf32>
    %442 = tpu.matmul %441, %356, %cst_74 {dimension_numbers = #tpu.dot_dimension_numbers<[1], [0], [0], [1], [0, 0, 1, 1], [], []>} : vector<2x32xbf16>, vector<32x128xbf16>, vector<2x128xf32> -> vector<2x128xf32>
    %443 = arith.addf %312, %442 : vector<2x128xf32>
    %444 = arith.negf %443 : vector<2x128xf32>
    %445 = math.exp %444 : vector<2x128xf32>
    %cst_75 = arith.constant 1.000000e+00 : f32
    %446 = vector.broadcast %cst_75 : f32 to vector<2x128xf32>
    %447 = arith.addf %446, %445 : vector<2x128xf32>
    %448 = arith.divf %446, %447 : vector<2x128xf32>
    %449 = math.tanh %443 : vector<2x128xf32>
    %450 = vector.extract_strided_slice %448 {offsets = [0, 0], sizes = [2, 32], strides = [1, 1]} : vector<2x128xf32> to vector<2x32xf32>
    %451 = vector.extract_strided_slice %448 {offsets = [0, 32], sizes = [2, 32], strides = [1, 1]} : vector<2x128xf32> to vector<2x32xf32>
    %452 = vector.extract_strided_slice %449 {offsets = [0, 64], sizes = [2, 32], strides = [1, 1]} : vector<2x128xf32> to vector<2x32xf32>
    %453 = vector.extract_strided_slice %448 {offsets = [0, 96], sizes = [2, 32], strides = [1, 1]} : vector<2x128xf32> to vector<2x32xf32>
    %454 = arith.mulf %451, %438 : vector<2x32xf32>
    %455 = arith.mulf %450, %452 : vector<2x32xf32>
    %456 = arith.addf %454, %455 : vector<2x32xf32>
    %457 = math.tanh %456 : vector<2x32xf32>
    %458 = arith.mulf %453, %457 : vector<2x32xf32>
    %459 = arith.truncf %458 : vector<2x32xf32> to vector<2x32xbf16>
    %cst_76 = arith.constant dense<0.000000e+00> : vector<2x128xf32>
    %460 = tpu.matmul %459, %356, %cst_76 {dimension_numbers = #tpu.dot_dimension_numbers<[1], [0], [0], [1], [0, 0, 1, 1], [], []>} : vector<2x32xbf16>, vector<32x128xbf16>, vector<2x128xf32> -> vector<2x128xf32>
    %461 = arith.addf %333, %460 : vector<2x128xf32>
    %462 = arith.negf %461 : vector<2x128xf32>
    %463 = math.exp %462 : vector<2x128xf32>
    %cst_77 = arith.constant 1.000000e+00 : f32
    %464 = vector.broadcast %cst_77 : f32 to vector<2x128xf32>
    %465 = arith.addf %464, %463 : vector<2x128xf32>
    %466 = arith.divf %464, %465 : vector<2x128xf32>
    %467 = math.tanh %461 : vector<2x128xf32>
    %468 = vector.extract_strided_slice %466 {offsets = [0, 0], sizes = [2, 32], strides = [1, 1]} : vector<2x128xf32> to vector<2x32xf32>
    %469 = vector.extract_strided_slice %466 {offsets = [0, 32], sizes = [2, 32], strides = [1, 1]} : vector<2x128xf32> to vector<2x32xf32>
    %470 = vector.extract_strided_slice %467 {offsets = [0, 64], sizes = [2, 32], strides = [1, 1]} : vector<2x128xf32> to vector<2x32xf32>
    %471 = vector.extract_strided_slice %466 {offsets = [0, 96], sizes = [2, 32], strides = [1, 1]} : vector<2x128xf32> to vector<2x32xf32>
    %472 = arith.mulf %469, %456 : vector<2x32xf32>
    %473 = arith.mulf %468, %470 : vector<2x32xf32>
    %474 = arith.addf %472, %473 : vector<2x32xf32>
    %475 = math.tanh %474 : vector<2x32xf32>
    %476 = arith.mulf %471, %475 : vector<2x32xf32>
    %477 = arith.truncf %476 : vector<2x32xf32> to vector<2x32xbf16>
    %cst_78 = arith.constant dense<0.000000e+00> : vector<2x128xf32>
    %478 = tpu.matmul %477, %356, %cst_78 {dimension_numbers = #tpu.dot_dimension_numbers<[1], [0], [0], [1], [0, 0, 1, 1], [], []>} : vector<2x32xbf16>, vector<32x128xbf16>, vector<2x128xf32> -> vector<2x128xf32>
    %479 = arith.addf %354, %478 : vector<2x128xf32>
    %480 = arith.negf %479 : vector<2x128xf32>
    %481 = math.exp %480 : vector<2x128xf32>
    %cst_79 = arith.constant 1.000000e+00 : f32
    %482 = vector.broadcast %cst_79 : f32 to vector<2x128xf32>
    %483 = arith.addf %482, %481 : vector<2x128xf32>
    %484 = arith.divf %482, %483 : vector<2x128xf32>
    %485 = math.tanh %479 : vector<2x128xf32>
    %486 = vector.extract_strided_slice %484 {offsets = [0, 0], sizes = [2, 32], strides = [1, 1]} : vector<2x128xf32> to vector<2x32xf32>
    %487 = vector.extract_strided_slice %484 {offsets = [0, 32], sizes = [2, 32], strides = [1, 1]} : vector<2x128xf32> to vector<2x32xf32>
    %488 = vector.extract_strided_slice %485 {offsets = [0, 64], sizes = [2, 32], strides = [1, 1]} : vector<2x128xf32> to vector<2x32xf32>
    %489 = vector.extract_strided_slice %484 {offsets = [0, 96], sizes = [2, 32], strides = [1, 1]} : vector<2x128xf32> to vector<2x32xf32>
    %490 = arith.mulf %487, %474 : vector<2x32xf32>
    %491 = arith.mulf %486, %488 : vector<2x32xf32>
    %492 = arith.addf %490, %491 : vector<2x32xf32>
    %493 = math.tanh %492 : vector<2x32xf32>
    %494 = arith.mulf %489, %493 : vector<2x32xf32>
    %c0_80 = arith.constant 0 : index
    %c0_81 = arith.constant 0 : index
    %495 = vector.load %arg10[%c0_80, %c0_81] : memref<32x64xf32, #tpu.memory_space<vmem>>, vector<32x64xf32>
    %cst_82 = arith.constant dense<0.000000e+00> : vector<2x64xf32>
    %496 = tpu.matmul %494, %495, %cst_82 {dimension_numbers = #tpu.dot_dimension_numbers<[1], [0], [0], [1], [0, 0, 1, 1], [], []>} : vector<2x32xf32>, vector<32x64xf32>, vector<2x64xf32> -> vector<2x64xf32>
    %c0_83 = arith.constant 0 : index
    %c0_84 = arith.constant 0 : index
    %497 = vector.load %arg11[%c0_83, %c0_84] : memref<1x64xf32, #tpu.memory_space<vmem>>, vector<1x64xf32>
    %498 = vector.broadcast %497 : vector<1x64xf32> to vector<2x64xf32>
    %499 = arith.addf %496, %498 : vector<2x64xf32>
    %c0_85 = arith.constant 0 : index
    %c0_86 = arith.constant 0 : index
    %500 = vector.load %arg12[%c0_85, %c0_86] : memref<2x64xf32, #tpu.memory_space<vmem>>, vector<2x64xf32>
    tpu.vector_store %arg12[%c0_85, %c0_86], %499 {strides = array<i32>} : memref<2x64xf32, #tpu.memory_space<vmem>>, vector<2x64xf32>,
    return
  }
}

</mosaic_0001>

<bundles_post_ra>
// kernel: stock_lstm_forward.1
= control target key start
LH: loop header
LB: loop body
LE: loop exit
PB: predicated region body
PF: predicated region fallthrough
CT: control target
= control target key end

     0   :  { %17 = vsyncpa [#allocation3], 0  ;;  %s3731_s0 = inlined_call_operand.hbm [shape: f32[16,16], index: 0, kind: input, shape index: {}]   ;;  %s3732_s1 = inlined_call_operand.hbm [shape: f32[16,128], index: 1, kind: input, shape index: {}]   ;;  %s3733_s2 = inlined_call_operand.hbm [shape: f32[32,128], index: 2, kind: input, shape index: {}]   ;;  %s3734_s3 = inlined_call_operand.vmem [shape: f32[1,128], index: 3, kind: input, shape index: {}]   ;;  %s3735_s4 = inlined_call_operand.hbm [shape: f32[32,128], index: 4, kind: input, shape index: {}]   ;;  %s3736_s5 = inlined_call_operand.hbm [shape: f32[32,128], index: 5, kind: input, shape index: {}]   ;;  %s3737_s6 = inlined_call_operand.vmem [shape: f32[1,128], index: 6, kind: input, shape index: {}]   ;;  %s3738_s7 = inlined_call_operand.hbm [shape: f32[32,128], index: 7, kind: input, shape index: {}]   ;;  %s3739_s8 = inlined_call_operand.hbm [shape: f32[32,128], index: 8, kind: input, shape index: {}]   ;;  %s3740_s9 = inlined_call_operand.vmem [shape: f32[1,128], index: 9, kind: input, shape index: {}]   ;;  %s3741_s10 = inlined_call_operand.hbm [shape: f32[32,64], index: 10, kind: input, shape index: {}]   ;;  %s3742_s11 = inlined_call_operand.hbm [shape: f32[1,64], index: 11, kind: input, shape index: {}]   ;;  %s3743_s12 = inlined_call_operand.vmem [shape: f32[2,64], index: 12, kind: output, shape index: {}]  }
   0x1   :  { %18 = vsyncpa [#allocation5], 0 }
   0x2   :  { %19 = vsyncpa [#allocation8], 0 }
   0x3   :  { %20 = vsyncpa [#allocation11], 0 }
   0x4   :  { %21 = vsyncpa [#allocation14], 0  ;;  %s39_s23 = sshll.u32 %s3732_s1, 4  ;;  %s3051_s24 = smov [#allocation4]   ;;  %s40_s23 = int_to_ptr.hbm [resolvable:$true] %s39_s23 }
   0x5   :  { %s41_s25 = sshll.u32 %s3051_s24, 4  ;;  %s67_s28 = sshll.u32 %s3735_s4, 4  ;;  %s42_s25 = int_to_ptr.vmem [resolvable:$true] %s41_s25  ;;  %s68_s28 = int_to_ptr.hbm [resolvable:$true] %s67_s28 }
   0x6   :  { %s3052_s29 = smov 128   ;;  %s3053_s30 = smov 8  }
   0x7   :  { %47 = dma.hbm_to_vmem [thread:$0]  %s40_s23, 256, %s42_s25, [#allocation5], %s3052_s29, %s3052_s29, %s3053_s30  }
   0x8   :  { %s3054_s13 = smov [#allocation7]   ;;  %s95_s1 = sshll.u32 %s3738_s7, 4  ;;  %s96_s1 = int_to_ptr.hbm [resolvable:$true] %s95_s1 }
   0x9   :  { %s69_s14 = sshll.u32 %s3054_s13, 4  ;;  %s123_s18 = sshll.u32 %s3741_s10, 4  ;;  %s70_s14 = int_to_ptr.vmem [resolvable:$true] %s69_s14  ;;  %s124_s18 = int_to_ptr.hbm [resolvable:$true] %s123_s18 }
   0xa   :  { %75 = dma.hbm_to_vmem [thread:$0]  %s68_s28, 512, %s70_s14, [#allocation8], %s3052_s29, %s3052_s29, %s3053_s30  }
   0xb   :  { %s3055_s19 = smov [#allocation10]   ;;  %s3056_s21 = smov [#allocation13]  }
   0xc   :  { %s97_s20 = sshll.u32 %s3055_s19, 4  ;;  %s125_s7 = sshll.u32 %s3056_s21, 4  ;;  %s98_s20 = int_to_ptr.vmem [resolvable:$true] %s97_s20  ;;  %s126_s7 = int_to_ptr.vmem [resolvable:$true] %s125_s7 }
   0xd   :  { %103 = dma.hbm_to_vmem [thread:$0]  %s96_s1, 512, %s98_s20, [#allocation11], %s3052_s29, %s3052_s29, %s3053_s30  }
   0xe   :  { %s26_s24 = sshll.u32 %s3731_s0, 4  ;;  %s52_s26 = sshll.u32 %s3733_s2, 4  ;;  %s27_s24 = int_to_ptr.hbm [resolvable:$true] %s26_s24  ;;  %s53_s26 = int_to_ptr.hbm [resolvable:$true] %s52_s26 }
   0xf   :  { %131 = dma.hbm_to_vmem [thread:$0]  %s124_s18, 512, %s126_s7, [#allocation14], %s3052_s29, %s3052_s29, %s3053_s30  }
  0x10   :  { %s3057_s27 = smov [#allocation2]   ;;  %s3058_s13 = smov [#allocation6]  }
  0x11   :  { %s28_s28 = sshll.u32 %s3057_s27, 4  ;;  %s54_s0 = sshll.u32 %s3058_s13, 4  ;;  %s29_s28 = int_to_ptr.vmem [resolvable:$true] %s28_s28  ;;  %s55_s0 = int_to_ptr.vmem [resolvable:$true] %s54_s0 }
  0x12   :  { %34 = dma.hbm_to_vmem [thread:$0]  %s27_s24, 256, %s29_s28, [#allocation3], %s3052_s29, %s3052_s29, %s3053_s30  }
  0x13   :  { %s80_s16 = sshll.u32 %s3736_s5, 4  ;;  %s108_s4 = sshll.u32 %s3739_s8, 4  ;;  %s81_s16 = int_to_ptr.hbm [resolvable:$true] %s80_s16  ;;  %s109_s4 = int_to_ptr.hbm [resolvable:$true] %s108_s4 }
  0x14   :  { %60 = dma.hbm_to_vmem [thread:$0]  %s53_s26, 512, %s55_s0, [#allocation5], %s3052_s29, %s3052_s29, %s3053_s30  }
  0x15   :  { %s3059_s17 = smov [#allocation9]   ;;  %s3060_s19 = smov [#allocation12]  }
  0x16   :  { %s82_s18 = sshll.u32 %s3059_s17, 4  ;;  %s110_s5 = sshll.u32 %s3060_s19, 4  ;;  %s83_s18 = int_to_ptr.vmem [resolvable:$true] %s82_s18  ;;  %s111_s5 = int_to_ptr.vmem [resolvable:$true] %s110_s5 }
  0x17   :  { %88 = dma.hbm_to_vmem [thread:$0]  %s81_s16, 512, %s83_s18, [#allocation8], %s3052_s29, %s3052_s29, %s3053_s30  }
  0x18   :  { %s137_s7 = sshll.u32 %s3742_s11, 4  ;;  %s3061_s8 = smov [#allocation15]   ;;  %s138_s7 = int_to_ptr.hbm [resolvable:$true] %s137_s7 }
  0x19   :  { %116 = dma.hbm_to_vmem [thread:$0]  %s109_s4, 512, %s111_s5, [#allocation11], %s3052_s29, %s3052_s29, %s3053_s30  }
  0x1a   :  { %s139_s22 = sshll.u32 %s3061_s8, 4  ;;  %s140_s22 = int_to_ptr.vmem [resolvable:$true] %s139_s22 }
  0x1b   :  { %142 = dma.hbm_to_vmem [thread:$0]  %s138_s7, 16, %s140_s22, [#allocation14]  }
  0x1c   :  { %3041 = dma.done.wait [#allocation3], 256  }
  0x1d   :  { %3042 = vsyncadd [#allocation3], 4294967040 }
  0x1e   :  { %3043 = dma.done.wait [#allocation5], 768  }
  0x1f   :  { %3044 = vsyncadd [#allocation5], 4294966528 }
  0x20   :  { %3045 = dma.done.wait [#allocation8], 1024  }
  0x21   :  { %3046 = vsyncadd [#allocation8], 4294966272 }
  0x22   :  { %3047 = dma.done.wait [#allocation11], 1024  }
  0x23   :  { %3048 = vsyncadd [#allocation11], 4294966272 }
  0x24   :  { %3049 = dma.done.wait [#allocation14], 528  }
  0x25   :  { %3050 = vsyncadd [#allocation14], 4294966768  ;;  %v181_v0 = vld [vmem:[#allocation4 + $0x8] sm:$0xff]  ;;  %v180_v1 = vld [vmem:[#allocation4] sm:$0xff]  ;;  %vm188_vm0 = vcmask 130048   ;;  %s3062_s30 = smov 64  }
  0x26   :  { %209 = vmatpush.msra.mxu0 %v181_v0  ;;  %v183_v2 = vld [vmem:[#allocation2] sm:$0xff]  ;;  %v184_v3 = vld [vmem:[#allocation2 + $0x8] sm:$0xff]  ;;  %s3064_s23 = smov 32   ;;  %v220_v44 = vld [vmem:[#allocation6 + $0x10] sm:$0xff]  ;;  %vm297_vm9 = vcmask 1041409   ;;  %vm301_vm10 = vcmask 261120  }
  0x27   :  { %v2564_v5 = vld [vmem:[%s3734_s3] ss:$0 sm:$0xff]  ;;  %s3063_s3 = smov 96   ;;  %v221_v45 = vld [vmem:[#allocation6 + $0x18] sm:$0xff]  ;;  %v219_v48 = vld [vmem:[#allocation6 + $0x8] sm:$0xff] }
  0x28   :  { %210 = vmatpush.msra.mxu0 %v180_v1  ;;  %v218_v46 = vld [vmem:[#allocation6] sm:$0xff]  ;;  %v3200_v47 = vpack.c.bf16 %v221_v45, %v220_v44 }
  0x29   :  { %2478 = vmatmul.msk.f32.vlgmr.msra.gmra.mxu0 %vm188_vm0, %v183_v2  ;;  %v3203_v49 = vpack.c.bf16 %v219_v48, %v218_v46 }
  0x2a   :  { %344 = vmatpush.bf16.msra.mxu2 %v3200_v47  ;;  %633 = vmatpush.bf16.msrb.mxu0 %v3200_v47 }
  0x2e   :  { %345 = vmatpush.bf16.msra.mxu2 %v3203_v49  ;;  %634 = vmatpush.bf16.msrb.mxu0 %v3203_v49 }
  0x31   :  { %2479 = vmatmul.msk.f32.gmra.mxu0 %vm188_vm0, %v184_v3 }
  0xa6   :  { %v212_v4 = vpop.f32.mrf.mxu0 }
  0xa7   :  { %v3187_v8 = vadd.f32 %v2564_v5, %v212_v4 }
  0xa9   :  { %v2480_v12 = vmul.f32 -1.442695, %v3187_v8 }
  0xae   :  { %v215_v6 = vpop.f32.mrf.mxu0 }
  0xaf   :  { %v3184_v7 = vadd.f32 %v2564_v5, %v215_v6 }
  0xb1   :  { %2568 = vtanh.f32 %v3184_v7  ;;  %v2481_v11 = vmul.f32 -1.442695, %v3184_v7 }
  0xb2   :  { %2570 = vtanh.f32 %v3187_v8 }
  0xb3   :  { %2572 = vpow2.f32 %v2481_v11 }
  0xb4   :  { %2574 = vpow2.f32 %v2480_v12 }
  0xb7   :  { %v2569_v9 = vpop.eup %2568 }
  0xb8   :  { %273 = vrot.lane.b32.xlu0 %v2569_v9, %s3062_s30  ;;  %v2571_v10 = vpop.eup %2570 }
  0xb9   :  { %v2573_v13 = vpop.eup %2572 }
  0xba   :  { %v236_v14 = vadd.f32 1.0, %v2573_v13  ;;  %v2575_v15 = vpop.eup %2574 }
  0xbb   :  { %v235_v16 = vadd.f32 1.0, %v2575_v15 }
  0xbc   :  { %2576 = vrcp.f32 %v236_v14  ;;  %v263_v25 = vand.u32 2147483648, %v236_v14  ;;  %vm257_vm2 = vweird.f32 %v236_v14  ;;  %v261_v26 = vand.u32 2147483647, %v236_v14 }
  0xbd   :  { %2578 = vrcp.f32 %v235_v16  ;;  %v248_v34 = vand.u32 2147483648, %v235_v16  ;;  %vm242_vm6 = vweird.f32 %v235_v16  ;;  %v246_v35 = vand.u32 2147483647, %v235_v16 }
  0xbe   :  { %v264_v29 = vor.u32 1.1754944e-38, %v263_v25  ;;  %vm262_vm4 = vcmp.eq.f32.partialorder %v261_v26, 8.507059e+37 }
  0xbf   :  { %v249_v37 = vor.u32 1.1754944e-38, %v248_v34  ;;  %vm247_vm8 = vcmp.eq.f32.partialorder %v246_v35, 8.507059e+37 }
  0xc0   :  { %271 = vrot.lane.b32.xlu0 %v2571_v10, %s3062_s30 }
  0xc2   :  { %v2577_v17 = vpop.eup %2576 }
  0xc3   :  { %v253_v18 = vmul.f32 %v2577_v17, %v236_v14  ;;  %v2579_v20 = vpop.eup %2578  ;;  %vm258_vm1 = vweird.f32 %v2577_v17 }
  0xc4   :  { %v238_v22 = vmul.f32 %v2579_v20, %v235_v16  ;;  %vm259_vm3 = vmor %vm257_vm2, %vm258_vm1  ;;  %vm243_vm5 = vweird.f32 %v2579_v20 }
  0xc5   :  { %v254_v19 = vsub.f32 1.0, %v253_v18  ;;  %vm244_vm7 = vmor %vm242_vm6, %vm243_vm5 }
  0xc6   :  { %v239_v24 = vsub.f32 1.0, %v238_v22 }
  0xc7   :  { %v255_v21 = vmul.f32 %v2577_v17, %v254_v19 }
  0xc8   :  { %v240_v28 = vmul.f32 %v2579_v20, %v239_v24 }
  0xc9   :  { %v256_v23 = vadd.f32 %v2577_v17, %v255_v21 }
  0xca   :  { %v241_v33 = vadd.f32 %v2579_v20, %v240_v28 }
  0xcb   :  { %v260_v27 = vsel %vm259_vm3, %v2577_v17, %v256_v23 }
  0xcc   :  { %v265_v31 = vsel %vm262_vm4, %v264_v29, %v260_v27  ;;  %v245_v36 = vsel %vm244_vm7, %v2579_v20, %v241_v33 }
  0xcd   :  { %v250_v39 = vsel %vm247_vm8, %v249_v37, %v245_v36 }
 0x12a   :  { %v274_v30 = vpop.permute.xlu0 %273 }
 0x12b   :  { %v3194_v32 = vmul.f32 %v274_v30, %v265_v31 }
 0x12d   :  { %2580 = vtanh.f32 %v3194_v32  ;;  %v400_v9 = vrot.slane %v3194_v32, 7 }
 0x132   :  { %v272_v38 = vpop.permute.xlu0 %271 }
 0x133   :  { %v2581_v40 = vpop.eup %2580  ;;  %v277_v41 = vmul.f32 %v272_v38, %v250_v39 }
 0x134   :  { %285 = vrot.lane.b32.xlu1 %v2581_v40, %s3063_s3  ;;  %v3227_v40 = vld [vmem:[#allocation7 + $0x18] sm:$0xff] }
 0x135   :  { %2582 = vtanh.f32 %v277_v41  ;;  %v399_v43 = vrot.slane %v277_v41, 7  ;;  %316 = vmatpush.msra.mxu1 %v3227_v40  ;;  %v3230_v41 = vld [vmem:[#allocation7 + $0x10] sm:$0xff]  ;;  %461 = vmatpush.msra.mxu3 %v3227_v40 }
 0x136   :  { %748 = vmatpush.msrb.mxu2 %v3227_v40  ;;  %1036 = vmatpush.msra.mxu0 %v3227_v40 }
 0x137   :  { %317 = vmatpush.msra.mxu1 %v3230_v41  ;;  %462 = vmatpush.msra.mxu3 %v3230_v41 }
 0x138   :  { %749 = vmatpush.msrb.mxu2 %v3230_v41  ;;  %1037 = vmatpush.msra.mxu0 %v3230_v41 }
 0x13b   :  { %v2583_v42 = vpop.eup %2582 }
 0x13c   :  { %283 = vrot.lane.b32.xlu1 %v2583_v42, %s3063_s3  ;;  %v3233_v42 = vld [vmem:[#allocation7 + $0x8] sm:$0xff] }
 0x13d   :  { %318 = vmatpush.msra.mxu1 %v3233_v42  ;;  %463 = vmatpush.msra.mxu3 %v3233_v42 }
 0x13e   :  { %750 = vmatpush.msrb.mxu2 %v3233_v42  ;;  %1038 = vmatpush.msra.mxu0 %v3233_v42 }
 0x144   :  { %401 = vrot.lane.b32.xlu1 %v399_v43, %s3064_s23  ;;  %v3239_v43 = vld [vmem:[#allocation7] sm:$0xff] }
 0x145   :  { %319 = vmatpush.msra.mxu1 %v3239_v43  ;;  %464 = vmatpush.msra.mxu3 %v3239_v43 }
 0x146   :  { %751 = vmatpush.msrb.mxu2 %v3239_v43  ;;  %1039 = vmatpush.msra.mxu0 %v3239_v43 }
 0x147   :  { %489 = vmatpush.bf16.msrb.mxu1 %v3200_v47  ;;  %604 = vmatpush.msrb.mxu3 %v3227_v40 }
 0x149   :  { %605 = vmatpush.msrb.mxu3 %v3230_v41 }
 0x14b   :  { %490 = vmatpush.bf16.msrb.mxu1 %v3203_v49  ;;  %606 = vmatpush.msrb.mxu3 %v3233_v42 }
 0x14d   :  { %607 = vmatpush.msrb.mxu3 %v3239_v43 }
 0x1a6   :  { %v286_v50 = vpop.permute.xlu1 %285 }
 0x1a7   :  { %v290_v51 = vmul.f32 %v286_v50, %v265_v31 }
 0x1a9   :  { %v325_v52 = vpack.c.bf16 %v290_v51, %v290_v51  ;;  %v296_v54 = vrot.slane %v290_v51, 7 }
 0x1ab   :  { %v329_v55 = vunpack.c.l.b16 %v325_v52 }
 0x1ad   :  { %v330_v59 = vrot.slane %v329_v55, 7 }
 0x1ae   :  { %v284_v53 = vpop.permute.xlu1 %283 }
 0x1af   :  { %v289_v56 = vmul.f32 %v284_v53, %v250_v39 }
 0x1b1   :  { %v324_v57 = vpack.c.bf16 %v289_v56, %v289_v56  ;;  %v3209_v58 = vsel %vm297_vm9, %v296_v54, %v289_v56 }
 0x1b3   :  { %v328_v60 = vunpack.c.l.b16 %v324_v57 }
 0x1b5   :  { %v331_v61 = vsel %vm297_vm9, %v330_v59, %v328_v60 }
 0x1b6   :  { %v332_v62 = vpack.c.b16 %v331_v61, %v331_v61  ;;  %v402_v44 = vpop.permute.xlu1 %401 }
 0x1b8   :  { %333 = vrot.lane.b32.xlu2 %v332_v62, %s3064_s23 }
 0x212   :  { %v334_v63 = vpop.permute.xlu2 %333 }
 0x213   :  { %2483 = vmatmul.msk.bf16.vlgmr.msra.gmra.mxu2 %vm301_vm10, %v334_v63 }
 0x214   :  { %921 = vmatpush.bf16.msra.mxu2 %v3200_v47 }
 0x218   :  { %922 = vmatpush.bf16.msra.mxu2 %v3203_v49 }
 0x296   :  { %v347_v0 = vpop.f32.mrf.mxu2 }
 0x297   :  { %v352_v1 = vrot.slane %v347_v0, 7  ;;  %v356_v2 = vadd.f32 %v347_v0, %v3184_v7 }
 0x299   :  { %v355_v3 = vadd.f32 %v352_v1, %v3187_v8  ;;  %2584 = vtanh.f32 %v356_v2  ;;  %v2485_v13 = vmul.f32 -1.442695, %v356_v2 }
 0x29b   :  { %2586 = vtanh.f32 %v355_v3  ;;  %v2484_v10 = vmul.f32 -1.442695, %v355_v3 }
 0x29d   :  { %2588 = vpow2.f32 %v2484_v10 }
 0x29e   :  { %v349_v4 = vpop.f32.mrf.mxu2 }
 0x29f   :  { %v2585_v5 = vpop.eup %2584 }
 0x2a0   :  { %413 = vrot.lane.b32.xlu0 %v2585_v5, %s3062_s30 }
 0x2a1   :  { %v2587_v6 = vpop.eup %2586 }
 0x2a2   :  { %411 = vrot.lane.b32.xlu2 %v2587_v6, %s3062_s30 }
 0x2a3   :  { %v2589_v11 = vpop.eup %2588 }
 0x2a4   :  { %v363_v12 = vadd.f32 1.0, %v2589_v11 }
 0x2a6   :  { %2590 = vrcp.f32 %v363_v12  ;;  %v376_v21 = vand.u32 2147483648, %v363_v12  ;;  %vm370_vm12 = vweird.f32 %v363_v12  ;;  %v374_v22 = vand.u32 2147483647, %v363_v12 }
 0x2a7   :  { %2592 = vpow2.f32 %v2485_v13 }
 0x2a8   :  { %v377_v24 = vor.u32 1.1754944e-38, %v376_v21  ;;  %vm375_vm14 = vcmp.eq.f32.partialorder %v374_v22, 8.507059e+37 }
 0x2aa   :  { %403 = vrot.lane.b32.xlu2 %v400_v9, %s3064_s23 }
 0x2ac   :  { %v2591_v14 = vpop.eup %2590 }
 0x2ad   :  { %v366_v15 = vmul.f32 %v2591_v14, %v363_v12  ;;  %v2593_v17 = vpop.eup %2592  ;;  %vm371_vm11 = vweird.f32 %v2591_v14 }
 0x2ae   :  { %v364_v18 = vadd.f32 1.0, %v2593_v17  ;;  %vm372_vm13 = vmor %vm370_vm12, %vm371_vm11 }
 0x2af   :  { %v367_v16 = vsub.f32 1.0, %v366_v15 }
 0x2b0   :  { %2594 = vrcp.f32 %v364_v18  ;;  %v391_v33 = vand.u32 2147483648, %v364_v18  ;;  %vm385_vm0 = vweird.f32 %v364_v18  ;;  %v389_v34 = vand.u32 2147483647, %v364_v18 }
 0x2b1   :  { %v368_v19 = vmul.f32 %v2591_v14, %v367_v16 }
 0x2b2   :  { %v392_v36 = vor.u32 1.1754944e-38, %v391_v33  ;;  %vm390_vm2 = vcmp.eq.f32.partialorder %v389_v34, 8.507059e+37 }
 0x2b3   :  { %v369_v20 = vadd.f32 %v2591_v14, %v368_v19 }
 0x2b5   :  { %v373_v23 = vsel %vm372_vm13, %v2591_v14, %v369_v20 }
 0x2b6   :  { %v2595_v25 = vpop.eup %2594  ;;  %v3220_v27 = vsel %vm375_vm14, %v377_v24, %v373_v23 }
 0x2b7   :  { %v381_v29 = vmul.f32 %v2595_v25, %v364_v18  ;;  %vm386_vm15 = vweird.f32 %v2595_v25  ;;  %v407_v45 = vmul.f32 %v402_v44, %v3220_v27 }
 0x2b8   :  { %vm387_vm1 = vmor %vm385_vm0, %vm386_vm15 }
 0x2b9   :  { %v382_v30 = vsub.f32 1.0, %v381_v29 }
 0x2bb   :  { %v383_v31 = vmul.f32 %v2595_v25, %v382_v30 }
 0x2bd   :  { %v384_v32 = vadd.f32 %v2595_v25, %v383_v31 }
 0x2bf   :  { %v388_v35 = vsel %vm387_vm1, %v2595_v25, %v384_v32 }
 0x2c0   :  { %v393_v37 = vsel %vm390_vm2, %v392_v36, %v388_v35 }
 0x2fc   :  { %v412_v26 = vpop.permute.xlu2 %411 }
 0x2fd   :  { %v417_v28 = vmul.f32 %v412_v26, %v3220_v27 }
 0x2ff   :  { %421 = vrot.lane.b32.xlu0 %v417_v28, %s3064_s23 }
 0x304   :  { %v404_v51 = vpop.permute.xlu2 %403 }
 0x305   :  { %v408_v52 = vmul.f32 %v404_v51, %v393_v37 }
 0x312   :  { %v414_v38 = vpop.permute.xlu0 %413 }
 0x313   :  { %v418_v39 = vmul.f32 %v414_v38, %v393_v37 }
 0x315   :  { %423 = vrot.lane.b32.xlu1 %v418_v39, %s3064_s23 }
 0x31d   :  { %299 = vrot.lane.b32.xlu1 %v3209_v58, %s3064_s23 }
 0x371   :  { %v422_v46 = vpop.permute.xlu0 %421 }
 0x372   :  { %v3254_v48 = vadd.f32 %v422_v46, %v407_v45 }
 0x374   :  { %2596 = vtanh.f32 %v3254_v48 }
 0x37a   :  { %v2597_v50 = vpop.eup %2596 }
 0x37b   :  { %433 = vrot.lane.b32.xlu2 %v2597_v50, %s3062_s30 }
 0x387   :  { %v424_v53 = vpop.permute.xlu1 %423 }
 0x388   :  { %v3264_v54 = vadd.f32 %v424_v53, %v408_v52 }
 0x38a   :  { %2598 = vtanh.f32 %v3264_v54 }
 0x38f   :  { %v300_v55 = vpop.permute.xlu1 %299 }
 0x390   :  { %v2599_v56 = vpop.eup %2598  ;;  %2482 = vmatmul.msk.f32.vlgmr.msra.gmra.mxu1 %vm301_vm10, %v300_v55 }
 0x391   :  { %435 = vrot.lane.b32.xlu0 %v2599_v56, %s3062_s30  ;;  %892 = vmatpush.msra.mxu1 %v3227_v40  ;;  %v545_v56 = vrot.slane %v3254_v48, 7 }
 0x393   :  { %893 = vmatpush.msra.mxu1 %v3230_v41 }
 0x395   :  { %894 = vmatpush.msra.mxu1 %v3233_v42 }
 0x397   :  { %895 = vmatpush.msra.mxu1 %v3239_v43 }
 0x3d5   :  { %v434_v57 = vpop.permute.xlu2 %433 }
 0x3d6   :  { %v439_v58 = vmul.f32 %v434_v57, %v3220_v27 }
 0x3d8   :  { %v469_v59 = vpack.c.bf16 %v439_v58, %v439_v58  ;;  %v443_v61 = vrot.slane %v439_v58, 1 }
 0x3da   :  { %v473_v62 = vunpack.c.l.b16 %v469_v59 }
 0x3dc   :  { %v475_v2 = vrot.slane %v473_v62, 1 }
 0x403   :  { %v436_v60 = vpop.permute.xlu0 %435 }
 0x404   :  { %v440_v63 = vmul.f32 %v436_v60, %v393_v37 }
 0x406   :  { %v470_v0 = vpack.c.bf16 %v440_v63, %v440_v63  ;;  %v3275_v1 = vsel %vm297_vm9, %v440_v63, %v443_v61  ;;  %v546_v61 = vrot.slane %v3264_v54, 7 }
 0x408   :  { %v474_v3 = vunpack.c.l.b16 %v470_v0 }
 0x40a   :  { %v476_v4 = vsel %vm297_vm9, %v474_v3, %v475_v2 }
 0x40b   :  { %v477_v5 = vpack.c.b16 %v476_v4, %v476_v4 }
 0x40d   :  { %478 = vrot.lane.b32.xlu2 %v477_v5, %s3064_s23  ;;  %v3282_v9 = vpop.f32.mrf.mxu1 }
 0x467   :  { %v479_v6 = vpop.permute.xlu2 %478 }
 0x468   :  { %2487 = vmatmul.msk.bf16.vlgmr.msrb.gmra.mxu1 %vm301_vm10, %v479_v6 }
 0x469   :  { %1065 = vmatpush.bf16.msrb.mxu1 %v3200_v47 }
 0x46d   :  { %1066 = vmatpush.bf16.msrb.mxu1 %v3203_v49 }
 0x4e5   :  { %v492_v10 = vpop.f32.mrf.mxu1 }
 0x4e6   :  { %v497_v11 = vrot.slane %v492_v10, 6  ;;  %v498_v12 = vrot.slane %v492_v10, 7 }
 0x4e8   :  { %v501_v13 = vadd.f32 %v497_v11, %v3187_v8  ;;  %v502_v14 = vadd.f32 %v498_v12, %v3184_v7 }
 0x4ea   :  { %2600 = vtanh.f32 %v501_v13  ;;  %v2488_v18 = vmul.f32 -1.442695, %v501_v13  ;;  %v2489_v19 = vmul.f32 -1.442695, %v502_v14 }
 0x4eb   :  { %2602 = vtanh.f32 %v502_v14 }
 0x4ec   :  { %2604 = vpow2.f32 %v2488_v18 }
 0x4ed   :  { %v494_v15 = vpop.f32.mrf.mxu1  ;;  %2606 = vpow2.f32 %v2489_v19 }
 0x4f0   :  { %v2601_v16 = vpop.eup %2600 }
 0x4f1   :  { %v2603_v17 = vpop.eup %2602  ;;  %553 = vrot.lane.b32.xlu0 %v2601_v16, %s3062_s30 }
 0x4f2   :  { %555 = vrot.lane.b32.xlu1 %v2603_v17, %s3062_s30  ;;  %v2605_v20 = vpop.eup %2604 }
 0x4f3   :  { %v2607_v21 = vpop.eup %2606  ;;  %v509_v22 = vadd.f32 1.0, %v2605_v20 }
 0x4f4   :  { %v510_v23 = vadd.f32 1.0, %v2607_v21 }
 0x4f5   :  { %2608 = vrcp.f32 %v509_v22  ;;  %v522_v34 = vand.u32 2147483648, %v509_v22  ;;  %vm516_vm5 = vweird.f32 %v509_v22  ;;  %v520_v36 = vand.u32 2147483647, %v509_v22 }
 0x4f6   :  { %2610 = vrcp.f32 %v510_v23  ;;  %v537_v35 = vand.u32 2147483648, %v510_v23  ;;  %vm531_vm6 = vweird.f32 %v510_v23  ;;  %v535_v37 = vand.u32 2147483647, %v510_v23 }
 0x4f7   :  { %v523_v44 = vor.u32 1.1754944e-38, %v522_v34  ;;  %vm521_vm11 = vcmp.eq.f32.partialorder %v520_v36, 8.507059e+37 }
 0x4f8   :  { %v538_v45 = vor.u32 1.1754944e-38, %v537_v35  ;;  %vm536_vm12 = vcmp.eq.f32.partialorder %v535_v37, 8.507059e+37 }
 0x4fb   :  { %v2609_v24 = vpop.eup %2608 }
 0x4fc   :  { %v2611_v25 = vpop.eup %2610  ;;  %v512_v26 = vmul.f32 %v2609_v24, %v509_v22  ;;  %vm517_vm3 = vweird.f32 %v2609_v24 }
 0x4fd   :  { %v527_v27 = vmul.f32 %v2611_v25, %v510_v23  ;;  %vm532_vm4 = vweird.f32 %v2611_v25  ;;  %vm518_vm7 = vmor %vm516_vm5, %vm517_vm3 }
 0x4fe   :  { %v513_v28 = vsub.f32 1.0, %v512_v26  ;;  %vm533_vm8 = vmor %vm531_vm6, %vm532_vm4 }
 0x4ff   :  { %v528_v29 = vsub.f32 1.0, %v527_v27 }
 0x500   :  { %v514_v30 = vmul.f32 %v2609_v24, %v513_v28 }
 0x501   :  { %v529_v31 = vmul.f32 %v2611_v25, %v528_v29 }
 0x502   :  { %v515_v32 = vadd.f32 %v2609_v24, %v514_v30 }
 0x503   :  { %v530_v33 = vadd.f32 %v2611_v25, %v529_v31 }
 0x504   :  { %v519_v38 = vsel %vm518_vm7, %v2609_v24, %v515_v32 }
 0x505   :  { %v534_v39 = vsel %vm533_vm8, %v2611_v25, %v530_v33  ;;  %v524_v50 = vsel %vm521_vm11, %v523_v44, %v519_v38 }
 0x506   :  { %v539_v52 = vsel %vm536_vm12, %v538_v45, %v534_v39  ;;  %v549_v57 = vmul.f32 %v545_v56, %v524_v50 }
 0x507   :  { %v550_v62 = vmul.f32 %v546_v61, %v539_v52 }
 0x563   :  { %v554_v46 = vpop.permute.xlu0 %553 }
 0x564   :  { %v556_v51 = vpop.permute.xlu1 %555  ;;  %v559_v53 = vmul.f32 %v554_v46, %v524_v50 }
 0x565   :  { %v560_v55 = vmul.f32 %v556_v51, %v539_v52 }
 0x566   :  { %563 = vrot.lane.b32.xlu2 %v559_v53, %s3064_s23 }
 0x567   :  { %565 = vrot.lane.b32.xlu0 %v560_v55, %s3064_s23 }
 0x5c0   :  { %v564_v58 = vpop.permute.xlu2 %563 }
 0x5c1   :  { %v3291_v59 = vadd.f32 %v564_v58, %v549_v57 }
 0x5c3   :  { %2612 = vtanh.f32 %v3291_v59 }
 0x5c9   :  { %v2613_v60 = vpop.eup %2612 }
 0x5ca   :  { %575 = vrot.lane.b32.xlu1 %v2613_v60, %s3062_s30 }
 0x5d9   :  { %v566_v63 = vpop.permute.xlu0 %565 }
 0x5da   :  { %v3296_v0 = vadd.f32 %v566_v63, %v550_v62 }
 0x5dc   :  { %2614 = vtanh.f32 %v3296_v0 }
 0x5e2   :  { %v2615_v2 = vpop.eup %2614 }
 0x5e3   :  { %577 = vrot.lane.b32.xlu2 %v2615_v2, %s3062_s30 }
 0x63c   :  { %v576_v48 = vpop.permute.xlu1 %575 }
 0x63d   :  { %v578_v3 = vpop.permute.xlu2 %577  ;;  %v581_v4 = vmul.f32 %v576_v48, %v524_v50 }
 0x63e   :  { %v582_v5 = vmul.f32 %v578_v3, %v539_v52 }
 0x63f   :  { %v585_v6 = vrot.slane %v581_v4, 2  ;;  %v612_v10 = vpack.c.bf16 %v581_v4, %v581_v4  ;;  %v690_v4 = vrot.slane %v3296_v0, 7 }
 0x640   :  { %v586_v11 = vrot.slane %v582_v5, 1  ;;  %v613_v12 = vpack.c.bf16 %v582_v5, %v582_v5 }
 0x641   :  { %v616_v13 = vunpack.c.l.b16 %v612_v10 }
 0x642   :  { %v617_v14 = vunpack.c.l.b16 %v613_v12  ;;  %v3301_v54 = vsel %vm297_vm9, %v586_v11, %v585_v6  ;;  %v689_v12 = vrot.slane %v3291_v59, 7 }
 0x643   :  { %v618_v15 = vrot.slane %v616_v13, 2 }
 0x644   :  { %v619_v16 = vrot.slane %v617_v14, 1 }
 0x646   :  { %v620_v17 = vsel %vm297_vm9, %v619_v16, %v618_v15 }
 0x647   :  { %v621_v18 = vpack.c.b16 %v620_v17, %v620_v17 }
 0x649   :  { %622 = vrot.lane.b32.xlu0 %v621_v18, %s3064_s23 }
 0x6bb   :  { %v623_v19 = vpop.permute.xlu0 %622 }
 0x6bc   :  { %2491 = vmatmul.msk.bf16.vlgmr.msrb.gmra.mxu0 %vm301_vm10, %v623_v19 }
 0x6bd   :  { %1209 = vmatpush.bf16.msrb.mxu0 %v3200_v47 }
 0x6c1   :  { %1210 = vmatpush.bf16.msrb.mxu0 %v3203_v49 }
 0x739   :  { %v636_v20 = vpop.f32.mrf.mxu0 }
 0x73a   :  { %v641_v21 = vrot.slane %v636_v20, 5  ;;  %v642_v22 = vrot.slane %v636_v20, 6 }
 0x73c   :  { %v645_v23 = vadd.f32 %v641_v21, %v3187_v8  ;;  %v646_v24 = vadd.f32 %v642_v22, %v3184_v7 }
 0x73e   :  { %2616 = vtanh.f32 %v645_v23  ;;  %v2493_v28 = vmul.f32 -1.442695, %v646_v24  ;;  %v2492_v32 = vmul.f32 -1.442695, %v645_v23 }
 0x73f   :  { %2618 = vtanh.f32 %v646_v24 }
 0x740   :  { %2620 = vpow2.f32 %v2493_v28 }
 0x741   :  { %v638_v25 = vpop.f32.mrf.mxu0 }
 0x744   :  { %v2617_v26 = vpop.eup %2616 }
 0x745   :  { %v2619_v27 = vpop.eup %2618  ;;  %697 = vrot.lane.b32.xlu1 %v2617_v26, %s3062_s30 }
 0x746   :  { %699 = vrot.lane.b32.xlu2 %v2619_v27, %s3062_s30  ;;  %v2621_v29 = vpop.eup %2620 }
 0x747   :  { %v654_v30 = vadd.f32 1.0, %v2621_v29 }
 0x749   :  { %2622 = vrcp.f32 %v654_v30  ;;  %v681_v39 = vand.u32 2147483648, %v654_v30  ;;  %vm675_vm14 = vweird.f32 %v654_v30  ;;  %v679_v44 = vand.u32 2147483647, %v654_v30 }
 0x74a   :  { %2624 = vpow2.f32 %v2492_v32 }
 0x74b   :  { %v682_v46 = vor.u32 1.1754944e-38, %v681_v39  ;;  %vm680_vm0 = vcmp.eq.f32.partialorder %v679_v44, 8.507059e+37 }
 0x74f   :  { %v2623_v31 = vpop.eup %2622 }
 0x750   :  { %v671_v33 = vmul.f32 %v2623_v31, %v654_v30  ;;  %v2625_v35 = vpop.eup %2624  ;;  %vm676_vm13 = vweird.f32 %v2623_v31 }
 0x751   :  { %v653_v37 = vadd.f32 1.0, %v2625_v35  ;;  %vm677_vm15 = vmor %vm675_vm14, %vm676_vm13 }
 0x752   :  { %v672_v34 = vsub.f32 1.0, %v671_v33 }
 0x753   :  { %2626 = vrcp.f32 %v653_v37  ;;  %v666_v60 = vand.u32 2147483648, %v653_v37  ;;  %vm660_vm2 = vweird.f32 %v653_v37  ;;  %v664_v61 = vand.u32 2147483647, %v653_v37 }
 0x754   :  { %v673_v36 = vmul.f32 %v2623_v31, %v672_v34 }
 0x755   :  { %v667_v63 = vor.u32 1.1754944e-38, %v666_v60  ;;  %vm665_vm4 = vcmp.eq.f32.partialorder %v664_v61, 8.507059e+37 }
 0x756   :  { %v674_v38 = vadd.f32 %v2623_v31, %v673_v36 }
 0x758   :  { %v678_v45 = vsel %vm677_vm15, %v2623_v31, %v674_v38 }
 0x759   :  { %v683_v51 = vsel %vm680_vm0, %v682_v46, %v678_v45  ;;  %v2627_v52 = vpop.eup %2626 }
 0x75a   :  { %v656_v55 = vmul.f32 %v2627_v52, %v653_v37  ;;  %vm661_vm1 = vweird.f32 %v2627_v52  ;;  %v694_v5 = vmul.f32 %v690_v4, %v683_v51 }
 0x75b   :  { %vm662_vm3 = vmor %vm660_vm2, %vm661_vm1 }
 0x75c   :  { %v657_v56 = vsub.f32 1.0, %v656_v55 }
 0x75e   :  { %v658_v57 = vmul.f32 %v2627_v52, %v657_v56 }
 0x760   :  { %v659_v58 = vadd.f32 %v2627_v52, %v658_v57 }
 0x762   :  { %v663_v62 = vsel %vm662_vm3, %v2627_v52, %v659_v58 }
 0x763   :  { %v668_v48 = vsel %vm665_vm4, %v667_v63, %v663_v62 }
 0x764   :  { %v693_v13 = vmul.f32 %v689_v12, %v668_v48 }
 0x7a0   :  { %v700_v50 = vpop.permute.xlu2 %699 }
 0x7a1   :  { %v704_v53 = vmul.f32 %v700_v50, %v683_v51 }
 0x7a3   :  { %709 = vrot.lane.b32.xlu1 %v704_v53, %s3064_s23 }
 0x7ab   :  { %445 = vrot.lane.b32.xlu1 %v3275_v1, %s3064_s23 }
 0x7b7   :  { %v698_v2 = vpop.permute.xlu1 %697 }
 0x7b8   :  { %v703_v3 = vmul.f32 %v698_v2, %v668_v48 }
 0x7ba   :  { %707 = vrot.lane.b32.xlu0 %v703_v3, %s3064_s23 }
 0x815   :  { %v710_v6 = vpop.permute.xlu1 %709 }
 0x816   :  { %v3317_v1 = vadd.f32 %v710_v6, %v694_v5 }
 0x818   :  { %2628 = vtanh.f32 %v3317_v1 }
 0x81d   :  { %v446_v10 = vpop.permute.xlu1 %445 }
 0x81e   :  { %v2629_v11 = vpop.eup %2628  ;;  %2486 = vmatmul.msk.f32.vlgmr.msra.gmra.mxu3 %vm301_vm10, %v446_v10 }
 0x81f   :  { %721 = vrot.lane.b32.xlu0 %v2629_v11, %s3062_s30  ;;  %777 = vmatpush.bf16.msra.mxu3 %v3200_v47 }
 0x823   :  { %778 = vmatpush.bf16.msra.mxu3 %v3203_v49 }
 0x82c   :  { %v708_v0 = vpop.permute.xlu0 %707 }
 0x82d   :  { %v3325_v14 = vadd.f32 %v708_v0, %v693_v13 }
 0x82f   :  { %2630 = vtanh.f32 %v3325_v14 }
 0x835   :  { %v2631_v15 = vpop.eup %2630 }
 0x836   :  { %719 = vrot.lane.b32.xlu2 %v2631_v15, %s3062_s30 }
 0x83e   :  { %588 = vrot.lane.b32.xlu2 %v3301_v54, %s3064_s23 }
 0x890   :  { %v720_v16 = vpop.permute.xlu2 %719 }
 0x891   :  { %v722_v17 = vpop.permute.xlu0 %721  ;;  %v725_v18 = vmul.f32 %v720_v16, %v668_v48 }
 0x892   :  { %v726_v47 = vmul.f32 %v722_v17, %v683_v51 }
 0x893   :  { %v729_v19 = vrot.slane %v725_v18, 3  ;;  %v756_v49 = vpack.c.bf16 %v725_v18, %v725_v18  ;;  %v834_v18 = vrot.slane %v3317_v1, 7  ;;  %v833_v1 = vrot.slane %v3325_v14, 7 }
 0x894   :  { %v730_v20 = vrot.slane %v726_v47, 2  ;;  %v757_v59 = vpack.c.bf16 %v726_v47, %v726_v47 }
 0x895   :  { %v760_v21 = vunpack.c.l.b16 %v756_v49 }
 0x896   :  { %v761_v22 = vunpack.c.l.b16 %v757_v59  ;;  %v731_v23 = vsel %vm297_vm9, %v730_v20, %v729_v19 }
 0x897   :  { %v762_v24 = vrot.slane %v760_v21, 3 }
 0x898   :  { %v763_v25 = vrot.slane %v761_v22, 2  ;;  %v589_v26 = vpop.permute.xlu2 %588 }
 0x899   :  { %2490 = vmatmul.msk.f32.vlgmr.msrb.gmra.mxu3 %vm301_vm10, %v589_v26 }
 0x89a   :  { %v764_v27 = vsel %vm297_vm9, %v763_v25, %v762_v24  ;;  %1180 = vmatpush.msrb.mxu3 %v3227_v40 }
 0x89b   :  { %v765_v54 = vpack.c.b16 %v764_v27, %v764_v27 }
 0x89c   :  { %1181 = vmatpush.msrb.mxu3 %v3230_v41 }
 0x89d   :  { %766 = vrot.lane.b32.xlu0 %v765_v54, %s3064_s23 }
 0x89e   :  { %1182 = vmatpush.msrb.mxu3 %v3233_v42 }
 0x8a0   :  { %1183 = vmatpush.msrb.mxu3 %v3239_v43 }
 0x8a1   :  { %v3340_v29 = vpop.f32.mrf.mxu3 }
 0x90f   :  { %v767_v28 = vpop.permute.xlu0 %766 }
 0x910   :  { %2495 = vmatmul.msk.bf16.vlgmr.msra.gmra.mxu3 %vm301_vm10, %v767_v28 }
 0x91c   :  { %v3342_v30 = vpop.f32.mrf.mxu3 }
 0x993   :  { %v780_v31 = vpop.f32.mrf.mxu3 }
 0x994   :  { %v785_v32 = vrot.slane %v780_v31, 4  ;;  %v786_v33 = vrot.slane %v780_v31, 5 }
 0x996   :  { %v789_v34 = vadd.f32 %v785_v32, %v3187_v8  ;;  %v790_v35 = vadd.f32 %v786_v33, %v3184_v7 }
 0x998   :  { %2632 = vtanh.f32 %v789_v34  ;;  %v2497_v39 = vmul.f32 -1.442695, %v790_v35  ;;  %v2496_v50 = vmul.f32 -1.442695, %v789_v34 }
 0x999   :  { %2634 = vtanh.f32 %v790_v35 }
 0x99a   :  { %2636 = vpow2.f32 %v2497_v39 }
 0x99b   :  { %v782_v36 = vpop.f32.mrf.mxu3 }
 0x99e   :  { %v2633_v37 = vpop.eup %2632 }
 0x99f   :  { %v2635_v38 = vpop.eup %2634  ;;  %841 = vrot.lane.b32.xlu1 %v2633_v37, %s3062_s30 }
 0x9a0   :  { %843 = vrot.lane.b32.xlu2 %v2635_v38, %s3062_s30  ;;  %v2637_v44 = vpop.eup %2636 }
 0x9a1   :  { %v798_v45 = vadd.f32 1.0, %v2637_v44 }
 0x9a3   :  { %2638 = vrcp.f32 %v798_v45  ;;  %v825_v58 = vand.u32 2147483648, %v798_v45  ;;  %vm819_vm6 = vweird.f32 %v798_v45  ;;  %v823_v60 = vand.u32 2147483647, %v798_v45 }
 0x9a4   :  { %2640 = vpow2.f32 %v2496_v50  ;;  %v3379_v50 = vld [vmem:[%s3737_s6] ss:$0 sm:$0xff] }
 0x9a5   :  { %v826_v62 = vor.u32 1.1754944e-38, %v825_v58  ;;  %vm824_vm8 = vcmp.eq.f32.partialorder %v823_v60, 8.507059e+37 }
 0x9a9   :  { %v2639_v46 = vpop.eup %2638 }
 0x9aa   :  { %v815_v51 = vmul.f32 %v2639_v46, %v798_v45  ;;  %v2641_v53 = vpop.eup %2640  ;;  %vm820_vm5 = vweird.f32 %v2639_v46 }
 0x9ab   :  { %v797_v56 = vadd.f32 1.0, %v2641_v53  ;;  %vm821_vm7 = vmor %vm819_vm6, %vm820_vm5 }
 0x9ac   :  { %v816_v52 = vsub.f32 1.0, %v815_v51 }
 0x9ad   :  { %2642 = vrcp.f32 %v797_v56  ;;  %v810_v11 = vand.u32 2147483648, %v797_v56  ;;  %vm804_vm12 = vweird.f32 %v797_v56  ;;  %v808_v12 = vand.u32 2147483647, %v797_v56 }
 0x9ae   :  { %v817_v55 = vmul.f32 %v2639_v46, %v816_v52  ;;  %v322_v52 = vadd.f32 %v3379_v50, %v3282_v9 }
 0x9af   :  { %v811_v0 = vor.u32 1.1754944e-38, %v810_v11  ;;  %vm809_vm14 = vcmp.eq.f32.partialorder %v808_v12, 8.507059e+37 }
 0x9b0   :  { %v818_v57 = vadd.f32 %v2639_v46, %v817_v55  ;;  %v2511_v60 = vmul.f32 -1.442695, %v322_v52 }
 0x9b2   :  { %v822_v61 = vsel %vm821_vm7, %v2639_v46, %v818_v57 }
 0x9b3   :  { %v827_v2 = vsel %vm824_vm8, %v826_v62, %v822_v61  ;;  %v2643_v48 = vpop.eup %2642 }
 0x9b4   :  { %v800_v4 = vmul.f32 %v2643_v48, %v797_v56  ;;  %vm805_vm11 = vweird.f32 %v2643_v48  ;;  %v838_v47 = vmul.f32 %v834_v18, %v827_v2 }
 0x9b5   :  { %vm806_vm13 = vmor %vm804_vm12, %vm805_vm11 }
 0x9b6   :  { %v801_v5 = vsub.f32 1.0, %v800_v4 }
 0x9b8   :  { %v802_v6 = vmul.f32 %v2643_v48, %v801_v5 }
 0x9ba   :  { %v803_v10 = vadd.f32 %v2643_v48, %v802_v6 }
 0x9bc   :  { %v807_v13 = vsel %vm806_vm13, %v2643_v48, %v803_v10 }
 0x9bd   :  { %v812_v16 = vsel %vm809_vm14, %v811_v0, %v807_v13 }
 0x9be   :  { %v837_v21 = vmul.f32 %v833_v1, %v812_v16 }
 0x9fa   :  { %v844_v63 = vpop.permute.xlu2 %843 }
 0x9fb   :  { %v848_v3 = vmul.f32 %v844_v63, %v827_v2 }
 0x9fd   :  { %853 = vrot.lane.b32.xlu1 %v848_v3, %s3064_s23 }
 0xa05   :  { %732 = vrot.lane.b32.xlu1 %v731_v23, %s3064_s23 }
 0xa11   :  { %v842_v15 = vpop.permute.xlu1 %841 }
 0xa12   :  { %v847_v17 = vmul.f32 %v842_v15, %v812_v16 }
 0xa14   :  { %851 = vrot.lane.b32.xlu0 %v847_v17, %s3064_s23 }
 0xa6f   :  { %v854_v19 = vpop.permute.xlu1 %853 }
 0xa70   :  { %v3352_v49 = vadd.f32 %v854_v19, %v838_v47 }
 0xa72   :  { %2644 = vtanh.f32 %v3352_v49 }
 0xa77   :  { %v733_v20 = vpop.permute.xlu1 %732 }
 0xa78   :  { %v2645_v59 = vpop.eup %2644  ;;  %2494 = vmatmul.msk.f32.vlgmr.msrb.gmra.mxu2 %vm301_vm10, %v733_v20 }
 0xa79   :  { %865 = vrot.lane.b32.xlu0 %v2645_v59, %s3062_s30  ;;  %1324 = vmatpush.msrb.mxu2 %v3227_v40 }
 0xa7b   :  { %1325 = vmatpush.msrb.mxu2 %v3230_v41 }
 0xa7d   :  { %1326 = vmatpush.msrb.mxu2 %v3233_v42 }
 0xa7f   :  { %1327 = vmatpush.msrb.mxu2 %v3239_v43 }
 0xa86   :  { %v852_v22 = vpop.permute.xlu0 %851 }
 0xa87   :  { %v3362_v23 = vadd.f32 %v852_v22, %v837_v21 }
 0xa89   :  { %2646 = vtanh.f32 %v3362_v23 }
 0xa8f   :  { %v2647_v24 = vpop.eup %2646 }
 0xa90   :  { %863 = vrot.lane.b32.xlu2 %v2647_v24, %s3062_s30 }
 0xaea   :  { %v864_v25 = vpop.permute.xlu2 %863 }
 0xaeb   :  { %v866_v26 = vpop.permute.xlu0 %865  ;;  %v869_v40 = vmul.f32 %v864_v25, %v812_v16 }
 0xaec   :  { %v870_v27 = vmul.f32 %v866_v26, %v827_v2 }
 0xaed   :  { %v873_v41 = vrot.slane %v869_v40, 4  ;;  %v900_v54 = vpack.c.bf16 %v869_v40, %v869_v40 }
 0xaee   :  { %v874_v42 = vrot.slane %v870_v27, 3  ;;  %v901_v28 = vpack.c.bf16 %v870_v27, %v870_v27 }
 0xaef   :  { %v904_v43 = vunpack.c.l.b16 %v900_v54 }
 0xaf0   :  { %v905_v31 = vunpack.c.l.b16 %v901_v28  ;;  %v3367_v14 = vsel %vm297_vm9, %v874_v42, %v873_v41 }
 0xaf1   :  { %v906_v32 = vrot.slane %v904_v43, 4 }
 0xaf2   :  { %v907_v33 = vrot.slane %v905_v31, 3 }
 0xaf4   :  { %v908_v34 = vsel %vm297_vm9, %v907_v33, %v906_v32 }
 0xaf5   :  { %v909_v35 = vpack.c.b16 %v908_v34, %v908_v34 }
 0xaf7   :  { %910 = vrot.lane.b32.xlu2 %v909_v35, %s3064_s23 }
 0xafb   :  { %v3372_v37 = vpop.f32.mrf.mxu2 }
 0xb51   :  { %v911_v36 = vpop.permute.xlu2 %910 }
 0xb52   :  { %2499 = vmatmul.msk.bf16.vlgmr.msra.gmra.mxu2 %vm301_vm10, %v911_v36 }
 0xbd5   :  { %v924_v38 = vpop.f32.mrf.mxu2 }
 0xbd6   :  { %v929_v39 = vrot.slane %v924_v38, 3  ;;  %v930_v44 = vrot.slane %v924_v38, 4 }
 0xbd8   :  { %v933_v45 = vadd.f32 %v929_v39, %v3187_v8  ;;  %v934_v46 = vadd.f32 %v930_v44, %v3184_v7  ;;  %v977_v39 = vrot.slane %v3362_v23, 7 }
 0xbda   :  { %2648 = vtanh.f32 %v933_v45  ;;  %v2500_v57 = vmul.f32 -1.442695, %v933_v45  ;;  %v2501_v58 = vmul.f32 -1.442695, %v934_v46 }
 0xbdb   :  { %2650 = vtanh.f32 %v934_v46 }
 0xbdc   :  { %2652 = vtanh.f32 %v322_v52  ;;  %v978_v52 = vrot.slane %v3352_v49, 7 }
 0xbdd   :  { %v926_v51 = vpop.f32.mrf.mxu2  ;;  %2654 = vpow2.f32 %v2500_v57 }
 0xbde   :  { %2656 = vpow2.f32 %v2501_v58 }
 0xbdf   :  { %2658 = vpow2.f32 %v2511_v60 }
 0xbe0   :  { %v2649_v53 = vpop.eup %2648 }
 0xbe1   :  { %v2651_v55 = vpop.eup %2650  ;;  %985 = vrot.lane.b32.xlu0 %v2649_v53, %s3062_s30 }
 0xbe2   :  { %987 = vrot.lane.b32.xlu1 %v2651_v55, %s3062_s30  ;;  %v2653_v56 = vpop.eup %2652 }
 0xbe3   :  { %v2655_v61 = vpop.eup %2654 }
 0xbe4   :  { %v2657_v62 = vpop.eup %2656  ;;  %v941_v63 = vadd.f32 1.0, %v2655_v61 }
 0xbe5   :  { %v942_v9 = vadd.f32 1.0, %v2657_v62  ;;  %v2659_v2 = vpop.eup %2658 }
 0xbe6   :  { %2660 = vrcp.f32 %v941_v63  ;;  %v1346_v48 = vadd.f32 1.0, %v2659_v2  ;;  %v954_v18 = vand.u32 2147483648, %v941_v63  ;;  %vm948_vm1 = vweird.f32 %v941_v63 }
 0xbe7   :  { %2662 = vrcp.f32 %v942_v9  ;;  %v969_v19 = vand.u32 2147483648, %v942_v9  ;;  %v952_v20 = vand.u32 2147483647, %v941_v63  ;;  %vm963_vm2 = vweird.f32 %v942_v9 }
 0xbe8   :  { %2664 = vrcp.f32 %v1346_v48  ;;  %v967_v59 = vand.u32 2147483647, %v942_v9  ;;  %v955_v22 = vor.u32 1.1754944e-38, %v954_v18  ;;  %v1358_v43 = vand.u32 2147483648, %v1346_v48  ;;  %v1333_v18 = vld [vmem:[#allocation9 + $0x8] sm:$0xff] }
 0xbe9   :  { %v970_v25 = vor.u32 1.1754944e-38, %v969_v19  ;;  %vm953_vm5 = vcmp.eq.f32.partialorder %v952_v20, 8.507059e+37  ;;  %vm1352_vm8 = vweird.f32 %v1346_v48  ;;  %v1356_v31 = vand.u32 2147483647, %v1346_v48 }
 0xbea   :  { %1364 = vrot.lane.b32.xlu1 %v2653_v56, %s3062_s30  ;;  %vm968_vm6 = vcmp.eq.f32.partialorder %v967_v59, 8.507059e+37  ;;  %v1359_v33 = vor.u32 1.1754944e-38, %v1358_v43 }
 0xbeb   :  { %vm1357_vm12 = vcmp.eq.f32.partialorder %v1356_v31, 8.507059e+37 }
 0xbec   :  { %v2661_v3 = vpop.eup %2660 }
 0xbed   :  { %v2663_v4 = vpop.eup %2662  ;;  %v944_v5 = vmul.f32 %v2661_v3, %v941_v63  ;;  %vm949_vm15 = vweird.f32 %v2661_v3 }
 0xbee   :  { %v959_v6 = vmul.f32 %v2663_v4, %v942_v9  ;;  %v2665_v12 = vpop.eup %2664  ;;  %vm964_vm0 = vweird.f32 %v2663_v4  ;;  %vm950_vm3 = vmor %vm948_vm1, %vm949_vm15 }
 0xbef   :  { %v945_v10 = vsub.f32 1.0, %v944_v5  ;;  %v1348_v15 = vmul.f32 %v2665_v12, %v1346_v48  ;;  %vm965_vm4 = vmor %vm963_vm2, %vm964_vm0  ;;  %vm1353_vm7 = vweird.f32 %v2665_v12 }
 0xbf0   :  { %v960_v11 = vsub.f32 1.0, %v959_v6  ;;  %vm1354_vm11 = vmor %vm1352_vm8, %vm1353_vm7 }
 0xbf1   :  { %v946_v13 = vmul.f32 %v2661_v3, %v945_v10  ;;  %v1349_v47 = vsub.f32 1.0, %v1348_v15  ;;  %v1335_v15 = vld [vmem:[#allocation9 + $0x18] sm:$0xff] }
 0xbf2   :  { %v961_v0 = vmul.f32 %v2663_v4, %v960_v11 }
 0xbf3   :  { %v947_v16 = vadd.f32 %v2661_v3, %v946_v13  ;;  %v1350_v24 = vmul.f32 %v2665_v12, %v1349_v47 }
 0xbf4   :  { %v962_v17 = vadd.f32 %v2663_v4, %v961_v0  ;;  %v1334_v0 = vld [vmem:[#allocation9 + $0x10] sm:$0xff] }
 0xbf5   :  { %v951_v1 = vsel %vm950_vm3, %v2661_v3, %v947_v16  ;;  %v1351_v28 = vadd.f32 %v2665_v12, %v1350_v24  ;;  %v1332_v16 = vld [vmem:[#allocation9] sm:$0xff] }
 0xbf6   :  { %v966_v21 = vsel %vm965_vm4, %v2663_v4, %v962_v17  ;;  %v956_v40 = vsel %vm953_vm5, %v955_v22, %v951_v1  ;;  %v3415_v17 = vpack.c.bf16 %v1335_v15, %v1334_v0  ;;  %v3418_v47 = vpack.c.bf16 %v1333_v18, %v1332_v16 }
 0xbf7   :  { %v971_v41 = vsel %vm968_vm6, %v970_v25, %v966_v21  ;;  %v1355_v32 = vsel %vm1354_vm11, %v2665_v12, %v1351_v28  ;;  %v981_v44 = vmul.f32 %v977_v39, %v956_v40 }
 0xbf8   :  { %v1360_v35 = vsel %vm1357_vm12, %v1359_v33, %v1355_v32  ;;  %v982_v53 = vmul.f32 %v978_v52, %v971_v41 }
 0xc53   :  { %v986_v26 = vpop.permute.xlu0 %985 }
 0xc54   :  { %v988_v27 = vpop.permute.xlu1 %987  ;;  %v991_v54 = vmul.f32 %v986_v26, %v956_v40 }
 0xc55   :  { %v992_v42 = vmul.f32 %v988_v27, %v971_v41 }
 0xc56   :  { %995 = vrot.lane.b32.xlu2 %v991_v54, %s3064_s23 }
 0xc57   :  { %997 = vrot.lane.b32.xlu0 %v992_v42, %s3064_s23 }
 0xc5c   :  { %v1365_v34 = vpop.permute.xlu1 %1364 }
 0xc5d   :  { %v3388_v36 = vmul.f32 %v1365_v34, %v1360_v35 }
 0xc5f   :  { %2666 = vtanh.f32 %v3388_v36 }
 0xc65   :  { %v2667_v38 = vpop.eup %2666 }
 0xc66   :  { %1370 = vrot.lane.b32.xlu1 %v2667_v38, %s3063_s3 }
 0xcb0   :  { %v996_v45 = vpop.permute.xlu2 %995 }
 0xcb1   :  { %v3393_v46 = vadd.f32 %v996_v45, %v981_v44 }
 0xcb3   :  { %2668 = vtanh.f32 %v3393_v46 }
 0xcb9   :  { %v2669_v51 = vpop.eup %2668 }
 0xcba   :  { %1007 = vrot.lane.b32.xlu2 %v2669_v51, %s3062_s30 }
 0xcc2   :  { %876 = vrot.lane.b32.xlu2 %v3367_v14, %s3064_s23 }
 0xcc9   :  { %v998_v55 = vpop.permute.xlu0 %997 }
 0xcca   :  { %v3400_v56 = vadd.f32 %v998_v55, %v982_v53 }
 0xccc   :  { %2670 = vtanh.f32 %v3400_v56 }
 0xcd2   :  { %v2671_v23 = vpop.eup %2670 }
 0xcd3   :  { %1009 = vrot.lane.b32.xlu0 %v2671_v23, %s3062_s30 }
 0xcd8   :  { %v1371_v57 = vpop.permute.xlu1 %1370 }
 0xcd9   :  { %v3404_v58 = vmul.f32 %v1371_v57, %v1360_v35 }
 0xcdb   :  { %v1402_v60 = vpack.c.bf16 %v3404_v58, %v3404_v58 }
 0xcdd   :  { %1404 = vrot.lane.b32.xlu1 %v1402_v60, %s3064_s23 }
 0xd14   :  { %v1008_v14 = vpop.permute.xlu2 %1007 }
 0xd15   :  { %v1013_v49 = vmul.f32 %v1008_v14, %v956_v40 }
 0xd17   :  { %v1044_v62 = vpack.c.bf16 %v1013_v49, %v1013_v49  ;;  %v1017_v2 = vrot.slane %v1013_v49, 5 }
 0xd19   :  { %v1048_v48 = vunpack.c.l.b16 %v1044_v62 }
 0xd1b   :  { %v1050_v10 = vrot.slane %v1048_v48, 5 }
 0xd1c   :  { %v877_v61 = vpop.permute.xlu2 %876 }
 0xd1d   :  { %2498 = vmatmul.msk.f32.vlgmr.msra.gmra.mxu1 %vm301_vm10, %v877_v61 }
 0xd1e   :  { %1415 = vmatpush.bf16.msra.mxu1 %v3415_v17 }
 0xd22   :  { %1416 = vmatpush.bf16.msra.mxu1 %v3418_v47 }
 0xd45   :  { %v1010_v63 = vpop.permute.xlu0 %1009 }
 0xd46   :  { %v1014_v9 = vmul.f32 %v1010_v63, %v971_v41  ;;  %v467_v41 = vadd.f32 %v3379_v50, %v3340_v29 }
 0xd48   :  { %v1018_v3 = vrot.slane %v1014_v9, 4  ;;  %v1045_v4 = vpack.c.bf16 %v1014_v9, %v1014_v9 }
 0xd4a   :  { %v1049_v5 = vunpack.c.l.b16 %v1045_v4  ;;  %v3411_v6 = vsel %vm297_vm9, %v1018_v3, %v1017_v2 }
 0xd4c   :  { %v1051_v11 = vrot.slane %v1049_v5, 4 }
 0xd4e   :  { %v1052_v12 = vsel %vm297_vm9, %v1051_v11, %v1050_v10 }
 0xd4f   :  { %v1053_v13 = vpack.c.b16 %v1052_v12, %v1052_v12  ;;  %v1405_v20 = vpop.permute.xlu1 %1404 }
 0xd51   :  { %1054 = vrot.lane.b32.xlu0 %v1053_v13, %s3064_s23 }
 0xd9a   :  { %v3425_v59 = vpop.f32.mrf.mxu1 }
 0xdc3   :  { %v1055_v19 = vpop.permute.xlu0 %1054 }
 0xdc4   :  { %2503 = vmatmul.msk.bf16.vlgmr.msrb.gmra.mxu1 %vm301_vm10, %v1055_v19 }
 0xdc5   :  { %1668 = vmatpush.bf16.msrb.mxu1 %v3415_v17 }
 0xdc9   :  { %1669 = vmatpush.bf16.msrb.mxu1 %v3418_v47 }
 0xdd4   :  { %2513 = vmatmul.msk.bf16.vlgmr.msra.gmra.mxu1 %vm301_vm10, %v1405_v20 }
 0xe41   :  { %v1068_v1 = vpop.f32.mrf.mxu1 }
 0xe42   :  { %v1073_v21 = vrot.slane %v1068_v1, 2  ;;  %v1074_v22 = vrot.slane %v1068_v1, 3 }
 0xe44   :  { %v1077_v24 = vadd.f32 %v1073_v21, %v3187_v8  ;;  %v1078_v25 = vadd.f32 %v1074_v22, %v3184_v7 }
 0xe46   :  { %2672 = vtanh.f32 %v1077_v24  ;;  %v2504_v31 = vmul.f32 -1.442695, %v1077_v24  ;;  %v2505_v35 = vmul.f32 -1.442695, %v1078_v25 }
 0xe47   :  { %2674 = vtanh.f32 %v1078_v25 }
 0xe49   :  { %v1070_v26 = vpop.f32.mrf.mxu1 }
 0xe4c   :  { %v2673_v40 = vpop.eup %2672 }
 0xe4d   :  { %v2675_v27 = vpop.eup %2674  ;;  %1129 = vrot.lane.b32.xlu2 %v2673_v40, %s3062_s30  ;;  %v1121_v40 = vrot.slane %v3393_v46, 7 }
 0xe4e   :  { %1131 = vrot.lane.b32.xlu0 %v2675_v27, %s3062_s30 }
 0xe51   :  { %v1418_v54 = vpop.f32.mrf.mxu1 }
 0xe52   :  { %v1422_v42 = vadd.f32 %v1418_v54, %v467_v41 }
 0xe54   :  { %2676 = vtanh.f32 %v1422_v42  ;;  %v2514_v51 = vmul.f32 -1.442695, %v1422_v42 }
 0xe55   :  { %2678 = vpow2.f32 %v2504_v31 }
 0xe59   :  { %v1420_v28 = vpop.f32.mrf.mxu1 }
 0xe5a   :  { %v2677_v43 = vpop.eup %2676 }
 0xe5b   :  { %1449 = vrot.lane.b32.xlu1 %v2677_v43, %s3062_s30  ;;  %v2679_v32 = vpop.eup %2678 }
 0xe5c   :  { %v1085_v33 = vadd.f32 1.0, %v2679_v32  ;;  %v1122_v32 = vrot.slane %v3400_v56, 7 }
 0xe5e   :  { %2680 = vrcp.f32 %v1085_v33  ;;  %v1098_v53 = vand.u32 2147483648, %v1085_v33  ;;  %vm1092_vm14 = vweird.f32 %v1085_v33  ;;  %v1096_v55 = vand.u32 2147483647, %v1085_v33 }
 0xe5f   :  { %2682 = vpow2.f32 %v2505_v35 }
 0xe60   :  { %v1099_v23 = vor.u32 1.1754944e-38, %v1098_v53  ;;  %vm1097_vm0 = vcmp.eq.f32.partialorder %v1096_v55, 8.507059e+37 }
 0xe63   :  { %1444 = vrot.lane.b32.xlu1 %v3388_v36, %s3064_s23 }
 0xe64   :  { %v2681_v34 = vpop.eup %2680 }
 0xe65   :  { %v1088_v38 = vmul.f32 %v2681_v34, %v1085_v33  ;;  %v2683_v39 = vpop.eup %2682  ;;  %vm1093_vm13 = vweird.f32 %v2681_v34 }
 0xe66   :  { %v1086_v45 = vadd.f32 1.0, %v2683_v39  ;;  %vm1094_vm15 = vmor %vm1092_vm14, %vm1093_vm13 }
 0xe67   :  { %v1089_v29 = vsub.f32 1.0, %v1088_v38 }
 0xe68   :  { %2684 = vrcp.f32 %v1086_v45  ;;  %v1113_v4 = vand.u32 2147483648, %v1086_v45  ;;  %vm1107_vm2 = vweird.f32 %v1086_v45  ;;  %v1111_v10 = vand.u32 2147483647, %v1086_v45 }
 0xe69   :  { %v1090_v44 = vmul.f32 %v2681_v34, %v1089_v29  ;;  %2686 = vpow2.f32 %v2514_v51 }
 0xe6a   :  { %v1114_v12 = vor.u32 1.1754944e-38, %v1113_v4  ;;  %vm1112_vm4 = vcmp.eq.f32.partialorder %v1111_v10, 8.507059e+37 }
 0xe6b   :  { %v1091_v52 = vadd.f32 %v2681_v34, %v1090_v44 }
 0xe6d   :  { %v1095_v36 = vsel %vm1094_vm15, %v2681_v34, %v1091_v52 }
 0xe6e   :  { %v3436_v60 = vsel %vm1097_vm0, %v1099_v23, %v1095_v36  ;;  %v2685_v61 = vpop.eup %2684 }
 0xe6f   :  { %v2687_v49 = vpop.eup %2686  ;;  %v1103_v63 = vmul.f32 %v2685_v61, %v1086_v45  ;;  %vm1108_vm1 = vweird.f32 %v2685_v61  ;;  %v1125_v27 = vmul.f32 %v1121_v40, %v3436_v60 }
 0xe70   :  { %v1426_v62 = vadd.f32 1.0, %v2687_v49  ;;  %vm1109_vm3 = vmor %vm1107_vm2, %vm1108_vm1 }
 0xe71   :  { %v1104_v9 = vsub.f32 1.0, %v1103_v63 }
 0xe72   :  { %2688 = vrcp.f32 %v1426_v62  ;;  %v1438_v20 = vand.u32 2147483648, %v1426_v62  ;;  %vm1432_vm6 = vweird.f32 %v1426_v62  ;;  %v1436_v1 = vand.u32 2147483647, %v1426_v62 }
 0xe73   :  { %v1105_v2 = vmul.f32 %v2685_v61, %v1104_v9  ;;  %v3472_v9 = vld [vmem:[#allocation10 + $0x18] sm:$0xff] }
 0xe74   :  { %v1439_v22 = vor.u32 1.1754944e-38, %v1438_v20  ;;  %vm1437_vm8 = vcmp.eq.f32.partialorder %v1436_v1, 8.507059e+37  ;;  %1394 = vmatpush.msra.mxu3 %v3472_v9  ;;  %1481 = vmatpush.msra.mxu2 %v3472_v9 }
 0xe75   :  { %v1106_v3 = vadd.f32 %v2685_v61, %v1105_v2  ;;  %v3474_v2 = vld [vmem:[#allocation10 + $0x10] sm:$0xff]  ;;  %1896 = vmatpush.msra.mxu1 %v3472_v9 }
 0xe76   :  { %1395 = vmatpush.msra.mxu3 %v3474_v2  ;;  %1482 = vmatpush.msra.mxu2 %v3474_v2 }
 0xe77   :  { %v1110_v11 = vsel %vm1109_vm3, %v2685_v61, %v1106_v3  ;;  %v3484_v3 = vld [vmem:[#allocation10] sm:$0xff]  ;;  %1897 = vmatpush.msra.mxu1 %v3474_v2 }
 0xe78   :  { %v2689_v48 = vpop.eup %2688  ;;  %v1115_v15 = vsel %vm1112_vm4, %v1114_v12, %v1110_v11 }
 0xe79   :  { %v1428_v5 = vmul.f32 %v2689_v48, %v1426_v62  ;;  %vm1433_vm5 = vweird.f32 %v2689_v48  ;;  %v1126_v34 = vmul.f32 %v1122_v32, %v1115_v15 }
 0xe7a   :  { %vm1434_vm7 = vmor %vm1432_vm6, %vm1433_vm5 }
 0xe7b   :  { %v1429_v13 = vsub.f32 1.0, %v1428_v5 }
 0xe7d   :  { %v1430_v18 = vmul.f32 %v2689_v48, %v1429_v13 }
 0xe7f   :  { %v1431_v19 = vadd.f32 %v2689_v48, %v1430_v18 }
 0xe81   :  { %v1435_v21 = vsel %vm1434_vm7, %v2689_v48, %v1431_v19  ;;  %v3478_v48 = vld [vmem:[#allocation10 + $0x8] sm:$0xff] }
 0xe82   :  { %v1440_v25 = vsel %vm1437_vm8, %v1439_v22, %v1435_v21  ;;  %1396 = vmatpush.msra.mxu3 %v3478_v48  ;;  %1483 = vmatpush.msra.mxu2 %v3478_v48 }
 0xe83   :  { %1898 = vmatpush.msra.mxu1 %v3478_v48 }
 0xe84   :  { %1397 = vmatpush.msra.mxu3 %v3484_v3  ;;  %1484 = vmatpush.msra.mxu2 %v3484_v3 }
 0xe85   :  { %1899 = vmatpush.msra.mxu1 %v3484_v3 }
 0xea7   :  { %v1130_v57 = vpop.permute.xlu2 %1129 }
 0xea8   :  { %v1135_v14 = vmul.f32 %v1130_v57, %v3436_v60 }
 0xeaa   :  { %1139 = vrot.lane.b32.xlu2 %v1135_v14, %s3064_s23 }
 0xec0   :  { %v1132_v0 = vpop.permute.xlu0 %1131 }
 0xec1   :  { %v1136_v16 = vmul.f32 %v1132_v0, %v1115_v15 }
 0xec3   :  { %1141 = vrot.lane.b32.xlu0 %v1136_v16, %s3064_s23 }
 0xecd   :  { %v1450_v24 = vpop.permute.xlu1 %1449 }
 0xece   :  { %v1452_v26 = vmul.f32 %v1450_v24, %v1440_v25  ;;  %v610_v24 = vadd.f32 %v3379_v50, %v3342_v30 }
 0xed0   :  { %1454 = vrot.lane.b32.xlu2 %v1452_v26, %s3064_s23 }
 0xed5   :  { %v1445_v28 = vpop.permute.xlu1 %1444 }
 0xed6   :  { %v1447_v43 = vmul.f32 %v1445_v28, %v1440_v25 }
 0xf04   :  { %v1140_v41 = vpop.permute.xlu2 %1139 }
 0xf05   :  { %v3444_v54 = vadd.f32 %v1140_v41, %v1125_v27 }
 0xf07   :  { %2690 = vtanh.f32 %v3444_v54 }
 0xf0d   :  { %v2691_v42 = vpop.eup %2690 }
 0xf0e   :  { %1151 = vrot.lane.b32.xlu0 %v2691_v42, %s3062_s30 }
 0xf16   :  { %1020 = vrot.lane.b32.xlu0 %v3411_v6, %s3064_s23 }
 0xf1e   :  { %1378 = vrot.lane.b32.xlu0 %v3404_v58, %s3064_s23 }
 0xf2a   :  { %v1455_v31 = vpop.permute.xlu2 %1454 }
 0xf2b   :  { %v3452_v46 = vadd.f32 %v1455_v31, %v1447_v43 }
 0xf2d   :  { %2692 = vtanh.f32 %v3452_v46 }
 0xf33   :  { %v2693_v33 = vpop.eup %2692 }
 0xf34   :  { %1460 = vrot.lane.b32.xlu2 %v2693_v33, %s3062_s30 }
 0xf35   :  { %v1142_v35 = vpop.permute.xlu0 %1141 }
 0xf36   :  { %v3457_v38 = vadd.f32 %v1142_v35, %v1126_v34 }
 0xf38   :  { %2694 = vtanh.f32 %v3457_v38 }
 0xf3e   :  { %v2695_v6 = vpop.eup %2694 }
 0xf3f   :  { %1153 = vrot.lane.b32.xlu1 %v2695_v6, %s3062_s30 }
 0xf80   :  { %v1152_v58 = vpop.permute.xlu0 %1151 }
 0xf81   :  { %v1157_v39 = vmul.f32 %v1152_v58, %v3436_v60 }
 0xf83   :  { %v1188_v44 = vpack.c.bf16 %v1157_v39, %v1157_v39  ;;  %v1161_v51 = vrot.slane %v1157_v39, 6 }
 0xf85   :  { %v1192_v52 = vunpack.c.l.b16 %v1188_v44 }
 0xf87   :  { %v1194_v14 = vrot.slane %v1192_v52, 6 }
 0xf88   :  { %v1021_v29 = vpop.permute.xlu0 %1020 }
 0xf89   :  { %2502 = vmatmul.msk.f32.vlgmr.msra.gmra.mxu0 %vm301_vm10, %v1021_v29 }
 0xf8a   :  { %1564 = vmatpush.msra.mxu0 %v3472_v9 }
 0xf8c   :  { %1565 = vmatpush.msra.mxu0 %v3474_v2 }
 0xf8e   :  { %v1461_v36 = vpop.permute.xlu2 %1460  ;;  %1566 = vmatpush.msra.mxu0 %v3478_v48 }
 0xf8f   :  { %v3465_v49 = vmul.f32 %v1461_v36, %v1440_v25 }
 0xf90   :  { %1567 = vmatpush.msra.mxu0 %v3484_v3  ;;  %v1379_v10 = vpop.permute.xlu0 %1378 }
 0xf91   :  { %v1489_v63 = vpack.c.bf16 %v3465_v49, %v3465_v49 }
 0xfb1   :  { %v1154_v56 = vpop.permute.xlu1 %1153 }
 0xfb2   :  { %v1158_v45 = vmul.f32 %v1154_v56, %v1115_v15 }
 0xfb4   :  { %v1162_v53 = vrot.slane %v1158_v45, 5  ;;  %v1189_v55 = vpack.c.bf16 %v1158_v45, %v1158_v45 }
 0xfb6   :  { %v1193_v23 = vunpack.c.l.b16 %v1189_v55  ;;  %v1163_v57 = vsel %vm297_vm9, %v1162_v53, %v1161_v51 }
 0xfb7   :  { %1164 = vrot.lane.b32.xlu1 %v1163_v57, %s3064_s23 }
 0xfb8   :  { %v1195_v61 = vrot.slane %v1193_v23, 5 }
 0xfba   :  { %v1196_v62 = vsel %vm297_vm9, %v1195_v61, %v1194_v14 }
 0xfbb   :  { %v1197_v60 = vpack.c.b16 %v1196_v62, %v1196_v62 }
 0xfbd   :  { %1198 = vrot.lane.b32.xlu2 %v1197_v60, %s3064_s23 }
 0xfbf   :  { %1491 = vrot.lane.b32.xlu1 %v1489_v63, %s3064_s23 }
0x1006   :  { %v3512_v12 = vpop.f32.mrf.mxu0 }
0x1017   :  { %v1199_v4 = vpop.permute.xlu2 %1198 }
0x1018   :  { %2507 = vmatmul.msk.bf16.vlgmr.msrb.gmra.mxu0 %vm301_vm10, %v1199_v4 }
0x1019   :  { %1647 = vmatpush.msrb.mxu0 %v3472_v9 }
0x101b   :  { %1648 = vmatpush.msrb.mxu0 %v3474_v2 }
0x101d   :  { %1649 = vmatpush.msrb.mxu0 %v3478_v48 }
0x101f   :  { %1650 = vmatpush.msrb.mxu0 %v3484_v3 }
0x1029   :  { %v1165_v5 = vpop.permute.xlu1 %1164 }
0x102a   :  { %2506 = vmatmul.msk.f32.vlgmr.msrb.gmra.mxu3 %vm301_vm10, %v1165_v5 }
0x102b   :  { %1502 = vmatpush.bf16.msrb.mxu3 %v3415_v17 }
0x102f   :  { %1503 = vmatpush.bf16.msrb.mxu3 %v3418_v47 }
0x1031   :  { %v1492_v11 = vpop.permute.xlu1 %1491 }
0x1032   :  { %2512 = vmatmul.msk.f32.vlgmr.msra.gmra.mxu3 %vm301_vm10, %v1379_v10 }
0x1033   :  { %1730 = vmatpush.msra.mxu3 %v3472_v9 }
0x1035   :  { %1731 = vmatpush.msra.mxu3 %v3474_v2 }
0x1037   :  { %1732 = vmatpush.msra.mxu3 %v3478_v48 }
0x1039   :  { %1733 = vmatpush.msra.mxu3 %v3484_v3 }
0x103a   :  { %2516 = vmatmul.msk.bf16.vlgmr.msrb.gmra.mxu3 %vm301_vm10, %v1492_v11 }
0x103b   :  { %1834 = vmatpush.bf16.msrb.mxu3 %v3415_v17 }
0x103f   :  { %1835 = vmatpush.bf16.msrb.mxu3 %v3418_v47 }
0x1095   :  { %v1212_v13 = vpop.f32.mrf.mxu0 }
0x1096   :  { %v1217_v0 = vrot.slane %v1212_v13, 1  ;;  %v1218_v15 = vrot.slane %v1212_v13, 2 }
0x1098   :  { %v1221_v16 = vadd.f32 %v1217_v0, %v3187_v8  ;;  %v1222_v18 = vadd.f32 %v1218_v15, %v3184_v7 }
0x109a   :  { %2696 = vtanh.f32 %v1221_v16  ;;  %v2508_v40 = vmul.f32 -1.442695, %v1221_v16  ;;  %v2509_v28 = vmul.f32 -1.442695, %v1222_v18 }
0x109b   :  { %2698 = vtanh.f32 %v1222_v18 }
0x109d   :  { %v1214_v19 = vpop.f32.mrf.mxu0 }
0x10a0   :  { %v2697_v20 = vpop.eup %2696 }
0x10a1   :  { %v2699_v1 = vpop.eup %2698  ;;  %1273 = vrot.lane.b32.xlu2 %v2697_v20, %s3062_s30 }
0x10a2   :  { %1275 = vrot.lane.b32.xlu0 %v2699_v1, %s3062_s30 }
0x10ad   :  { %v3518_v21 = vpop.f32.mrf.mxu3 }
0x10b5   :  { %v3520_v22 = vpop.f32.mrf.mxu3 }
0x10bd   :  { %v1505_v25 = vpop.f32.mrf.mxu3 }
0x10be   :  { %v1509_v8 = vadd.f32 %v1505_v25, %v610_v24 }
0x10c0   :  { %2700 = vtanh.f32 %v1509_v8  ;;  %v2517_v55 = vmul.f32 -1.442695, %v1509_v8  ;;  %v1265_v8 = vrot.slane %v3444_v54, 7 }
0x10c1   :  { %2702 = vpow2.f32 %v2508_v40 }
0x10c5   :  { %v1507_v7 = vpop.f32.mrf.mxu3 }
0x10c6   :  { %v2701_v26 = vpop.eup %2700 }
0x10c7   :  { %1532 = vrot.lane.b32.xlu1 %v2701_v26, %s3062_s30  ;;  %v2703_v27 = vpop.eup %2702 }
0x10c8   :  { %v1229_v41 = vadd.f32 1.0, %v2703_v27 }
0x10ca   :  { %2704 = vrcp.f32 %v1229_v41  ;;  %v1242_v35 = vand.u32 2147483648, %v1229_v41  ;;  %vm1236_vm12 = vweird.f32 %v1229_v41  ;;  %v1240_v6 = vand.u32 2147483647, %v1229_v41 }
0x10cb   :  { %2706 = vpow2.f32 %v2509_v28 }
0x10cc   :  { %v1243_v29 = vor.u32 1.1754944e-38, %v1242_v35  ;;  %vm1241_vm14 = vcmp.eq.f32.partialorder %v1240_v6, 8.507059e+37 }
0x10d0   :  { %v2705_v42 = vpop.eup %2704 }
0x10d1   :  { %v1232_v43 = vmul.f32 %v2705_v42, %v1229_v41  ;;  %v2707_v33 = vpop.eup %2706  ;;  %vm1237_vm11 = vweird.f32 %v2705_v42  ;;  %v1266_v41 = vrot.slane %v3457_v38, 7 }
0x10d2   :  { %v1230_v30 = vadd.f32 1.0, %v2707_v33  ;;  %vm1238_vm13 = vmor %vm1236_vm12, %vm1237_vm11 }
0x10d3   :  { %v1233_v31 = vsub.f32 1.0, %v1232_v43 }
0x10d4   :  { %2708 = vrcp.f32 %v1230_v30  ;;  %v1257_v23 = vand.u32 2147483648, %v1230_v30  ;;  %vm1251_vm0 = vweird.f32 %v1230_v30  ;;  %v1255_v57 = vand.u32 2147483647, %v1230_v30 }
0x10d5   :  { %v1234_v32 = vmul.f32 %v2705_v42, %v1233_v31  ;;  %2710 = vpow2.f32 %v2517_v55  ;;  %v754_v55 = vadd.f32 %v3379_v50, %v3372_v37 }
0x10d6   :  { %v1258_v61 = vor.u32 1.1754944e-38, %v1257_v23  ;;  %vm1256_vm2 = vcmp.eq.f32.partialorder %v1255_v57, 8.507059e+37 }
0x10d7   :  { %v1235_v34 = vadd.f32 %v2705_v42, %v1234_v32 }
0x10d9   :  { %v1239_v58 = vsel %vm1238_vm13, %v2705_v42, %v1235_v34 }
0x10da   :  { %v3525_v44 = vsel %vm1241_vm14, %v1243_v29, %v1239_v58  ;;  %v2709_v45 = vpop.eup %2708 }
0x10db   :  { %v1247_v51 = vmul.f32 %v2709_v45, %v1230_v30  ;;  %vm1252_vm15 = vweird.f32 %v2709_v45  ;;  %v2711_v4 = vpop.eup %2710  ;;  %v1269_v7 = vmul.f32 %v1265_v8, %v3525_v44 }
0x10dc   :  { %vm1253_vm1 = vmor %vm1251_vm0, %vm1252_vm15  ;;  %v1513_v5 = vadd.f32 1.0, %v2711_v4 }
0x10dd   :  { %v1248_v52 = vsub.f32 1.0, %v1247_v51 }
0x10de   :  { %2712 = vrcp.f32 %v1513_v5  ;;  %v1525_v16 = vand.u32 2147483648, %v1513_v5  ;;  %vm1519_vm4 = vweird.f32 %v1513_v5  ;;  %v1523_v18 = vand.u32 2147483647, %v1513_v5 }
0x10df   :  { %v1249_v53 = vmul.f32 %v2709_v45, %v1248_v52 }
0x10e0   :  { %v1526_v20 = vor.u32 1.1754944e-38, %v1525_v16  ;;  %vm1524_vm6 = vcmp.eq.f32.partialorder %v1523_v18, 8.507059e+37 }
0x10e1   :  { %v1250_v36 = vadd.f32 %v2709_v45, %v1249_v53 }
0x10e3   :  { %v1254_v14 = vsel %vm1253_vm1, %v2709_v45, %v1250_v36 }
0x10e4   :  { %v1259_v60 = vsel %vm1256_vm2, %v1258_v61, %v1254_v14  ;;  %v2713_v10 = vpop.eup %2712 }
0x10e5   :  { %v1515_v11 = vmul.f32 %v2713_v10, %v1513_v5  ;;  %vm1520_vm3 = vweird.f32 %v2713_v10  ;;  %v1270_v42 = vmul.f32 %v1266_v41, %v1259_v60 }
0x10e6   :  { %vm1521_vm5 = vmor %vm1519_vm4, %vm1520_vm3 }
0x10e7   :  { %v1516_v13 = vsub.f32 1.0, %v1515_v11 }
0x10e9   :  { %v1517_v0 = vmul.f32 %v2713_v10, %v1516_v13 }
0x10eb   :  { %v1518_v15 = vadd.f32 %v2713_v10, %v1517_v0 }
0x10ed   :  { %v1522_v19 = vsel %vm1521_vm5, %v2713_v10, %v1518_v15 }
0x10ee   :  { %v1527_v24 = vsel %vm1524_vm6, %v1526_v20, %v1522_v19 }
0x10ef   :  { %v1530_v54 = vmul.f32 %v1527_v24, %v3452_v46 }
0x10fb   :  { %v1274_v39 = vpop.permute.xlu2 %1273 }
0x10fc   :  { %v1279_v56 = vmul.f32 %v1274_v39, %v3525_v44 }
0x10fe   :  { %1283 = vrot.lane.b32.xlu2 %v1279_v56, %s3064_s23 }
0x1114   :  { %v1276_v62 = vpop.permute.xlu0 %1275 }
0x1115   :  { %v1280_v63 = vmul.f32 %v1276_v62, %v1259_v60 }
0x1117   :  { %1285 = vrot.lane.b32.xlu0 %v1280_v63, %s3064_s23 }
0x1139   :  { %v1533_v1 = vpop.permute.xlu1 %1532 }
0x113a   :  { %v1535_v25 = vmul.f32 %v1533_v1, %v1527_v24 }
0x113c   :  { %1537 = vrot.lane.b32.xlu1 %v1535_v25, %s3064_s23 }
0x1158   :  { %v1284_v26 = vpop.permute.xlu2 %1283 }
0x1159   :  { %v1289_v40 = vadd.f32 %v1284_v26, %v1269_v7 }
0x115b   :  { %2714 = vtanh.f32 %v1289_v40 }
0x1161   :  { %v2715_v27 = vpop.eup %2714 }
0x1162   :  { %1295 = vrot.lane.b32.xlu2 %v2715_v27, %s3062_s30  ;;  %v898_v27 = vadd.f32 %v3379_v50, %v3425_v59 }
0x1189   :  { %v1286_v28 = vpop.permute.xlu0 %1285 }
0x118a   :  { %v1290_v43 = vadd.f32 %v1286_v28, %v1270_v42 }
0x118c   :  { %2716 = vtanh.f32 %v1290_v43 }
0x1192   :  { %v2717_v31 = vpop.eup %2716 }
0x1193   :  { %1297 = vrot.lane.b32.xlu0 %v2717_v31, %s3062_s30 }
0x119b   :  { %1465 = vrot.lane.b32.xlu0 %v3465_v49, %s3064_s23 }
0x11ae   :  { %v1538_v32 = vpop.permute.xlu1 %1537 }
0x11af   :  { %v1540_v33 = vadd.f32 %v1538_v32, %v1530_v54 }
0x11b1   :  { %2718 = vtanh.f32 %v1540_v33 }
0x11b7   :  { %v2719_v30 = vpop.eup %2718 }
0x11b8   :  { %1543 = vrot.lane.b32.xlu1 %v2719_v30, %s3062_s30 }
0x11bc   :  { %v1296_v34 = vpop.permute.xlu2 %1295 }
0x11bd   :  { %v1301_v38 = vmul.f32 %v1296_v34, %v3525_v44 }
0x11bf   :  { %v1305_v58 = vrot.slane %v1301_v38, 7 }
0x1205   :  { %v1298_v35 = vpop.permute.xlu0 %1297 }
0x1206   :  { %v1302_v6 = vmul.f32 %v1298_v35, %v1259_v60 }
0x1208   :  { %v1306_v29 = vrot.slane %v1302_v6, 6 }
0x120a   :  { %v1307_v39 = vsel %vm297_vm9, %v1306_v29, %v1305_v58 }
0x120b   :  { %1308 = vrot.lane.b32.xlu2 %v1307_v39, %s3064_s23 }
0x120d   :  { %v1466_v44 = vpop.permute.xlu0 %1465 }
0x122a   :  { %v1544_v49 = vpop.permute.xlu1 %1543 }
0x122b   :  { %v3543_v56 = vmul.f32 %v1544_v49, %v1527_v24 }
0x122d   :  { %v1572_v46 = vpack.c.bf16 %v3543_v56, %v3543_v56 }
0x122f   :  { %1574 = vrot.lane.b32.xlu1 %v1572_v46, %s3064_s23 }
0x1265   :  { %v1309_v45 = vpop.permute.xlu2 %1308 }
0x1266   :  { %2510 = vmatmul.msk.f32.vlgmr.msrb.gmra.mxu2 %vm301_vm10, %v1309_v45 }
0x1267   :  { %1585 = vmatpush.bf16.msrb.mxu2 %v3415_v17 }
0x126b   :  { %1586 = vmatpush.bf16.msrb.mxu2 %v3418_v47 }
0x126e   :  { %2515 = vmatmul.msk.f32.vlgmr.msra.gmra.mxu2 %vm301_vm10, %v1466_v44 }
0x126f   :  { %1813 = vmatpush.msra.mxu2 %v3472_v9 }
0x1271   :  { %1814 = vmatpush.msra.mxu2 %v3474_v2 }
0x1273   :  { %1815 = vmatpush.msra.mxu2 %v3478_v48 }
0x1275   :  { %1816 = vmatpush.msra.mxu2 %v3484_v3 }
0x12a1   :  { %v1575_v51 = vpop.permute.xlu1 %1574 }
0x12a2   :  { %2519 = vmatmul.msk.bf16.vlgmr.msrb.gmra.mxu2 %vm301_vm10, %v1575_v51 }
0x12a3   :  { %1917 = vmatpush.bf16.msrb.mxu2 %v3415_v17 }
0x12a7   :  { %1918 = vmatpush.bf16.msrb.mxu2 %v3418_v47 }
0x12e9   :  { %v3559_v52 = vpop.f32.mrf.mxu2 }
0x12f1   :  { %v3561_v53 = vpop.f32.mrf.mxu2 }
0x1325   :  { %v1588_v36 = vpop.f32.mrf.mxu2 }
0x1326   :  { %v1592_v23 = vadd.f32 %v1588_v36, %v754_v55 }
0x1328   :  { %2720 = vtanh.f32 %v1592_v23  ;;  %v2520_v61 = vmul.f32 -1.442695, %v1592_v23 }
0x132a   :  { %2722 = vpow2.f32 %v2520_v61 }
0x132d   :  { %v1590_v57 = vpop.f32.mrf.mxu2 }
0x132e   :  { %v2721_v14 = vpop.eup %2720 }
0x132f   :  { %1615 = vrot.lane.b32.xlu2 %v2721_v14, %s3062_s30 }
0x1330   :  { %v2723_v62 = vpop.eup %2722 }
0x1331   :  { %v1596_v60 = vadd.f32 1.0, %v2723_v62 }
0x1333   :  { %2724 = vrcp.f32 %v1596_v60  ;;  %v1608_v13 = vand.u32 2147483648, %v1596_v60  ;;  %vm1602_vm7 = vweird.f32 %v1596_v60  ;;  %v1606_v37 = vand.u32 2147483647, %v1596_v60 }
0x1335   :  { %v1609_v15 = vor.u32 1.1754944e-38, %v1608_v13  ;;  %vm1607_vm11 = vcmp.eq.f32.partialorder %v1606_v37, 8.507059e+37 }
0x1339   :  { %v2725_v63 = vpop.eup %2724 }
0x133a   :  { %v1598_v4 = vmul.f32 %v2725_v63, %v1596_v60  ;;  %vm1603_vm9 = vweird.f32 %v2725_v63 }
0x133b   :  { %vm1604_vm8 = vmor %vm1602_vm7, %vm1603_vm9 }
0x133c   :  { %v1599_v5 = vsub.f32 1.0, %v1598_v4 }
0x133e   :  { %v1600_v10 = vmul.f32 %v2725_v63, %v1599_v5 }
0x1340   :  { %v1601_v11 = vadd.f32 %v2725_v63, %v1600_v10 }
0x1342   :  { %v1605_v0 = vsel %vm1604_vm8, %v2725_v63, %v1601_v11 }
0x1343   :  { %v1610_v18 = vsel %vm1607_vm11, %v1609_v15, %v1605_v0 }
0x1344   :  { %v1613_v20 = vmul.f32 %v1610_v18, %v1540_v33 }
0x1389   :  { %v1616_v16 = vpop.permute.xlu2 %1615 }
0x138a   :  { %v1618_v19 = vmul.f32 %v1616_v16, %v1610_v18 }
0x138c   :  { %1620 = vrot.lane.b32.xlu0 %v1618_v19, %s3064_s23 }
0x13fe   :  { %v1621_v1 = vpop.permute.xlu0 %1620 }
0x13ff   :  { %v1623_v24 = vadd.f32 %v1621_v1, %v1613_v20 }
0x1401   :  { %2726 = vtanh.f32 %v1623_v24 }
0x1407   :  { %v2727_v25 = vpop.eup %2726 }
0x1408   :  { %1626 = vrot.lane.b32.xlu1 %v2727_v25, %s3062_s30 }
0x147a   :  { %v1627_v8 = vpop.permute.xlu1 %1626 }
0x147b   :  { %v1629_v7 = vmul.f32 %v1627_v8, %v1610_v18 }
0x147d   :  { %v1655_v26 = vpack.c.bf16 %v1629_v7, %v1629_v7 }
0x147f   :  { %1657 = vrot.lane.b32.xlu2 %v1655_v26, %s3064_s23  ;;  %v3610_v26 = vld [vmem:[%s3740_s9] ss:$0 sm:$0xff] }
0x14d9   :  { %v1658_v40 = vpop.permute.xlu2 %1657 }
0x14da   :  { %2522 = vmatmul.msk.bf16.vlgmr.msrb.gmra.mxu1 %vm301_vm10, %v1658_v40 }
0x1557   :  { %v1671_v41 = vpop.f32.mrf.mxu1 }
0x1558   :  { %v1675_v42 = vadd.f32 %v1671_v41, %v898_v27  ;;  %v1400_v41 = vadd.f32 %v3610_v26, %v3520_v22 }
0x155a   :  { %2728 = vtanh.f32 %v1675_v42  ;;  %v2523_v31 = vmul.f32 -1.442695, %v1675_v42 }
0x155c   :  { %2730 = vpow2.f32 %v2523_v31 }
0x155f   :  { %v1673_v28 = vpop.f32.mrf.mxu1 }
0x1560   :  { %v2729_v43 = vpop.eup %2728 }
0x1561   :  { %1698 = vrot.lane.b32.xlu0 %v2729_v43, %s3062_s30 }
0x1562   :  { %v2731_v54 = vpop.eup %2730 }
0x1563   :  { %v1679_v32 = vadd.f32 1.0, %v2731_v54 }
0x1565   :  { %2732 = vrcp.f32 %v1679_v32  ;;  %v1691_v59 = vand.u32 2147483648, %v1679_v32  ;;  %vm1685_vm13 = vweird.f32 %v1679_v32  ;;  %v1689_v35 = vand.u32 2147483647, %v1679_v32 }
0x1567   :  { %v1692_v58 = vor.u32 1.1754944e-38, %v1691_v59  ;;  %vm1690_vm15 = vcmp.eq.f32.partialorder %v1689_v35, 8.507059e+37 }
0x1569   :  { %1548 = vrot.lane.b32.xlu0 %v3543_v56, %s3064_s23 }
0x156b   :  { %v2733_v33 = vpop.eup %2732 }
0x156c   :  { %v1681_v30 = vmul.f32 %v2733_v33, %v1679_v32  ;;  %vm1686_vm12 = vweird.f32 %v2733_v33 }
0x156d   :  { %vm1687_vm14 = vmor %vm1685_vm13, %vm1686_vm12 }
0x156e   :  { %v1682_v34 = vsub.f32 1.0, %v1681_v30 }
0x1570   :  { %v1683_v38 = vmul.f32 %v2733_v33, %v1682_v34  ;;  %v2534_v34 = vmul.f32 -1.442695, %v1400_v41 }
0x1572   :  { %v1684_v50 = vadd.f32 %v2733_v33, %v1683_v38 }
0x1574   :  { %v1688_v6 = vsel %vm1687_vm14, %v2733_v33, %v1684_v50 }
0x1575   :  { %v1693_v39 = vsel %vm1690_vm15, %v1692_v58, %v1688_v6 }
0x1576   :  { %v1696_v46 = vmul.f32 %v1693_v39, %v1623_v24 }
0x15d3   :  { %v1699_v29 = vpop.permute.xlu0 %1698 }
0x15d4   :  { %v1701_v49 = vmul.f32 %v1699_v29, %v1693_v39 }
0x15d6   :  { %1703 = vrot.lane.b32.xlu1 %v1701_v49, %s3064_s23 }
0x15db   :  { %v1549_v56 = vpop.permute.xlu0 %1548 }
0x15dc   :  { %2518 = vmatmul.msk.f32.vlgmr.msra.gmra.mxu0 %vm301_vm10, %v1549_v56 }
0x15dd   :  { %1751 = vmatpush.bf16.msra.mxu0 %v3415_v17 }
0x15de   :  { %1631 = vrot.lane.b32.xlu1 %v1629_v7, %s3064_s23 }
0x15e1   :  { %1752 = vmatpush.bf16.msra.mxu0 %v3418_v47 }
0x1648   :  { %v1704_v45 = vpop.permute.xlu1 %1703 }
0x1649   :  { %v1706_v44 = vadd.f32 %v1704_v45, %v1696_v46 }
0x164b   :  { %2734 = vtanh.f32 %v1706_v44 }
0x1650   :  { %v1632_v51 = vpop.permute.xlu1 %1631 }
0x1651   :  { %v2735_v55 = vpop.eup %2734  ;;  %2521 = vmatmul.msk.f32.vlgmr.msrb.gmra.mxu0 %vm301_vm10, %v1632_v51 }
0x1652   :  { %1709 = vrot.lane.b32.xlu2 %v2735_v55, %s3062_s30  ;;  %1979 = vmatpush.msrb.mxu0 %v3472_v9  ;;  %v3595_v9 = vld [vmem:[%s3737_s6] ss:$0 sm:$0xff] }
0x1653   :  { %v1186_v54 = vadd.f32 %v3595_v9, %v3518_v21 }
0x1654   :  { %1980 = vmatpush.msrb.mxu0 %v3474_v2  ;;  %v1042_v2 = vadd.f32 %v3595_v9, %v3512_v12 }
0x1656   :  { %1981 = vmatpush.msrb.mxu0 %v3478_v48 }
0x1658   :  { %1982 = vmatpush.msrb.mxu0 %v3484_v3 }
0x1659   :  { %v3588_v57 = vpop.f32.mrf.mxu0 }
0x16ac   :  { %v1710_v17 = vpop.permute.xlu2 %1709 }
0x16ad   :  { %v1712_v47 = vmul.f32 %v1710_v17, %v1693_v39 }
0x16af   :  { %v1738_v36 = vpack.c.bf16 %v1712_v47, %v1712_v47 }
0x16b1   :  { %1740 = vrot.lane.b32.xlu2 %v1738_v36, %s3064_s23 }
0x16ce   :  { %v3590_v14 = vpop.f32.mrf.mxu0 }
0x170b   :  { %v1741_v23 = vpop.permute.xlu2 %1740 }
0x170c   :  { %2525 = vmatmul.msk.bf16.vlgmr.msra.gmra.mxu0 %vm301_vm10, %v1741_v23 }
0x1789   :  { %v1754_v48 = vpop.f32.mrf.mxu0 }
0x178a   :  { %v1758_v3 = vadd.f32 %v1754_v48, %v1042_v2 }
0x178c   :  { %2736 = vtanh.f32 %v1758_v3  ;;  %v2526_v60 = vmul.f32 -1.442695, %v1758_v3 }
0x178e   :  { %2738 = vpow2.f32 %v2526_v60 }
0x1791   :  { %v1756_v61 = vpop.f32.mrf.mxu0 }
0x1792   :  { %v2737_v62 = vpop.eup %2736 }
0x1793   :  { %1781 = vrot.lane.b32.xlu0 %v2737_v62, %s3062_s30 }
0x1794   :  { %v2739_v63 = vpop.eup %2738 }
0x1795   :  { %v1762_v4 = vadd.f32 1.0, %v2739_v63 }
0x1797   :  { %2740 = vrcp.f32 %v1762_v4  ;;  %v1774_v12 = vand.u32 2147483648, %v1762_v4  ;;  %vm1768_vm1 = vweird.f32 %v1762_v4  ;;  %v1772_v0 = vand.u32 2147483647, %v1762_v4 }
0x1799   :  { %v1775_v16 = vor.u32 1.1754944e-38, %v1774_v12  ;;  %vm1773_vm3 = vcmp.eq.f32.partialorder %v1772_v0, 8.507059e+37 }
0x179b   :  { %1714 = vrot.lane.b32.xlu0 %v1712_v47, %s3064_s23 }
0x179d   :  { %v2741_v5 = vpop.eup %2740 }
0x179e   :  { %v1764_v10 = vmul.f32 %v2741_v5, %v1762_v4  ;;  %vm1769_vm0 = vweird.f32 %v2741_v5 }
0x179f   :  { %vm1770_vm2 = vmor %vm1768_vm1, %vm1769_vm0 }
0x17a0   :  { %v1765_v11 = vsub.f32 1.0, %v1764_v10 }
0x17a2   :  { %v1766_v13 = vmul.f32 %v2741_v5, %v1765_v11 }
0x17a4   :  { %v1767_v37 = vadd.f32 %v2741_v5, %v1766_v13 }
0x17a6   :  { %v1771_v15 = vsel %vm1770_vm2, %v2741_v5, %v1767_v37 }
0x17a7   :  { %v1776_v19 = vsel %vm1773_vm3, %v1775_v16, %v1771_v15 }
0x17a8   :  { %v1779_v24 = vmul.f32 %v1776_v19, %v1706_v44 }
0x1805   :  { %v1782_v18 = vpop.permute.xlu0 %1781 }
0x1806   :  { %v1784_v20 = vmul.f32 %v1782_v18, %v1776_v19 }
0x1808   :  { %1786 = vrot.lane.b32.xlu1 %v1784_v20, %s3064_s23  ;;  %v1989_v20 = vld [vmem:[#allocation12 + $0x10] sm:$0xff] }
0x180d   :  { %v1715_v1 = vpop.permute.xlu0 %1714 }
0x180e   :  { %2524 = vmatmul.msk.f32.vlgmr.msra.gmra.mxu3 %vm301_vm10, %v1715_v1  ;;  %v1990_v1 = vld [vmem:[#allocation12 + $0x18] sm:$0xff] }
0x187a   :  { %v1787_v25 = vpop.permute.xlu1 %1786 }
0x187b   :  { %v3603_v8 = vadd.f32 %v1787_v25, %v1779_v24  ;;  %v3638_v24 = vpack.c.bf16 %v1990_v1, %v1989_v20  ;;  %v1987_v25 = vld [vmem:[#allocation12] sm:$0xff] }
0x187d   :  { %2742 = vtanh.f32 %v3603_v8  ;;  %2037 = vmatpush.bf16.msrb.mxu1 %v3638_v24  ;;  %2099 = vmatpush.bf16.msra.mxu3 %v3638_v24 }
0x187e   :  { %2744 = vtanh.f32 %v1400_v41  ;;  %2157 = vmatpush.bf16.msra.mxu0 %v3638_v24 }
0x1883   :  { %v2743_v7 = vpop.eup %2742 }
0x1884   :  { %1792 = vrot.lane.b32.xlu2 %v2743_v7, %s3062_s30  ;;  %v2745_v28 = vpop.eup %2744 }
0x1891   :  { %v3621_v31 = vpop.f32.mrf.mxu3 }
0x18de   :  { %v1793_v40 = vpop.permute.xlu2 %1792 }
0x18df   :  { %v3612_v27 = vmul.f32 %v1793_v40, %v1776_v19 }
0x18e1   :  { %v1821_v42 = vpack.c.bf16 %v3612_v27, %v3612_v27 }
0x18e3   :  { %1823 = vrot.lane.b32.xlu1 %v1821_v42, %s3064_s23 }
0x18eb   :  { %2014 = vrot.lane.b32.xlu1 %v2745_v28, %s3062_s30 }
0x1955   :  { %v1824_v43 = vpop.permute.xlu1 %1823 }
0x1956   :  { %2528 = vmatmul.msk.bf16.vlgmr.msrb.gmra.mxu3 %vm301_vm10, %v1824_v43  ;;  %v1487_v43 = vadd.f32 %v3610_v26, %v3561_v53 }
0x195d   :  { %v2015_v48 = vpop.permute.xlu1 %2014 }
0x19d9   :  { %v1837_v32 = vpop.f32.mrf.mxu3 }
0x19da   :  { %v1841_v33 = vadd.f32 %v1837_v32, %v1186_v54 }
0x19dc   :  { %2746 = vtanh.f32 %v1841_v33  ;;  %v2529_v38 = vmul.f32 -1.442695, %v1841_v33 }
0x19dd   :  { %2748 = vpow2.f32 %v2534_v34 }
0x19de   :  { %2750 = vpow2.f32 %v2529_v38 }
0x19e1   :  { %v1839_v22 = vpop.f32.mrf.mxu3 }
0x19e2   :  { %v2747_v30 = vpop.eup %2746 }
0x19e3   :  { %1864 = vrot.lane.b32.xlu2 %v2747_v30, %s3062_s30  ;;  %v2749_v50 = vpop.eup %2748 }
0x19e4   :  { %v2751_v59 = vpop.eup %2750  ;;  %v1996_v35 = vadd.f32 1.0, %v2749_v50 }
0x19e5   :  { %v1845_v6 = vadd.f32 1.0, %v2751_v59 }
0x19e6   :  { %2752 = vrcp.f32 %v1996_v35  ;;  %v2008_v51 = vand.u32 2147483648, %v1996_v35  ;;  %vm2002_vm6 = vweird.f32 %v1996_v35  ;;  %v2006_v17 = vand.u32 2147483647, %v1996_v35 }
0x19e7   :  { %2754 = vrcp.f32 %v1845_v6  ;;  %v1857_v47 = vand.u32 2147483648, %v1845_v6  ;;  %vm1851_vm7 = vweird.f32 %v1845_v6  ;;  %v1855_v36 = vand.u32 2147483647, %v1845_v6 }
0x19e8   :  { %v2009_v2 = vor.u32 1.1754944e-38, %v2008_v51  ;;  %vm2007_vm11 = vcmp.eq.f32.partialorder %v2006_v17, 8.507059e+37 }
0x19e9   :  { %v1858_v61 = vor.u32 1.1754944e-38, %v1857_v47  ;;  %vm1856_vm12 = vcmp.eq.f32.partialorder %v1855_v36, 8.507059e+37 }
0x19ec   :  { %v2753_v58 = vpop.eup %2752 }
0x19ed   :  { %v2755_v29 = vpop.eup %2754  ;;  %v1998_v21 = vmul.f32 %v2753_v58, %v1996_v35  ;;  %vm2003_vm4 = vweird.f32 %v2753_v58 }
0x19ee   :  { %v1847_v39 = vmul.f32 %v2755_v29, %v1845_v6  ;;  %vm1852_vm5 = vweird.f32 %v2755_v29  ;;  %vm2004_vm9 = vmor %vm2002_vm6, %vm2003_vm4 }
0x19ef   :  { %v1999_v49 = vsub.f32 1.0, %v1998_v21  ;;  %vm1853_vm8 = vmor %vm1851_vm7, %vm1852_vm5 }
0x19f0   :  { %v1848_v56 = vsub.f32 1.0, %v1847_v39 }
0x19f1   :  { %v2000_v46 = vmul.f32 %v2753_v58, %v1999_v49 }
0x19f2   :  { %v1849_v45 = vmul.f32 %v2755_v29, %v1848_v56 }
0x19f3   :  { %v2001_v44 = vadd.f32 %v2753_v58, %v2000_v46 }
0x19f4   :  { %v1850_v55 = vadd.f32 %v2755_v29, %v1849_v45 }
0x19f5   :  { %v2005_v23 = vsel %vm2004_vm9, %v2753_v58, %v2001_v44 }
0x19f6   :  { %v1854_v3 = vsel %vm1853_vm8, %v2755_v29, %v1850_v55  ;;  %v2010_v62 = vsel %vm2007_vm11, %v2009_v2, %v2005_v23 }
0x19f7   :  { %v2017_v60 = vmul.f32 %v2015_v48, %v2010_v62  ;;  %v1859_v4 = vsel %vm1856_vm12, %v1858_v61, %v1854_v3  ;;  %v1330_v3 = vadd.f32 %v3595_v9, %v3559_v52 }
0x19f8   :  { %v1862_v11 = vmul.f32 %v1859_v4, %v3603_v8  ;;  %v1988_v8 = vld [vmem:[#allocation12 + $0x8] sm:$0xff] }
0x19f9   :  { %2756 = vtanh.f32 %v2017_v60  ;;  %v3641_v7 = vpack.c.bf16 %v1988_v8, %v1987_v25  ;;  %v1570_v8 = vadd.f32 %v3610_v26, %v3588_v57 }
0x19fb   :  { %2038 = vmatpush.bf16.msrb.mxu1 %v3641_v7  ;;  %2100 = vmatpush.bf16.msra.mxu3 %v3641_v7 }
0x19fc   :  { %2158 = vmatpush.bf16.msra.mxu0 %v3641_v7 }
0x19ff   :  { %v2757_v10 = vpop.eup %2756  ;;  %2331 = vmatpush.bf16.msrb.mxu3 %v3638_v24 }
0x1a03   :  { %2332 = vmatpush.bf16.msrb.mxu3 %v3641_v7 }
0x1a3d   :  { %v1865_v63 = vpop.permute.xlu2 %1864 }
0x1a3e   :  { %v1867_v5 = vmul.f32 %v1865_v63, %v1859_v4 }
0x1a40   :  { %1869 = vrot.lane.b32.xlu0 %v1867_v5, %s3064_s23 }
0x1a48   :  { %2020 = vrot.lane.b32.xlu0 %v2757_v10, %s3063_s3 }
0x1ab2   :  { %v1870_v13 = vpop.permute.xlu0 %1869 }
0x1ab3   :  { %v3629_v37 = vadd.f32 %v1870_v13, %v1862_v11 }
0x1ab5   :  { %2758 = vtanh.f32 %v3629_v37 }
0x1aba   :  { %v2021_v0 = vpop.permute.xlu0 %2020 }
0x1abb   :  { %v2759_v12 = vpop.eup %2758  ;;  %v2023_v15 = vmul.f32 %v2021_v0, %v2010_v62 }
0x1abc   :  { %1875 = vrot.lane.b32.xlu2 %v2759_v12, %s3062_s30 }
0x1abd   :  { %v2024_v16 = vpack.c.bf16 %v2023_v15, %v2023_v15 }
0x1ac4   :  { %2026 = vrot.lane.b32.xlu2 %v2024_v16, %s3064_s23 }
0x1b16   :  { %v1876_v18 = vpop.permute.xlu2 %1875 }
0x1b17   :  { %v1878_v19 = vmul.f32 %v1876_v18, %v1859_v4 }
0x1b19   :  { %1880 = vrot.lane.b32.xlu1 %v1878_v19, %s3064_s23  ;;  %v1904_v45 = vpack.c.bf16 %v1878_v19, %v1878_v19 }
0x1b21   :  { %2066 = vrot.lane.b32.xlu1 %v2017_v60, %s3064_s23 }
0x1b29   :  { %1797 = vrot.lane.b32.xlu1 %v3612_v27, %s3064_s23  ;;  %v2027_v27 = vpop.permute.xlu2 %2026 }
0x1b8b   :  { %v1881_v40 = vpop.permute.xlu1 %1880 }
0x1b8c   :  { %2530 = vmatmul.msk.f32.vlgmr.msra.gmra.mxu1 %vm301_vm10, %v1881_v40 }
0x1b8d   :  { %2273 = vmatpush.bf16.msra.mxu1 %v3638_v24 }
0x1b91   :  { %2274 = vmatpush.bf16.msra.mxu1 %v3641_v7 }
0x1b93   :  { %v2067_v41 = vpop.permute.xlu1 %2066 }
0x1b94   :  { %2535 = vmatmul.msk.bf16.vlgmr.msrb.gmra.mxu1 %vm301_vm10, %v2027_v27 }
0x1b9b   :  { %v1798_v42 = vpop.permute.xlu1 %1797 }
0x1b9c   :  { %2527 = vmatmul.msk.f32.vlgmr.msra.gmra.mxu2 %vm301_vm10, %v1798_v42 }
0x1b9d   :  { %2215 = vmatpush.bf16.msra.mxu2 %v3638_v24 }
0x1ba1   :  { %2216 = vmatpush.bf16.msra.mxu2 %v3641_v7 }
0x1c09   :  { %v3657_v28 = vpop.f32.mrf.mxu1 }
0x1c11   :  { %v2040_v54 = vpop.f32.mrf.mxu1 }
0x1c12   :  { %v2044_v32 = vadd.f32 %v2040_v54, %v1487_v43 }
0x1c14   :  { %2760 = vtanh.f32 %v2044_v32  ;;  %v2536_v30 = vmul.f32 -1.442695, %v2044_v32 }
0x1c16   :  { %2762 = vpow2.f32 %v2536_v30 }
0x1c19   :  { %v2042_v33 = vpop.f32.mrf.mxu1 }
0x1c1a   :  { %v2761_v22 = vpop.eup %2760 }
0x1c1b   :  { %2071 = vrot.lane.b32.xlu0 %v2761_v22, %s3062_s30 }
0x1c1c   :  { %v2763_v34 = vpop.eup %2762 }
0x1c1d   :  { %v2048_v38 = vadd.f32 1.0, %v2763_v34 }
0x1c1f   :  { %2764 = vrcp.f32 %v2048_v38  ;;  %v2060_v29 = vand.u32 2147483648, %v2048_v38  ;;  %vm2054_vm14 = vweird.f32 %v2048_v38  ;;  %v2058_v53 = vand.u32 2147483647, %v2048_v38  ;;  %v3670_v48 = vpop.f32.mrf.mxu2 }
0x1c21   :  { %v2061_v39 = vor.u32 1.1754944e-38, %v2060_v29  ;;  %vm2059_vm0 = vcmp.eq.f32.partialorder %v2058_v53, 8.507059e+37 }
0x1c25   :  { %v2765_v50 = vpop.eup %2764 }
0x1c26   :  { %v2050_v59 = vmul.f32 %v2765_v50, %v2048_v38  ;;  %vm2055_vm13 = vweird.f32 %v2765_v50 }
0x1c27   :  { %vm2056_vm15 = vmor %vm2054_vm14, %vm2055_vm13 }
0x1c28   :  { %v2051_v35 = vsub.f32 1.0, %v2050_v59 }
0x1c2a   :  { %v2052_v6 = vmul.f32 %v2765_v50, %v2051_v35 }
0x1c2c   :  { %v2053_v58 = vadd.f32 %v2765_v50, %v2052_v6 }
0x1c2e   :  { %v2057_v21 = vsel %vm2056_vm15, %v2765_v50, %v2053_v58 }
0x1c2f   :  { %v2062_v56 = vsel %vm2059_vm0, %v2061_v39, %v2057_v21 }
0x1c30   :  { %v2069_v44 = vmul.f32 %v2067_v41, %v2062_v56 }
0x1c8d   :  { %v2072_v49 = vpop.permute.xlu0 %2071 }
0x1c8e   :  { %v2074_v46 = vmul.f32 %v2072_v49, %v2062_v56 }
0x1c90   :  { %2076 = vrot.lane.b32.xlu2 %v2074_v46, %s3064_s23 }
0x1c98   :  { %1906 = vrot.lane.b32.xlu2 %v1904_v45, %s3064_s23 }
0x1cea   :  { %v2077_v51 = vpop.permute.xlu2 %2076 }
0x1ceb   :  { %v3664_v55 = vadd.f32 %v2077_v51, %v2069_v44 }
0x1ced   :  { %2766 = vtanh.f32 %v3664_v55 }
0x1cf2   :  { %v1907_v17 = vpop.permute.xlu2 %1906 }
0x1cf3   :  { %v2767_v47 = vpop.eup %2766  ;;  %2531 = vmatmul.msk.bf16.vlgmr.msrb.gmra.mxu2 %vm301_vm10, %v1907_v17 }
0x1cf4   :  { %2082 = vrot.lane.b32.xlu0 %v2767_v47, %s3062_s30 }
0x1d66   :  { %v2083_v36 = vpop.permute.xlu0 %2082 }
0x1d67   :  { %v2085_v23 = vmul.f32 %v2083_v36, %v2062_v56 }
0x1d69   :  { %v2086_v2 = vpack.c.bf16 %v2085_v23, %v2085_v23 }
0x1d6b   :  { %2088 = vrot.lane.b32.xlu0 %v2086_v2, %s3064_s23 }
0x1d76   :  { %v1920_v61 = vpop.f32.mrf.mxu2 }
0x1d77   :  { %v1924_v62 = vadd.f32 %v1920_v61, %v1330_v3  ;;  %v1653_v3 = vadd.f32 %v3610_v26, %v3590_v14 }
0x1d79   :  { %2768 = vtanh.f32 %v1924_v62  ;;  %v2532_v4 = vmul.f32 -1.442695, %v1924_v62 }
0x1d7b   :  { %2770 = vpow2.f32 %v2532_v4 }
0x1d7e   :  { %v1922_v60 = vpop.f32.mrf.mxu2 }
0x1d7f   :  { %v2769_v63 = vpop.eup %2768 }
0x1d80   :  { %1947 = vrot.lane.b32.xlu1 %v2769_v63, %s3062_s30 }
0x1d81   :  { %v2771_v5 = vpop.eup %2770 }
0x1d82   :  { %v1928_v10 = vadd.f32 1.0, %v2771_v5 }
0x1d84   :  { %2772 = vrcp.f32 %v1928_v10  ;;  %v1940_v9 = vand.u32 2147483648, %v1928_v10  ;;  %vm1934_vm2 = vweird.f32 %v1928_v10  ;;  %v1938_v16 = vand.u32 2147483647, %v1928_v10 }
0x1d86   :  { %v1941_v19 = vor.u32 1.1754944e-38, %v1940_v9  ;;  %vm1939_vm4 = vcmp.eq.f32.partialorder %v1938_v16, 8.507059e+37 }
0x1d8a   :  { %v2773_v11 = vpop.eup %2772 }
0x1d8b   :  { %v1930_v12 = vmul.f32 %v2773_v11, %v1928_v10  ;;  %vm1935_vm1 = vweird.f32 %v2773_v11 }
0x1d8c   :  { %vm1936_vm3 = vmor %vm1934_vm2, %vm1935_vm1 }
0x1d8d   :  { %v1931_v0 = vsub.f32 1.0, %v1930_v12 }
0x1d8f   :  { %v1932_v15 = vmul.f32 %v2773_v11, %v1931_v0 }
0x1d91   :  { %v1933_v52 = vadd.f32 %v2773_v11, %v1932_v15 }
0x1d93   :  { %v1937_v18 = vsel %vm1936_vm3, %v2773_v11, %v1933_v52 }
0x1d94   :  { %v1942_v1 = vsel %vm1939_vm4, %v1941_v19, %v1937_v18 }
0x1d95   :  { %v1945_v41 = vmul.f32 %v1942_v1, %v3629_v37 }
0x1ddd   :  { %v2089_v13 = vpop.permute.xlu0 %2088 }
0x1dde   :  { %2537 = vmatmul.msk.bf16.vlgmr.msra.gmra.mxu3 %vm301_vm10, %v2089_v13 }
0x1df2   :  { %v1948_v20 = vpop.permute.xlu1 %1947 }
0x1df3   :  { %v1950_v25 = vmul.f32 %v1948_v20, %v1942_v1 }
0x1df5   :  { %1952 = vrot.lane.b32.xlu0 %v1950_v25, %s3064_s23 }
0x1e61   :  { %v2102_v40 = vpop.f32.mrf.mxu3 }
0x1e62   :  { %v2106_v27 = vadd.f32 %v2102_v40, %v1570_v8 }
0x1e64   :  { %2774 = vtanh.f32 %v2106_v27  ;;  %v2538_v22 = vmul.f32 -1.442695, %v2106_v27 }
0x1e67   :  { %v1953_v42 = vpop.permute.xlu0 %1952 }
0x1e68   :  { %v1955_v43 = vadd.f32 %v1953_v42, %v1945_v41  ;;  %v1736_v42 = vadd.f32 %v3610_v26, %v3621_v31 }
0x1e69   :  { %v2104_v54 = vpop.f32.mrf.mxu3 }
0x1e6a   :  { %v2775_v32 = vpop.eup %2774  ;;  %2776 = vtanh.f32 %v1955_v43 }
0x1e6b   :  { %2129 = vrot.lane.b32.xlu2 %v2775_v32, %s3062_s30  ;;  %2778 = vpow2.f32 %v2538_v22 }
0x1e70   :  { %v2777_v33 = vpop.eup %2776 }
0x1e71   :  { %v2779_v30 = vpop.eup %2778 }
0x1e72   :  { %v2110_v34 = vadd.f32 1.0, %v2779_v30 }
0x1e73   :  { %1958 = vrot.lane.b32.xlu2 %v2777_v33, %s3062_s30 }
0x1e74   :  { %2780 = vrcp.f32 %v2110_v34  ;;  %v2122_v35 = vand.u32 2147483648, %v2110_v34  ;;  %vm2116_vm6 = vweird.f32 %v2110_v34  ;;  %v2120_v6 = vand.u32 2147483647, %v2110_v34 }
0x1e76   :  { %v2123_v29 = vor.u32 1.1754944e-38, %v2122_v35  ;;  %vm2121_vm7 = vcmp.eq.f32.partialorder %v2120_v6, 8.507059e+37 }
0x1e7a   :  { %v2781_v57 = vpop.eup %2780 }
0x1e7b   :  { %v2112_v38 = vmul.f32 %v2781_v57, %v2110_v34  ;;  %vm2117_vm5 = vweird.f32 %v2781_v57 }
0x1e7c   :  { %vm2118_vm9 = vmor %vm2116_vm6, %vm2117_vm5 }
0x1e7d   :  { %v2113_v50 = vsub.f32 1.0, %v2112_v38 }
0x1e7f   :  { %v2114_v59 = vmul.f32 %v2781_v57, %v2113_v50 }
0x1e81   :  { %v2115_v37 = vadd.f32 %v2781_v57, %v2114_v59 }
0x1e83   :  { %v2119_v58 = vsel %vm2118_vm9, %v2781_v57, %v2115_v37 }
0x1e84   :  { %v2124_v21 = vsel %vm2121_vm7, %v2123_v29, %v2119_v58 }
0x1e85   :  { %v2127_v46 = vmul.f32 %v2124_v21, %v3664_v55 }
0x1ec5   :  { %v2130_v53 = vpop.permute.xlu2 %2129 }
0x1ec6   :  { %v2132_v39 = vmul.f32 %v2130_v53, %v2124_v21 }
0x1ec8   :  { %2134 = vrot.lane.b32.xlu1 %v2132_v39, %s3064_s23 }
0x1ecd   :  { %v1959_v49 = vpop.permute.xlu2 %1958 }
0x1ece   :  { %v1961_v56 = vmul.f32 %v1959_v49, %v1942_v1 }
0x1ed0   :  { %1963 = vrot.lane.b32.xlu1 %v1961_v56, %s3064_s23 }
0x1f3a   :  { %v2135_v45 = vpop.permute.xlu1 %2134 }
0x1f3b   :  { %v2137_v44 = vadd.f32 %v2135_v45, %v2127_v46 }
0x1f3d   :  { %2782 = vtanh.f32 %v2137_v44 }
0x1f42   :  { %v1964_v51 = vpop.permute.xlu1 %1963 }
0x1f43   :  { %v2783_v17 = vpop.eup %2782  ;;  %2533 = vmatmul.msk.f32.vlgmr.msrb.gmra.mxu0 %vm301_vm10, %v1964_v51 }
0x1f44   :  { %2140 = vrot.lane.b32.xlu0 %v2783_v17, %s3062_s30  ;;  %2389 = vmatpush.bf16.msrb.mxu0 %v3638_v24 }
0x1f48   :  { %2390 = vmatpush.bf16.msrb.mxu0 %v3641_v7 }
0x1fb6   :  { %v2141_v47 = vpop.permute.xlu0 %2140 }
0x1fb7   :  { %v2143_v36 = vmul.f32 %v2141_v47, %v2124_v21  ;;  %v1819_v47 = vadd.f32 %v3610_v26, %v3670_v48 }
0x1fb9   :  { %v2144_v23 = vpack.c.bf16 %v2143_v36, %v2143_v36 }
0x1fbb   :  { %2146 = vrot.lane.b32.xlu2 %v2144_v23, %s3064_s23 }
0x1fc0   :  { %v3691_v55 = vpop.f32.mrf.mxu0 }
0x2015   :  { %v2147_v2 = vpop.permute.xlu2 %2146 }
0x2016   :  { %2539 = vmatmul.msk.bf16.vlgmr.msra.gmra.mxu0 %vm301_vm10, %v2147_v2 }
0x2093   :  { %v2160_v61 = vpop.f32.mrf.mxu0 }
0x2094   :  { %v2164_v62 = vadd.f32 %v2160_v61, %v1653_v3 }
0x2096   :  { %2784 = vtanh.f32 %v2164_v62  ;;  %v2540_v7 = vmul.f32 -1.442695, %v2164_v62 }
0x2098   :  { %2786 = vpow2.f32 %v2540_v7 }
0x209b   :  { %v2162_v60 = vpop.f32.mrf.mxu0 }
0x209c   :  { %v2785_v24 = vpop.eup %2784 }
0x209d   :  { %2187 = vrot.lane.b32.xlu0 %v2785_v24, %s3062_s30 }
0x209e   :  { %v2787_v63 = vpop.eup %2786 }
0x209f   :  { %v2168_v4 = vadd.f32 1.0, %v2787_v63 }
0x20a1   :  { %2788 = vrcp.f32 %v2168_v4  ;;  %v2180_v0 = vand.u32 2147483648, %v2168_v4  ;;  %vm2174_vm11 = vweird.f32 %v2168_v4  ;;  %v2178_v14 = vand.u32 2147483647, %v2168_v4 }
0x20a3   :  { %v2181_v52 = vor.u32 1.1754944e-38, %v2180_v0  ;;  %vm2179_vm13 = vcmp.eq.f32.partialorder %v2178_v14, 8.507059e+37 }
0x20a7   :  { %v2789_v5 = vpop.eup %2788 }
0x20a8   :  { %v2170_v10 = vmul.f32 %v2789_v5, %v2168_v4  ;;  %vm2175_vm8 = vweird.f32 %v2789_v5 }
0x20a9   :  { %vm2176_vm12 = vmor %vm2174_vm11, %vm2175_vm8 }
0x20aa   :  { %v2171_v11 = vsub.f32 1.0, %v2170_v10 }
0x20ac   :  { %v2172_v13 = vmul.f32 %v2789_v5, %v2171_v11 }
0x20ae   :  { %v2173_v12 = vadd.f32 %v2789_v5, %v2172_v13 }
0x20b0   :  { %v2177_v15 = vsel %vm2176_vm12, %v2789_v5, %v2173_v12 }
0x20b1   :  { %v2182_v16 = vsel %vm2179_vm13, %v2181_v52, %v2177_v15 }
0x20b2   :  { %v2185_v19 = vmul.f32 %v2182_v16, %v2137_v44 }
0x210f   :  { %v2188_v9 = vpop.permute.xlu0 %2187 }
0x2110   :  { %v2190_v18 = vmul.f32 %v2188_v9, %v2182_v16 }
0x2112   :  { %2192 = vrot.lane.b32.xlu1 %v2190_v18, %s3064_s23 }
0x2184   :  { %v2193_v20 = vpop.permute.xlu1 %2192 }
0x2185   :  { %v2195_v1 = vadd.f32 %v2193_v20, %v2185_v19 }
0x2187   :  { %2790 = vtanh.f32 %v2195_v1 }
0x218d   :  { %v2791_v25 = vpop.eup %2790 }
0x218e   :  { %2198 = vrot.lane.b32.xlu2 %v2791_v25, %s3062_s30  ;;  %v1902_v25 = vadd.f32 %v3610_v26, %v3657_v28 }
0x21e8   :  { %v2199_v8 = vpop.permute.xlu2 %2198 }
0x21e9   :  { %v2201_v40 = vmul.f32 %v2199_v8, %v2182_v16 }
0x21eb   :  { %v2202_v27 = vpack.c.bf16 %v2201_v40, %v2201_v40 }
0x21ed   :  { %2204 = vrot.lane.b32.xlu0 %v2202_v27, %s3064_s23 }
0x225f   :  { %v2205_v41 = vpop.permute.xlu0 %2204 }
0x2260   :  { %2541 = vmatmul.msk.bf16.vlgmr.msra.gmra.mxu2 %vm301_vm10, %v2205_v41 }
0x22e3   :  { %v2218_v43 = vpop.f32.mrf.mxu2 }
0x22e4   :  { %v2222_v54 = vadd.f32 %v2218_v43, %v1736_v42 }
0x22e6   :  { %2792 = vtanh.f32 %v2222_v54  ;;  %v2542_v22 = vmul.f32 -1.442695, %v2222_v54 }
0x22e8   :  { %2794 = vpow2.f32 %v2542_v22 }
0x22eb   :  { %v2220_v32 = vpop.f32.mrf.mxu2 }
0x22ec   :  { %v2793_v33 = vpop.eup %2792 }
0x22ed   :  { %2245 = vrot.lane.b32.xlu1 %v2793_v33, %s3062_s30 }
0x22ee   :  { %v2795_v30 = vpop.eup %2794 }
0x22ef   :  { %v2226_v34 = vadd.f32 1.0, %v2795_v30 }
0x22f1   :  { %2796 = vrcp.f32 %v2226_v34  ;;  %v2238_v35 = vand.u32 2147483648, %v2226_v34  ;;  %vm2232_vm15 = vweird.f32 %v2226_v34  ;;  %v2236_v31 = vand.u32 2147483647, %v2226_v34 }
0x22f3   :  { %v2239_v58 = vor.u32 1.1754944e-38, %v2238_v35  ;;  %vm2237_vm1 = vcmp.eq.f32.partialorder %v2236_v31, 8.507059e+37 }
0x22f7   :  { %v2797_v57 = vpop.eup %2796 }
0x22f8   :  { %v2228_v38 = vmul.f32 %v2797_v57, %v2226_v34  ;;  %vm2233_vm14 = vweird.f32 %v2797_v57 }
0x22f9   :  { %vm2234_vm0 = vmor %vm2232_vm15, %vm2233_vm14  ;;  %vm2467_vm15 = vcmask 517120  }
0x22fa   :  { %v2229_v50 = vsub.f32 1.0, %v2228_v38 }
0x22fc   :  { %v2230_v59 = vmul.f32 %v2797_v57, %v2229_v50 }
0x22fe   :  { %v2231_v37 = vadd.f32 %v2797_v57, %v2230_v59 }
0x2300   :  { %v2235_v6 = vsel %vm2234_vm0, %v2797_v57, %v2231_v37 }
0x2301   :  { %v2240_v53 = vsel %vm2237_vm1, %v2239_v58, %v2235_v6 }
0x2302   :  { %v2243_v39 = vmul.f32 %v2240_v53, %v2195_v1 }
0x235f   :  { %v2246_v29 = vpop.permute.xlu1 %2245 }
0x2360   :  { %v2248_v21 = vmul.f32 %v2246_v29, %v2240_v53 }
0x2362   :  { %2250 = vrot.lane.b32.xlu2 %v2248_v21, %s3064_s23 }
0x23bc   :  { %v2251_v49 = vpop.permute.xlu2 %2250 }
0x23bd   :  { %v2253_v56 = vadd.f32 %v2251_v49, %v2243_v39 }
0x23bf   :  { %2798 = vtanh.f32 %v2253_v56 }
0x23c5   :  { %v2799_v46 = vpop.eup %2798 }
0x23c6   :  { %2256 = vrot.lane.b32.xlu0 %v2799_v46, %s3062_s30 }
0x2438   :  { %v2257_v45 = vpop.permute.xlu0 %2256 }
0x2439   :  { %v2259_v44 = vmul.f32 %v2257_v45, %v2240_v53 }
0x243b   :  { %v2260_v51 = vpack.c.bf16 %v2259_v44, %v2259_v44 }
0x243d   :  { %2262 = vrot.lane.b32.xlu1 %v2260_v51, %s3064_s23 }
0x24af   :  { %v2263_v17 = vpop.permute.xlu1 %2262 }
0x24b0   :  { %2543 = vmatmul.msk.bf16.vlgmr.msra.gmra.mxu1 %vm301_vm10, %v2263_v17 }
0x252d   :  { %v2276_v36 = vpop.f32.mrf.mxu1 }
0x252e   :  { %v2280_v23 = vadd.f32 %v2276_v36, %v1819_v47 }
0x2530   :  { %2800 = vtanh.f32 %v2280_v23  ;;  %v2544_v61 = vmul.f32 -1.442695, %v2280_v23 }
0x2532   :  { %2802 = vpow2.f32 %v2544_v61 }
0x2535   :  { %v2278_v2 = vpop.f32.mrf.mxu1 }
0x2536   :  { %v2801_v3 = vpop.eup %2800 }
0x2537   :  { %2303 = vrot.lane.b32.xlu2 %v2801_v3, %s3062_s30 }
0x2538   :  { %v2803_v62 = vpop.eup %2802 }
0x2539   :  { %v2284_v60 = vadd.f32 1.0, %v2803_v62 }
0x253b   :  { %2804 = vrcp.f32 %v2284_v60  ;;  %v2296_v10 = vand.u32 2147483648, %v2284_v60  ;;  %vm2290_vm3 = vweird.f32 %v2284_v60  ;;  %v2294_v48 = vand.u32 2147483647, %v2284_v60 }
0x253d   :  { %v2297_v13 = vor.u32 1.1754944e-38, %v2296_v10  ;;  %vm2295_vm5 = vcmp.eq.f32.partialorder %v2294_v48, 8.507059e+37 }
0x2541   :  { %v2805_v24 = vpop.eup %2804 }
0x2542   :  { %v2286_v7 = vmul.f32 %v2805_v24, %v2284_v60  ;;  %vm2291_vm2 = vweird.f32 %v2805_v24 }
0x2543   :  { %vm2292_vm4 = vmor %vm2290_vm3, %vm2291_vm2 }
0x2544   :  { %v2287_v63 = vsub.f32 1.0, %v2286_v7 }
0x2546   :  { %v2288_v4 = vmul.f32 %v2805_v24, %v2287_v63 }
0x2548   :  { %v2289_v5 = vadd.f32 %v2805_v24, %v2288_v4 }
0x254a   :  { %v2293_v11 = vsel %vm2292_vm4, %v2805_v24, %v2289_v5 }
0x254b   :  { %v2298_v0 = vsel %vm2295_vm5, %v2297_v13, %v2293_v11  ;;  %v2437_v13 = vld [vmem:[#allocation13 + $0x18] sm:$0xff] }
0x254c   :  { %v2301_v15 = vmul.f32 %v2298_v0, %v2253_v56  ;;  %v1985_v56 = vadd.f32 %v3610_v26, %v3691_v55  ;;  %2459 = vmatpush.msrb.mxu2 %v2437_v13 }
0x2591   :  { %v2304_v12 = vpop.permute.xlu2 %2303 }
0x2592   :  { %v2306_v14 = vmul.f32 %v2304_v12, %v2298_v0  ;;  %v2436_v12 = vld [vmem:[#allocation13 + $0x10] sm:$0xff] }
0x2593   :  { %2460 = vmatpush.msrb.mxu2 %v2436_v12 }
0x2594   :  { %2308 = vrot.lane.b32.xlu0 %v2306_v14, %s3064_s23  ;;  %v2434_v14 = vld [vmem:[#allocation13] sm:$0xff] }
0x2606   :  { %v2309_v52 = vpop.permute.xlu0 %2308 }
0x2607   :  { %v2311_v9 = vadd.f32 %v2309_v52, %v2301_v15 }
0x2609   :  { %2806 = vtanh.f32 %v2311_v9 }
0x260f   :  { %v2807_v16 = vpop.eup %2806 }
0x2610   :  { %2314 = vrot.lane.b32.xlu1 %v2807_v16, %s3062_s30  ;;  %v2567_v16 = vld [vmem:[#allocation15] ss:$0 sm:$0xff] }
0x2682   :  { %v2315_v18 = vpop.permute.xlu1 %2314 }
0x2683   :  { %v2317_v19 = vmul.f32 %v2315_v18, %v2298_v0  ;;  %v2435_v0 = vld [vmem:[#allocation13 + $0x8] sm:$0xff] }
0x2684   :  { %2461 = vmatpush.msrb.mxu2 %v2435_v0 }
0x2685   :  { %v2318_v20 = vpack.c.bf16 %v2317_v19, %v2317_v19 }
0x2686   :  { %2462 = vmatpush.msrb.mxu2 %v2434_v14 }
0x2687   :  { %2320 = vrot.lane.b32.xlu2 %v2318_v20, %s3064_s23 }
0x26e1   :  { %v2321_v1 = vpop.permute.xlu2 %2320 }
0x26e2   :  { %2545 = vmatmul.msk.bf16.vlgmr.msrb.gmra.mxu3 %vm301_vm10, %v2321_v1 }
0x2765   :  { %v2334_v8 = vpop.f32.mrf.mxu3 }
0x2766   :  { %v2338_v40 = vadd.f32 %v2334_v8, %v1902_v25 }
0x2768   :  { %2808 = vtanh.f32 %v2338_v40  ;;  %v2546_v42 = vmul.f32 -1.442695, %v2338_v40 }
0x276a   :  { %2810 = vpow2.f32 %v2546_v42 }
0x276d   :  { %v2336_v27 = vpop.f32.mrf.mxu3 }
0x276e   :  { %v2809_v41 = vpop.eup %2808 }
0x276f   :  { %2361 = vrot.lane.b32.xlu0 %v2809_v41, %s3062_s30 }
0x2770   :  { %v2811_v43 = vpop.eup %2810 }
0x2771   :  { %v2342_v54 = vadd.f32 1.0, %v2811_v43 }
0x2773   :  { %2812 = vrcp.f32 %v2342_v54  ;;  %v2354_v57 = vand.u32 2147483648, %v2342_v54  ;;  %vm2348_vm9 = vweird.f32 %v2342_v54  ;;  %v2352_v28 = vand.u32 2147483647, %v2342_v54 }
0x2775   :  { %v2355_v50 = vor.u32 1.1754944e-38, %v2354_v57  ;;  %vm2353_vm8 = vcmp.eq.f32.partialorder %v2352_v28, 8.507059e+37 }
0x2779   :  { %v2813_v32 = vpop.eup %2812 }
0x277a   :  { %v2344_v33 = vmul.f32 %v2813_v32, %v2342_v54  ;;  %vm2349_vm6 = vweird.f32 %v2813_v32 }
0x277b   :  { %vm2350_vm7 = vmor %vm2348_vm9, %vm2349_vm6 }
0x277c   :  { %v2345_v22 = vsub.f32 1.0, %v2344_v33 }
0x277e   :  { %v2346_v30 = vmul.f32 %v2813_v32, %v2345_v22 }
0x2780   :  { %v2347_v34 = vadd.f32 %v2813_v32, %v2346_v30 }
0x2782   :  { %v2351_v38 = vsel %vm2350_vm7, %v2813_v32, %v2347_v34 }
0x2783   :  { %v2356_v37 = vsel %vm2353_vm8, %v2355_v50, %v2351_v38 }
0x2784   :  { %v2359_v31 = vmul.f32 %v2356_v37, %v2311_v9 }
0x27e1   :  { %v2362_v59 = vpop.permute.xlu0 %2361 }
0x27e2   :  { %v2364_v35 = vmul.f32 %v2362_v59, %v2356_v37 }
0x27e4   :  { %2366 = vrot.lane.b32.xlu1 %v2364_v35, %s3064_s23 }
0x2856   :  { %v2367_v6 = vpop.permute.xlu1 %2366 }
0x2857   :  { %v2369_v58 = vadd.f32 %v2367_v6, %v2359_v31 }
0x2859   :  { %2814 = vtanh.f32 %v2369_v58 }
0x285f   :  { %v2815_v29 = vpop.eup %2814 }
0x2860   :  { %2372 = vrot.lane.b32.xlu2 %v2815_v29, %s3062_s30 }
0x28ba   :  { %v2373_v53 = vpop.permute.xlu2 %2372 }
0x28bb   :  { %v2375_v21 = vmul.f32 %v2373_v53, %v2356_v37 }
0x28bd   :  { %v2376_v39 = vpack.c.bf16 %v2375_v21, %v2375_v21 }
0x28bf   :  { %2378 = vrot.lane.b32.xlu0 %v2376_v39, %s3064_s23 }
0x2931   :  { %v2379_v49 = vpop.permute.xlu0 %2378 }
0x2932   :  { %2547 = vmatmul.msk.bf16.vlgmr.msrb.gmra.mxu0 %vm301_vm10, %v2379_v49 }
0x29af   :  { %v2392_v46 = vpop.f32.mrf.mxu0 }
0x29b0   :  { %v2396_v45 = vadd.f32 %v2392_v46, %v1985_v56 }
0x29b2   :  { %2816 = vtanh.f32 %v2396_v45  ;;  %v2548_v17 = vmul.f32 -1.442695, %v2396_v45 }
0x29b4   :  { %2818 = vpow2.f32 %v2548_v17 }
0x29b7   :  { %v2394_v44 = vpop.f32.mrf.mxu0 }
0x29b8   :  { %v2817_v51 = vpop.eup %2816 }
0x29b9   :  { %2419 = vrot.lane.b32.xlu1 %v2817_v51, %s3062_s30 }
0x29ba   :  { %v2819_v47 = vpop.eup %2818 }
0x29bb   :  { %v2400_v36 = vadd.f32 1.0, %v2819_v47 }
0x29bd   :  { %2820 = vrcp.f32 %v2400_v36  ;;  %v2412_v60 = vand.u32 2147483648, %v2400_v36  ;;  %vm2406_vm12 = vweird.f32 %v2400_v36  ;;  %v2410_v26 = vand.u32 2147483647, %v2400_v36 }
0x29bf   :  { %v2413_v24 = vor.u32 1.1754944e-38, %v2412_v60  ;;  %vm2411_vm14 = vcmp.eq.f32.partialorder %v2410_v26, 8.507059e+37 }
0x29c3   :  { %v2821_v23 = vpop.eup %2820 }
0x29c4   :  { %v2402_v2 = vmul.f32 %v2821_v23, %v2400_v36  ;;  %vm2407_vm11 = vweird.f32 %v2821_v23 }
0x29c5   :  { %vm2408_vm13 = vmor %vm2406_vm12, %vm2407_vm11 }
0x29c6   :  { %v2403_v3 = vsub.f32 1.0, %v2402_v2 }
0x29c8   :  { %v2404_v61 = vmul.f32 %v2821_v23, %v2403_v3 }
0x29ca   :  { %v2405_v62 = vadd.f32 %v2821_v23, %v2404_v61 }
0x29cc   :  { %v2409_v55 = vsel %vm2408_vm13, %v2821_v23, %v2405_v62 }
0x29cd   :  { %v2414_v63 = vsel %vm2411_vm14, %v2413_v24, %v2409_v55 }
0x29ce   :  { %v2417_v5 = vmul.f32 %v2414_v63, %v2369_v58 }
0x2a2b   :  { %v2420_v7 = vpop.permute.xlu1 %2419 }
0x2a2c   :  { %v2422_v4 = vmul.f32 %v2420_v7, %v2414_v63 }
0x2a2e   :  { %2424 = vrot.lane.b32.xlu2 %v2422_v4, %s3064_s23 }
0x2a88   :  { %v2425_v10 = vpop.permute.xlu2 %2424 }
0x2a89   :  { %v2427_v48 = vadd.f32 %v2425_v10, %v2417_v5 }
0x2a8b   :  { %2822 = vtanh.f32 %v2427_v48 }
0x2a91   :  { %v2823_v11 = vpop.eup %2822 }
0x2a92   :  { %2430 = vrot.lane.b32.xlu0 %v2823_v11, %s3062_s30 }
0x2b04   :  { %v2431_v15 = vpop.permute.xlu0 %2430 }
0x2b05   :  { %v2433_v52 = vmul.f32 %v2431_v15, %v2414_v63 }
0x2b07   :  { %2443 = vrot.lane.b32.xlu1 %v2433_v52, %s3064_s23 }
0x2b79   :  { %v2444_v9 = vpop.permute.xlu1 %2443 }
0x2b7a   :  { %2549 = vmatmul.msk.f32.vlgmr.msrb.gmra.mxu2 %vm301_vm10, %v2444_v9 }
0x2bfd   :  { %v2464_v18 = vpop.f32.mrf.mxu2 }
0x2bfe   :  { %v2465_v19 = vadd.f32 %v2567_v16, %v2464_v18 }
0x2c00   :  { %2468 = vst.msk [vmem:[%s3743_s12] sm:$0x3] %vm2467_vm15, %v2465_v19 }
0x2c01   :  { %2473 = vsyncpa [#allocation3], 1 }
0x2c02   :  { %2474 = vsyncpa [#allocation5], 1 }
0x2c03   :  { %2475 = vsyncpa [#allocation8], 1 }
0x2c04   :  { %2476 = vsyncpa [#allocation11], 1 }
0x2c05   :  { %2477 = vsyncpa [#allocation14], 1 }

</bundles_post_ra>
